<compile_context>
chip_gen: v6e
topology: v6e:2x2x1
jax: 0.10.0
libtpu: 0.0.40
codegen_flags: <defaults>
</compile_context>

<pallas_src>
import functools
import math

import jax
import jax.numpy as jnp
from jax import lax
from jax.experimental import pallas as pl
from jax.experimental.pallas import tpu as pltpu

DTYPE = jnp.bfloat16


def _rup(x, m):
    return ((x + m - 1) // m) * m


def _cdiv(a, b):
    return (a + b - 1) // b


def _compiler_params(dims, nbytes):
    """VMEM limit derived from the actual tile footprint (+headroom), capped so
    it stays safe on v7x (64 MiB/TC) as well as v5e/v6e (128 MiB)."""
    limit = int(min(48 * 2**20, max(16 * 2**20, nbytes + 8 * 2**20)))
    return pltpu.CompilerParams(dimension_semantics=dims, vmem_limit_bytes=limit)


def _fold_bn(bn):
    gamma, beta, mean, var = bn
    scale = gamma / jnp.sqrt(var + 1e-5)
    bias = beta - mean * scale
    return scale.astype(jnp.float32), bias.astype(jnp.float32)


def _pick_tiles(m, nc, k):
    """Adaptive (tm, tn): a-tile ~<=2 MiB bf16 (big tiles for small-K matmuls),
    keep >=2 blocks over the parallel axes so both v7x TensorCores get work."""
    tn = min(_rup(nc, 128), 256)
    kp = _rup(max(k, 1), 8)
    tm_cap = (2 * 1024 * 1024) // (2 * kp)
    tm_cap = max(256, min(1024, (tm_cap // 128) * 128))
    tm = min(_rup(m, 128), tm_cap)
    if _cdiv(m, tm) * _cdiv(nc, tn) < 2:
        if tm > 128:
            tm = max(128, _rup(_cdiv(m, 2), 128))
        elif tn > 128:
            tn = 128
    return tm, tn


# ----------------------------- Pallas kernels -----------------------------

def _mm_bn_kernel(*refs, relu, has_res):
    """Single-K-block bf16 matmul (f32 MXU accumulate) + fused BN scale/bias,
    optional residual add and ReLU; bf16 output.  No f32 VMEM accumulator."""
    if has_res:
        a_ref, w_ref, s_ref, b_ref, r_ref, o_ref = refs
    else:
        a_ref, w_ref, s_ref, b_ref, o_ref = refs
        r_ref = None
    y = jnp.dot(a_ref[...], w_ref[...], preferred_element_type=jnp.float32)
    y = y * s_ref[...] + b_ref[...]
    if r_ref is not None:
        y = y + r_ref[...].astype(jnp.float32)
    if relu:
        y = jnp.maximum(y, 0.0)
    o_ref[...] = y.astype(o_ref.dtype)


def _tapconv_kernel(a_hbm, w_ref, s_ref, b_ref, o_ref,
                    b0, b1, sem, acc_ref, *, taps, half, win, cin, relu):
    """Direct 3x3 conv via halo windows.

    Each grid step computes a (2*half, tn) output tile in two half-tiles.
    Per half-tile one halo window of `win` rows of the flattened activation is
    DMA'd from HBM (memory_space=ANY) into a double-buffered VMEM scratch; the
    9 taps are static (row-shift, channel-offset) slices of that window feeding
    row-shifted MXU matmuls.  The next grid step's windows are prefetched while
    the current step computes.  BN/ReLU are fused into the f32 epilogue.
    """
    t = pl.program_id(1)
    n_t = pl.num_programs(1)
    tm2 = 2 * half
    base = pl.multiple_of(t * tm2, 256)

    def halo(start, buf, s_idx):
        return pltpu.make_async_copy(a_hbm.at[pl.ds(start, win), :], buf,
                                     sem.at[s_idx])

    @pl.when(t == 0)
    def _():                                       # prime the pipeline
        halo(base, b0, 0).start()
        halo(base + half, b1, 1).start()

    def compute_half(buf, row0):
        acc_ref[...] = jnp.zeros_like(acc_ref)
        for ti, (shift, coff) in enumerate(taps):
            acc_ref[...] += jnp.dot(buf[shift:shift + half, coff:coff + cin],
                                    w_ref[ti],
                                    preferred_element_type=jnp.float32)
        y = acc_ref[...] * s_ref[...] + b_ref[...]
        if relu:
            y = jnp.maximum(y, 0.0)
        o_ref[row0:row0 + half, :] = y.astype(o_ref.dtype)

    halo(base, b0, 0).wait()
    compute_half(b0, 0)

    @pl.when(t + 1 < n_t)                          # prefetch next step, half 0
    def _():
        halo(base + tm2, b0, 0).start()

    halo(base + half, b1, 1).wait()
    compute_half(b1, half)

    @pl.when(t + 1 < n_t)                          # prefetch next step, half 1
    def _():
        halo(base + tm2 + half, b1, 1).start()


def _maxpool_kernel(x_ref, o_ref, *, taps, chunk):
    """3x3 stride-2 max pool on a space-to-depth (phase-major) layout; the 9
    window taps are static phase/row slices of the single VMEM-resident input."""
    n_chunks = o_ref.shape[0] // chunk
    for ci in range(n_chunks):
        r0 = ci * chunk
        p0, s0 = taps[0]
        m = x_ref[p0, r0 + s0:r0 + s0 + chunk, :]
        for p, s in taps[1:]:
            m = jnp.maximum(m, x_ref[p, r0 + s:r0 + s + chunk, :])
        o_ref[r0:r0 + chunk, :] = m


def _avgpool_fc_kernel(x_ref, w_ref, b_ref, o_ref):
    """Global average pool over the spatial axis then the final linear layer."""
    pooled = jnp.mean(x_ref[...].astype(jnp.float32), axis=1)  # (N, C)
    o_ref[...] = jnp.dot(pooled, w_ref[...],
                         preferred_element_type=jnp.float32) + b_ref[...]


# ------------------------------ Pallas wrappers ----------------------------

def fused_matmul_bn(a, w, scale, bias, residual=None, relu=True):
    """a:(M,K) @ w:(K,Nc) * scale + bias [+ residual] [relu] -> (M,Nc) bf16."""
    M, K = a.shape
    Nc = w.shape[1]
    tm, tn = _pick_tiles(M, Nc, K)
    Mp, Np = _rup(M, tm), _rup(Nc, tn)

    a_p = a if Mp == M else jnp.pad(a, ((0, Mp - M), (0, 0)))
    w_p = w if Np == Nc else jnp.pad(w, ((0, 0), (0, Np - Nc)))
    a_p = a_p.astype(DTYPE)
    w_p = w_p.astype(DTYPE)
    s_p = jnp.pad(scale, (0, Np - Nc)).reshape(1, Np).astype(jnp.float32)
    b_p = jnp.pad(bias, (0, Np - Nc)).reshape(1, Np).astype(jnp.float32)

    in_specs = [
        pl.BlockSpec((tm, K), lambda i, j: (i, 0)),
        pl.BlockSpec((K, tn), lambda i, j: (0, j)),
        pl.BlockSpec((1, tn), lambda i, j: (0, j)),
        pl.BlockSpec((1, tn), lambda i, j: (0, j)),
    ]
    args = [a_p, w_p, s_p, b_p]
    has_res = residual is not None
    if has_res:
        r_p = residual if (Mp == M and Np == Nc) else jnp.pad(
            residual, ((0, Mp - M), (0, Np - Nc)))
        in_specs.append(pl.BlockSpec((tm, tn), lambda i, j: (i, j)))
        args.append(r_p.astype(DTYPE))

    k_lane = _rup(K, 128)
    nbytes = 2 * 2 * (tm * k_lane + K * tn + tm * tn * (2 if has_res else 1))
    out = pl.pallas_call(
        functools.partial(_mm_bn_kernel, relu=relu, has_res=has_res),
        out_shape=jax.ShapeDtypeStruct((Mp, Np), DTYPE),
        grid_spec=pltpu.PrefetchScalarGridSpec(
            num_scalar_prefetch=0,
            grid=(Mp // tm, Np // tn),
            in_specs=in_specs,
            out_specs=pl.BlockSpec((tm, tn), lambda i, j: (i, j))),
        compiler_params=_compiler_params(("parallel", "parallel"), nbytes),
    )(*args)
    return out[:M, :Nc]


def conv1x1_bn(x, w, bn, stride=1, relu=True, residual=None):
    """1x1 Conv + BN(eval) [+ residual] [+ ReLU] as a plain matmul (no im2col)."""
    if stride > 1:
        x = x[:, ::stride, ::stride, :]
    N, H, W, Cin = x.shape
    Cout = w.shape[0]
    a = x.reshape(N * H * W, Cin)
    w2 = jnp.transpose(w.reshape(Cout, Cin))          # (Cin, Cout)
    scale, bias = _fold_bn(bn)
    res = residual.reshape(N * H * W, Cout) if residual is not None else None
    out = fused_matmul_bn(a, w2, scale, bias, residual=res, relu=relu)
    return out.reshape(N, H, W, Cout)


def conv3x3_bn(x, w, bn, stride, relu=True):
    """3x3 Conv(pad=1) + BN(eval) + ReLU via the halo-window tap kernel."""
    N, H, W, Cin = x.shape
    Cout = w.shape[0]
    Ho = (H + 2 - 3) // stride + 1
    Wo = (W + 2 - 3) // stride + 1

    if stride == 1:
        Gh, Gw = H + 2, W + 2
        xp = jnp.pad(x, ((0, 0), (1, 1), (1, 1), (0, 0)))
        A = xp.reshape(N * Gh * Gw, Cin)
        taps = tuple((kh * Gw + kw, 0) for kh in range(3) for kw in range(3))
        GC = Cin
    else:
        # stride 2: space-to-depth; phases concatenated on channels so every
        # tap is a constant (row-shift, channel-offset) and ONE halo DMA covers
        # all phases.
        Hp, Wp = _rup(H + 2, 2), _rup(W + 2, 2)
        xp = jnp.pad(x, ((0, 0), (1, Hp - H - 1), (1, Wp - W - 1), (0, 0)))
        Gh, Gw = Hp // 2, Wp // 2
        A = xp.reshape(N, Gh, 2, Gw, 2, Cin).transpose(0, 1, 3, 2, 4, 5)
        A = A.reshape(N * Gh * Gw, 4 * Cin)
        taps = tuple(((kh // 2) * Gw + (kw // 2),
                      ((kh % 2) * 2 + (kw % 2)) * Cin)
                     for kh in range(3) for kw in range(3))
        GC = 4 * Cin

    tn = min(_rup(Cout, 128), 256)
    Np = _rup(Cout, tn)
    M_valid = N * Gh * Gw
    TM = min(1024, _rup(M_valid, 256))
    half = TM // 2
    M_grid = _rup(M_valid, TM)
    max_shift = max(s for s, _ in taps)
    win = _rup(half + max_shift, 8)
    Arows = M_grid - half + win                     # OOB-safe halo reads

    A = jnp.pad(A, ((0, Arows - M_valid), (0, 0))).astype(DTYPE)

    w_taps = jnp.transpose(w, (2, 3, 1, 0)).reshape(9, Cin, Cout)
    w_taps = jnp.pad(w_taps, ((0, 0), (0, 0), (0, Np - Cout))).astype(DTYPE)

    scale, bias = _fold_bn(bn)
    s_p = jnp.pad(scale, (0, Np - Cout)).reshape(1, Np)
    b_p = jnp.pad(bias, (0, Np - Cout)).reshape(1, Np)

    nbytes = (2 * win * _rup(GC, 128) * 2 + 2 * 9 * Cin * tn * 2 +
              2 * TM * tn * 2 + half * tn * 4)
    out = pl.pallas_call(
        functools.partial(_tapconv_kernel, taps=taps, half=half, win=win,
                          cin=Cin, relu=relu),
        out_shape=jax.ShapeDtypeStruct((M_grid, Np), DTYPE),
        grid_spec=pltpu.PrefetchScalarGridSpec(
            num_scalar_prefetch=0,
            grid=(Np // tn, M_grid // TM),
            in_specs=[
                pl.BlockSpec(memory_space=pl.ANY),                   # A (HBM)
                pl.BlockSpec((9, Cin, tn), lambda j, t: (0, 0, j)),  # weights
                pl.BlockSpec((1, tn), lambda j, t: (0, j)),          # scale
                pl.BlockSpec((1, tn), lambda j, t: (0, j)),          # bias
            ],
            out_specs=pl.BlockSpec((TM, tn), lambda j, t: (t, j)),
            scratch_shapes=[
                pltpu.VMEM((win, GC), DTYPE),         # halo window, half 0
                pltpu.VMEM((win, GC), DTYPE),         # halo window, half 1
                pltpu.SemaphoreType.DMA((2,)),
                pltpu.VMEM((half, tn), jnp.float32),  # accumulator
            ]),
        compiler_params=_compiler_params(("parallel", "arbitrary"), nbytes),
    )(A, w_taps, s_p, b_p)

    out = out[:M_valid].reshape(N, Gh, Gw, Np)[:, :Ho, :Wo, :Cout]
    return out


def conv_stem(x, w, bn):
    """7x7 stride-2 pad-3 stem conv: small-K bf16 im2col + fused matmul."""
    N, H, W, Cin = x.shape
    Cout = w.shape[0]
    k, stride, pad = 7, 2, 3
    xp = jnp.pad(x, ((0, 0), (pad, pad), (pad, pad), (0, 0)))
    Ho = (H + 2 * pad - k) // stride + 1
    Wo = (W + 2 * pad - k) // stride + 1
    taps = [xp[:, kh:kh + stride * (Ho - 1) + 1:stride,
               kw:kw + stride * (Wo - 1) + 1:stride, :]
            for kh in range(k) for kw in range(k)]
    patches = jnp.stack(taps, axis=3).reshape(N * Ho * Wo, k * k * Cin)
    w2 = jnp.transpose(w, (2, 3, 1, 0)).reshape(k * k * Cin, Cout)
    scale, bias = _fold_bn(bn)
    out = fused_matmul_bn(patches, w2, scale, bias, relu=True)
    return out.reshape(N, Ho, Wo, Cout)


def maxpool_3x3_s2_ceil(x):
    """nn.MaxPool2d(kernel_size=3, stride=2, padding=0, ceil_mode=True), NHWC."""
    N, H, W, C = x.shape
    Ho = _cdiv(H - 3, 2) + 1
    Wo = _cdiv(W - 3, 2) + 1
    Hp = _rup(2 * (Ho - 1) + 3, 2)
    Wp = _rup(2 * (Wo - 1) + 3, 2)
    xp = jnp.pad(x, ((0, 0), (0, Hp - H), (0, Wp - W), (0, 0)),
                 constant_values=-jnp.inf)
    Gh, Gw = Hp // 2, Wp // 2
    A = xp.reshape(N, Gh, 2, Gw, 2, C).transpose(2, 4, 0, 1, 3, 5)
    A = A.reshape(4, N * Gh * Gw, C)                 # phase-major layout
    taps = tuple(((kh % 2) * 2 + (kw % 2), (kh // 2) * Gw + (kw // 2))
                 for kh in range(3) for kw in range(3))

    M_valid = N * Gh * Gw
    chunk = 512 if M_valid >= 512 else _rup(M_valid, 8)
    Mout = _rup(M_valid, chunk)
    max_shift = max(s for _, s in taps)
    Arows = _rup(Mout + max_shift, 8)
    A = jnp.pad(A, ((0, 0), (0, Arows - M_valid), (0, 0)))

    nbytes = 2 * (4 * Arows * _rup(C, 128) * 2 + Mout * _rup(C, 128) * 2)
    out = pl.pallas_call(
        functools.partial(_maxpool_kernel, taps=taps, chunk=chunk),
        out_shape=jax.ShapeDtypeStruct((Mout, C), x.dtype),
        grid_spec=pltpu.PrefetchScalarGridSpec(
            num_scalar_prefetch=0,
            grid=(1,),
            in_specs=[pl.BlockSpec((4, Arows, C), lambda i: (0, 0, 0))],
            out_specs=pl.BlockSpec((Mout, C), lambda i: (0, 0))),
        compiler_params=_compiler_params(("arbitrary",), nbytes),
    )(A)
    return out[:M_valid].reshape(N, Gh, Gw, C)[:, :Ho, :Wo, :]


def avgpool_fc(x, fc_w, fc_b):
    """AvgPool2d(7) + flatten + Linear, fused.  x: (N, S=49, C)."""
    N, S, C = x.shape
    nc = fc_w.shape[0]
    ncp = _rup(nc, 128)
    w2 = jnp.pad(jnp.transpose(fc_w), ((0, 0), (0, ncp - nc)))   # (C, ncp) f32
    b2 = jnp.pad(fc_b, (0, ncp - nc)).reshape(1, ncp)
    nbytes = 2 * (N * _rup(S, 8) * C * 2 + C * ncp * 4 + N * ncp * 4)
    out = pl.pallas_call(
        _avgpool_fc_kernel,
        out_shape=jax.ShapeDtypeStruct((N, ncp), jnp.float32),
        grid_spec=pltpu.PrefetchScalarGridSpec(
            num_scalar_prefetch=0,
            grid=(1,),
            in_specs=[pl.BlockSpec((N, S, C), lambda i: (0, 0, 0)),
                      pl.BlockSpec((C, ncp), lambda i: (0, 0)),
                      pl.BlockSpec((1, ncp), lambda i: (0, 0))],
            out_specs=pl.BlockSpec((N, ncp), lambda i: (0, 0))),
        compiler_params=_compiler_params(("arbitrary",), nbytes),
    )(x, w2, b2)
    return out[:, :nc]


# ------------------------------ Model (Bottleneck ResNet) ------------------

def _init_conv(key, cout, cin, k):
    n = k * k * cout
    return jax.random.normal(key, (cout, cin, k, k), jnp.float32) * math.sqrt(2.0 / n)


def _init_bn(c):
    # (gamma, beta, running_mean, running_var) per the module's init
    return (jnp.ones((c,), jnp.float32), jnp.zeros((c,), jnp.float32),
            jnp.zeros((c,), jnp.float32), jnp.ones((c,), jnp.float32))


def build_model(key, layers=(1, 1, 1, 1), num_classes=10):
    """Returns (params pytree of arrays only, static cfg of per-block strides)."""
    keys = iter(jax.random.split(key, 256))
    params = {'conv1_w': _init_conv(next(keys), 64, 3, 7), 'bn1': _init_bn(64)}
    expansion = 4
    inplanes = 64
    params['layers'] = []
    cfg = []
    for planes, n_blocks, stride in zip((64, 128, 256, 512), layers, (1, 2, 2, 2)):
        blocks, strides = [], []
        for bi in range(n_blocks):
            s = stride if bi == 0 else 1
            blk = {'conv1_w': _init_conv(next(keys), planes, inplanes, 1),
                   'bn1': _init_bn(planes),
                   'conv2_w': _init_conv(next(keys), planes, planes, 3),
                   'bn2': _init_bn(planes),
                   'conv3_w': _init_conv(next(keys), planes * expansion, planes, 1),
                   'bn3': _init_bn(planes * expansion)}
            if bi == 0 and (s != 1 or inplanes != planes * expansion):
                blk['down_w'] = _init_conv(next(keys), planes * expansion, inplanes, 1)
                blk['down_bn'] = _init_bn(planes * expansion)
            blocks.append(blk)
            strides.append(s)
            inplanes = planes * expansion
        params['layers'].append(blocks)
        cfg.append(tuple(strides))
    fan_in = 512 * expansion
    bound = 1.0 / math.sqrt(fan_in)
    params['fc_w'] = jax.random.uniform(next(keys), (num_classes, fan_in),
                                        jnp.float32, -bound, bound)
    params['fc_b'] = jax.random.uniform(next(keys), (num_classes,),
                                        jnp.float32, -bound, bound)
    return params, tuple(cfg)


def bottleneck(x, blk, stride):
    """torchvision-style Bottleneck (expansion=4, stride on the 3x3 conv)."""
    identity = x
    out = conv1x1_bn(x, blk['conv1_w'], blk['bn1'], relu=True)
    out = conv3x3_bn(out, blk['conv2_w'], blk['bn2'], stride=stride, relu=True)
    if 'down_w' in blk:
        identity = conv1x1_bn(x, blk['down_w'], blk['down_bn'],
                              stride=stride, relu=False)
    out = conv1x1_bn(out, blk['conv3_w'], blk['bn3'], relu=True,
                     residual=identity)
    return out


def resnet_forward(x_nchw, params, cfg):
    x = jnp.transpose(x_nchw, (0, 2, 3, 1)).astype(DTYPE)     # NCHW -> NHWC bf16
    x = conv_stem(x, params['conv1_w'], params['bn1'])
    x = maxpool_3x3_s2_ceil(x)
    for layer_params, layer_cfg in zip(params['layers'], cfg):
        for blk, stride in zip(layer_params, layer_cfg):
            x = bottleneck(x, blk, stride)
    N, H, W, C = x.shape                                      # (N, 7, 7, 2048)
    logits = avgpool_fc(x.reshape(N, H * W, C), params['fc_w'], params['fc_b'])
    return logits


# ------------------------------ self checks --------------------------------

def _self_test():
    """Small on-device checks of the reworked halo-window kernels."""
    key = jax.random.PRNGKey(1)
    kx, kw, km = jax.random.split(key, 3)
    x = jax.random.normal(kx, (1, 10, 10, 128), jnp.float32).astype(DTYPE)
    w = jax.random.normal(kw, (128, 128, 3, 3), jnp.float32) * 0.05
    bn = _init_bn(128)
    for stride in (1, 2):
        got = conv3x3_bn(x, w, bn, stride=stride, relu=False).astype(jnp.float32)
        ref = lax.conv_general_dilated(
            x.astype(jnp.float32),
            jnp.transpose(w.astype(DTYPE).astype(jnp.float32), (2, 3, 1, 0)),
            (stride, stride), ((1, 1), (1, 1)),
            dimension_numbers=("NHWC", "HWIO", "NHWC"))
        ref = ref / math.sqrt(1.0 + 1e-5)            # folded identity BN
        assert got.shape == ref.shape, (got.shape, ref.shape)
        assert bool(jnp.allclose(got, ref, rtol=0.08, atol=0.08)), (
            "conv3x3 mismatch", stride, float(jnp.max(jnp.abs(got - ref))))

    xm = jax.random.normal(km, (1, 12, 12, 64), jnp.float32).astype(DTYPE)
    gotm = maxpool_3x3_s2_ceil(xm).astype(jnp.float32)
    Ho = Wo = 6
    xpad = jnp.pad(xm.astype(jnp.float32), ((0, 0), (0, 1), (0, 1), (0, 0)),
                   constant_values=-jnp.inf)
    refm = None
    for kh in range(3):
        for kw_ in range(3):
            tap = xpad[:, kh:kh + 2 * (Ho - 1) + 1:2,
                       kw_:kw_ + 2 * (Wo - 1) + 1:2, :]
            refm = tap if refm is None else jnp.maximum(refm, tap)
    assert gotm.shape == refm.shape
    assert bool(jnp.all(gotm == refm)), "maxpool mismatch"


# --------------------------------- main ------------------------------------

if __name__ == "__main__":
    _self_test()

    key = jax.random.PRNGKey(0)
    k_param, k_x = jax.random.split(key)
    # Bottleneck ResNet with layers=(1,1,1,1) and 10 classes (small but exercises
    # every stage; spatial size 224 is required by AvgPool2d(7) + the FC shape).
    params, cfg = build_model(k_param, layers=(1, 1, 1, 1), num_classes=10)
    x = jax.random.normal(k_x, (2, 3, 224, 224), jnp.float32)

    fwd = jax.jit(functools.partial(resnet_forward, cfg=cfg))
    logits = fwd(x, params)
    jax.block_until_ready(logits)
    assert logits.shape == (2, 10)
    assert bool(jnp.all(jnp.isfinite(logits)))
    print("KERNEL_OK")
</pallas_src>

<mosaic_0001>
module attributes {stable_mosaic.version = 11 : i64} {
  func.func @_tapconv_kernel(%arg0: i32, %arg1: i32, %arg2: memref<288x128xbf16, #tpu.memory_space<any>>, %arg3: memref<9x128x128xbf16, #tpu.memory_space<vmem>>, %arg4: memref<1x128xf32, #tpu.memory_space<vmem>>, %arg5: memref<1x128xf32, #tpu.memory_space<vmem>>, %arg6: memref<256x128xbf16, #tpu.memory_space<vmem>>, %arg7: memref<160x128xbf16, #tpu.memory_space<vmem>>, %arg8: memref<160x128xbf16, #tpu.memory_space<vmem>>, %arg9: memref<2x!tpu.dma_semaphore, #tpu.memory_space<semaphore_mem>>, %arg10: memref<128x128xf32, #tpu.memory_space<vmem>>) attributes {dimension_semantics = [#tpu.dimension_semantics<parallel>, #tpu.dimension_semantics<arbitrary>], iteration_bounds = array<i64: 1, 1>, scalar_prefetch = 0 : i64, scratch_operands = 4 : i64, tpu.core_type = #tpu.core_type<tc>, window_params = [{}, {transform_indices = @transform_1, window_bounds = array<i64: 9, 128, 128>}, {transform_indices = @transform_2, window_bounds = array<i64: 1, 128>}, {transform_indices = @transform_3, window_bounds = array<i64: 1, 128>}, {transform_indices = @transform_4, window_bounds = array<i64: 256, 128>}]} {
    %c256_i32 = arith.constant 256 : i32
    %0 = arith.muli %arg1, %c256_i32 : i32
    %1 = tpu.assume_multiple %0, 256 : i32
    %c0_i32 = arith.constant 0 : i32
    %2 = arith.cmpi eq, %arg1, %c0_i32 : i32
    %3 = arith.extui %2 : i1 to i32
    %c0_i32_0 = arith.constant 0 : i32
    %4 = arith.cmpi ne, %3, %c0_i32_0 : i32
    scf.if %4 {
      %c0_i32_195 = arith.constant 0 : i32
      %c0_i32_196 = arith.constant 0 : i32
      %168 = tpu.memref_slice %arg2[%1, %c0_i32_196] : memref<288x128xbf16, #tpu.memory_space<any>> -> memref<160x128xbf16, #tpu.memory_space<any>>
      %169 = tpu.memref_slice %arg9[%c0_i32_195] : memref<2x!tpu.dma_semaphore, #tpu.memory_space<semaphore_mem>> -> memref<1x!tpu.dma_semaphore, #tpu.memory_space<semaphore_mem>>
      %170 = tpu.memref_squeeze %169 : memref<1x!tpu.dma_semaphore, #tpu.memory_space<semaphore_mem>> -> memref<!tpu.dma_semaphore, #tpu.memory_space<semaphore_mem>>
      tpu.enqueue_dma source(%168 : memref<160x128xbf16, #tpu.memory_space<any>>) target(%arg7 : memref<160x128xbf16, #tpu.memory_space<vmem>>) target_semaphore(%170 : memref<!tpu.dma_semaphore, #tpu.memory_space<semaphore_mem>>)
      %c128_i32_197 = arith.constant 128 : i32
      %171 = arith.addi %1, %c128_i32_197 : i32
      %c1_i32_198 = arith.constant 1 : i32
      %c0_i32_199 = arith.constant 0 : i32
      %172 = tpu.memref_slice %arg2[%171, %c0_i32_199] : memref<288x128xbf16, #tpu.memory_space<any>> -> memref<160x128xbf16, #tpu.memory_space<any>>
      %173 = tpu.memref_slice %arg9[%c1_i32_198] : memref<2x!tpu.dma_semaphore, #tpu.memory_space<semaphore_mem>> -> memref<1x!tpu.dma_semaphore, #tpu.memory_space<semaphore_mem>>
      %174 = tpu.memref_squeeze %173 : memref<1x!tpu.dma_semaphore, #tpu.memory_space<semaphore_mem>> -> memref<!tpu.dma_semaphore, #tpu.memory_space<semaphore_mem>>
      tpu.enqueue_dma source(%172 : memref<160x128xbf16, #tpu.memory_space<any>>) target(%arg8 : memref<160x128xbf16, #tpu.memory_space<vmem>>) target_semaphore(%174 : memref<!tpu.dma_semaphore, #tpu.memory_space<semaphore_mem>>)
    } else {
    }
    %c0_i32_1 = arith.constant 0 : i32
    %c0_i32_2 = arith.constant 0 : i32
    %5 = tpu.memref_slice %arg2[%1, %c0_i32_2] : memref<288x128xbf16, #tpu.memory_space<any>> -> memref<160x128xbf16, #tpu.memory_space<any>>
    %6 = tpu.memref_slice %arg9[%c0_i32_1] : memref<2x!tpu.dma_semaphore, #tpu.memory_space<semaphore_mem>> -> memref<1x!tpu.dma_semaphore, #tpu.memory_space<semaphore_mem>>
    %7 = tpu.memref_squeeze %6 : memref<1x!tpu.dma_semaphore, #tpu.memory_space<semaphore_mem>> -> memref<!tpu.dma_semaphore, #tpu.memory_space<semaphore_mem>>
    tpu.wait_dma2 semaphore(%7 : memref<!tpu.dma_semaphore, #tpu.memory_space<semaphore_mem>>) src(%5 : memref<160x128xbf16, #tpu.memory_space<any>>) dst(%arg7 : memref<160x128xbf16, #tpu.memory_space<vmem>>)
    %cst = arith.constant 0.000000e+00 : f32
    %8 = vector.broadcast %cst : f32 to vector<128x128xf32>
    %c0 = arith.constant 0 : index
    %c0_3 = arith.constant 0 : index
    %9 = vector.load %arg10[%c0, %c0_3] : memref<128x128xf32, #tpu.memory_space<vmem>>, vector<128x128xf32>
    tpu.vector_store %arg10[%c0, %c0_3], %8 {strides = array<i32>} : memref<128x128xf32, #tpu.memory_space<vmem>>, vector<128x128xf32>,
    %c0_4 = arith.constant 0 : index
    %c0_5 = arith.constant 0 : index
    %10 = vector.load %arg10[%c0_4, %c0_5] : memref<128x128xf32, #tpu.memory_space<vmem>>, vector<128x128xf32>
    %c0_6 = arith.constant 0 : index
    %c0_7 = arith.constant 0 : index
    %11 = vector.load %arg7[%c0_6, %c0_7] : memref<160x128xbf16, #tpu.memory_space<vmem>>, vector<128x128xbf16>
    %c0_8 = arith.constant 0 : index
    %c0_9 = arith.constant 0 : index
    %c0_10 = arith.constant 0 : index
    %12 = vector.load %arg3[%c0_8, %c0_9, %c0_10] : memref<9x128x128xbf16, #tpu.memory_space<vmem>>, vector<1x128x128xbf16>
    %13 = vector.shape_cast %12 : vector<1x128x128xbf16> to vector<128x128xbf16>
    %cst_11 = arith.constant dense<0.000000e+00> : vector<128x128xf32>
    %14 = tpu.matmul %11, %13, %cst_11 {dimension_numbers = #tpu.dot_dimension_numbers<[1], [0], [0], [1], [0, 0, 1, 1], [], []>} : vector<128x128xbf16>, vector<128x128xbf16>, vector<128x128xf32> -> vector<128x128xf32>
    %15 = arith.addf %10, %14 : vector<128x128xf32>
    %c0_12 = arith.constant 0 : index
    %c0_13 = arith.constant 0 : index
    %16 = vector.load %arg10[%c0_12, %c0_13] : memref<128x128xf32, #tpu.memory_space<vmem>>, vector<128x128xf32>
    tpu.vector_store %arg10[%c0_12, %c0_13], %15 {strides = array<i32>} : memref<128x128xf32, #tpu.memory_space<vmem>>, vector<128x128xf32>,
    %c0_14 = arith.constant 0 : index
    %c0_15 = arith.constant 0 : index
    %17 = vector.load %arg10[%c0_14, %c0_15] : memref<128x128xf32, #tpu.memory_space<vmem>>, vector<128x128xf32>
    %c1 = arith.constant 1 : index
    %c0_16 = arith.constant 0 : index
    %18 = vector.load %arg7[%c1, %c0_16] : memref<160x128xbf16, #tpu.memory_space<vmem>>, vector<128x128xbf16>
    %c1_17 = arith.constant 1 : index
    %c0_18 = arith.constant 0 : index
    %c0_19 = arith.constant 0 : index
    %19 = vector.load %arg3[%c1_17, %c0_18, %c0_19] : memref<9x128x128xbf16, #tpu.memory_space<vmem>>, vector<1x128x128xbf16>
    %20 = vector.shape_cast %19 : vector<1x128x128xbf16> to vector<128x128xbf16>
    %cst_20 = arith.constant dense<0.000000e+00> : vector<128x128xf32>
    %21 = tpu.matmul %18, %20, %cst_20 {dimension_numbers = #tpu.dot_dimension_numbers<[1], [0], [0], [1], [0, 0, 1, 1], [], []>} : vector<128x128xbf16>, vector<128x128xbf16>, vector<128x128xf32> -> vector<128x128xf32>
    %22 = arith.addf %17, %21 : vector<128x128xf32>
    %c0_21 = arith.constant 0 : index
    %c0_22 = arith.constant 0 : index
    %23 = vector.load %arg10[%c0_21, %c0_22] : memref<128x128xf32, #tpu.memory_space<vmem>>, vector<128x128xf32>
    tpu.vector_store %arg10[%c0_21, %c0_22], %22 {strides = array<i32>} : memref<128x128xf32, #tpu.memory_space<vmem>>, vector<128x128xf32>,
    %c0_23 = arith.constant 0 : index
    %c0_24 = arith.constant 0 : index
    %24 = vector.load %arg10[%c0_23, %c0_24] : memref<128x128xf32, #tpu.memory_space<vmem>>, vector<128x128xf32>
    %c2 = arith.constant 2 : index
    %c0_25 = arith.constant 0 : index
    %25 = vector.load %arg7[%c2, %c0_25] : memref<160x128xbf16, #tpu.memory_space<vmem>>, vector<128x128xbf16>
    %c2_26 = arith.constant 2 : index
    %c0_27 = arith.constant 0 : index
    %c0_28 = arith.constant 0 : index
    %26 = vector.load %arg3[%c2_26, %c0_27, %c0_28] : memref<9x128x128xbf16, #tpu.memory_space<vmem>>, vector<1x128x128xbf16>
    %27 = vector.shape_cast %26 : vector<1x128x128xbf16> to vector<128x128xbf16>
    %cst_29 = arith.constant dense<0.000000e+00> : vector<128x128xf32>
    %28 = tpu.matmul %25, %27, %cst_29 {dimension_numbers = #tpu.dot_dimension_numbers<[1], [0], [0], [1], [0, 0, 1, 1], [], []>} : vector<128x128xbf16>, vector<128x128xbf16>, vector<128x128xf32> -> vector<128x128xf32>
    %29 = arith.addf %24, %28 : vector<128x128xf32>
    %c0_30 = arith.constant 0 : index
    %c0_31 = arith.constant 0 : index
    %30 = vector.load %arg10[%c0_30, %c0_31] : memref<128x128xf32, #tpu.memory_space<vmem>>, vector<128x128xf32>
    tpu.vector_store %arg10[%c0_30, %c0_31], %29 {strides = array<i32>} : memref<128x128xf32, #tpu.memory_space<vmem>>, vector<128x128xf32>,
    %c0_32 = arith.constant 0 : index
    %c0_33 = arith.constant 0 : index
    %31 = vector.load %arg10[%c0_32, %c0_33] : memref<128x128xf32, #tpu.memory_space<vmem>>, vector<128x128xf32>
    %c12 = arith.constant 12 : index
    %c0_34 = arith.constant 0 : index
    %32 = vector.load %arg7[%c12, %c0_34] : memref<160x128xbf16, #tpu.memory_space<vmem>>, vector<128x128xbf16>
    %c3 = arith.constant 3 : index
    %c0_35 = arith.constant 0 : index
    %c0_36 = arith.constant 0 : index
    %33 = vector.load %arg3[%c3, %c0_35, %c0_36] : memref<9x128x128xbf16, #tpu.memory_space<vmem>>, vector<1x128x128xbf16>
    %34 = vector.shape_cast %33 : vector<1x128x128xbf16> to vector<128x128xbf16>
    %cst_37 = arith.constant dense<0.000000e+00> : vector<128x128xf32>
    %35 = tpu.matmul %32, %34, %cst_37 {dimension_numbers = #tpu.dot_dimension_numbers<[1], [0], [0], [1], [0, 0, 1, 1], [], []>} : vector<128x128xbf16>, vector<128x128xbf16>, vector<128x128xf32> -> vector<128x128xf32>
    %36 = arith.addf %31, %35 : vector<128x128xf32>
    %c0_38 = arith.constant 0 : index
    %c0_39 = arith.constant 0 : index
    %37 = vector.load %arg10[%c0_38, %c0_39] : memref<128x128xf32, #tpu.memory_space<vmem>>, vector<128x128xf32>
    tpu.vector_store %arg10[%c0_38, %c0_39], %36 {strides = array<i32>} : memref<128x128xf32, #tpu.memory_space<vmem>>, vector<128x128xf32>,
    %c0_40 = arith.constant 0 : index
    %c0_41 = arith.constant 0 : index
    %38 = vector.load %arg10[%c0_40, %c0_41] : memref<128x128xf32, #tpu.memory_space<vmem>>, vector<128x128xf32>
    %c13 = arith.constant 13 : index
    %c0_42 = arith.constant 0 : index
    %39 = vector.load %arg7[%c13, %c0_42] : memref<160x128xbf16, #tpu.memory_space<vmem>>, vector<128x128xbf16>
    %c4 = arith.constant 4 : index
    %c0_43 = arith.constant 0 : index
    %c0_44 = arith.constant 0 : index
    %40 = vector.load %arg3[%c4, %c0_43, %c0_44] : memref<9x128x128xbf16, #tpu.memory_space<vmem>>, vector<1x128x128xbf16>
    %41 = vector.shape_cast %40 : vector<1x128x128xbf16> to vector<128x128xbf16>
    %cst_45 = arith.constant dense<0.000000e+00> : vector<128x128xf32>
    %42 = tpu.matmul %39, %41, %cst_45 {dimension_numbers = #tpu.dot_dimension_numbers<[1], [0], [0], [1], [0, 0, 1, 1], [], []>} : vector<128x128xbf16>, vector<128x128xbf16>, vector<128x128xf32> -> vector<128x128xf32>
    %43 = arith.addf %38, %42 : vector<128x128xf32>
    %c0_46 = arith.constant 0 : index
    %c0_47 = arith.constant 0 : index
    %44 = vector.load %arg10[%c0_46, %c0_47] : memref<128x128xf32, #tpu.memory_space<vmem>>, vector<128x128xf32>
    tpu.vector_store %arg10[%c0_46, %c0_47], %43 {strides = array<i32>} : memref<128x128xf32, #tpu.memory_space<vmem>>, vector<128x128xf32>,
    %c0_48 = arith.constant 0 : index
    %c0_49 = arith.constant 0 : index
    %45 = vector.load %arg10[%c0_48, %c0_49] : memref<128x128xf32, #tpu.memory_space<vmem>>, vector<128x128xf32>
    %c14 = arith.constant 14 : index
    %c0_50 = arith.constant 0 : index
    %46 = vector.load %arg7[%c14, %c0_50] : memref<160x128xbf16, #tpu.memory_space<vmem>>, vector<128x128xbf16>
    %c5 = arith.constant 5 : index
    %c0_51 = arith.constant 0 : index
    %c0_52 = arith.constant 0 : index
    %47 = vector.load %arg3[%c5, %c0_51, %c0_52] : memref<9x128x128xbf16, #tpu.memory_space<vmem>>, vector<1x128x128xbf16>
    %48 = vector.shape_cast %47 : vector<1x128x128xbf16> to vector<128x128xbf16>
    %cst_53 = arith.constant dense<0.000000e+00> : vector<128x128xf32>
    %49 = tpu.matmul %46, %48, %cst_53 {dimension_numbers = #tpu.dot_dimension_numbers<[1], [0], [0], [1], [0, 0, 1, 1], [], []>} : vector<128x128xbf16>, vector<128x128xbf16>, vector<128x128xf32> -> vector<128x128xf32>
    %50 = arith.addf %45, %49 : vector<128x128xf32>
    %c0_54 = arith.constant 0 : index
    %c0_55 = arith.constant 0 : index
    %51 = vector.load %arg10[%c0_54, %c0_55] : memref<128x128xf32, #tpu.memory_space<vmem>>, vector<128x128xf32>
    tpu.vector_store %arg10[%c0_54, %c0_55], %50 {strides = array<i32>} : memref<128x128xf32, #tpu.memory_space<vmem>>, vector<128x128xf32>,
    %c0_56 = arith.constant 0 : index
    %c0_57 = arith.constant 0 : index
    %52 = vector.load %arg10[%c0_56, %c0_57] : memref<128x128xf32, #tpu.memory_space<vmem>>, vector<128x128xf32>
    %c24 = arith.constant 24 : index
    %c0_58 = arith.constant 0 : index
    %53 = vector.load %arg7[%c24, %c0_58] : memref<160x128xbf16, #tpu.memory_space<vmem>>, vector<128x128xbf16>
    %c6 = arith.constant 6 : index
    %c0_59 = arith.constant 0 : index
    %c0_60 = arith.constant 0 : index
    %54 = vector.load %arg3[%c6, %c0_59, %c0_60] : memref<9x128x128xbf16, #tpu.memory_space<vmem>>, vector<1x128x128xbf16>
    %55 = vector.shape_cast %54 : vector<1x128x128xbf16> to vector<128x128xbf16>
    %cst_61 = arith.constant dense<0.000000e+00> : vector<128x128xf32>
    %56 = tpu.matmul %53, %55, %cst_61 {dimension_numbers = #tpu.dot_dimension_numbers<[1], [0], [0], [1], [0, 0, 1, 1], [], []>} : vector<128x128xbf16>, vector<128x128xbf16>, vector<128x128xf32> -> vector<128x128xf32>
    %57 = arith.addf %52, %56 : vector<128x128xf32>
    %c0_62 = arith.constant 0 : index
    %c0_63 = arith.constant 0 : index
    %58 = vector.load %arg10[%c0_62, %c0_63] : memref<128x128xf32, #tpu.memory_space<vmem>>, vector<128x128xf32>
    tpu.vector_store %arg10[%c0_62, %c0_63], %57 {strides = array<i32>} : memref<128x128xf32, #tpu.memory_space<vmem>>, vector<128x128xf32>,
    %c0_64 = arith.constant 0 : index
    %c0_65 = arith.constant 0 : index
    %59 = vector.load %arg10[%c0_64, %c0_65] : memref<128x128xf32, #tpu.memory_space<vmem>>, vector<128x128xf32>
    %c25 = arith.constant 25 : index
    %c0_66 = arith.constant 0 : index
    %60 = vector.load %arg7[%c25, %c0_66] : memref<160x128xbf16, #tpu.memory_space<vmem>>, vector<128x128xbf16>
    %c7 = arith.constant 7 : index
    %c0_67 = arith.constant 0 : index
    %c0_68 = arith.constant 0 : index
    %61 = vector.load %arg3[%c7, %c0_67, %c0_68] : memref<9x128x128xbf16, #tpu.memory_space<vmem>>, vector<1x128x128xbf16>
    %62 = vector.shape_cast %61 : vector<1x128x128xbf16> to vector<128x128xbf16>
    %cst_69 = arith.constant dense<0.000000e+00> : vector<128x128xf32>
    %63 = tpu.matmul %60, %62, %cst_69 {dimension_numbers = #tpu.dot_dimension_numbers<[1], [0], [0], [1], [0, 0, 1, 1], [], []>} : vector<128x128xbf16>, vector<128x128xbf16>, vector<128x128xf32> -> vector<128x128xf32>
    %64 = arith.addf %59, %63 : vector<128x128xf32>
    %c0_70 = arith.constant 0 : index
    %c0_71 = arith.constant 0 : index
    %65 = vector.load %arg10[%c0_70, %c0_71] : memref<128x128xf32, #tpu.memory_space<vmem>>, vector<128x128xf32>
    tpu.vector_store %arg10[%c0_70, %c0_71], %64 {strides = array<i32>} : memref<128x128xf32, #tpu.memory_space<vmem>>, vector<128x128xf32>,
    %c0_72 = arith.constant 0 : index
    %c0_73 = arith.constant 0 : index
    %66 = vector.load %arg10[%c0_72, %c0_73] : memref<128x128xf32, #tpu.memory_space<vmem>>, vector<128x128xf32>
    %c26 = arith.constant 26 : index
    %c0_74 = arith.constant 0 : index
    %67 = vector.load %arg7[%c26, %c0_74] : memref<160x128xbf16, #tpu.memory_space<vmem>>, vector<128x128xbf16>
    %c8 = arith.constant 8 : index
    %c0_75 = arith.constant 0 : index
    %c0_76 = arith.constant 0 : index
    %68 = vector.load %arg3[%c8, %c0_75, %c0_76] : memref<9x128x128xbf16, #tpu.memory_space<vmem>>, vector<1x128x128xbf16>
    %69 = vector.shape_cast %68 : vector<1x128x128xbf16> to vector<128x128xbf16>
    %cst_77 = arith.constant dense<0.000000e+00> : vector<128x128xf32>
    %70 = tpu.matmul %67, %69, %cst_77 {dimension_numbers = #tpu.dot_dimension_numbers<[1], [0], [0], [1], [0, 0, 1, 1], [], []>} : vector<128x128xbf16>, vector<128x128xbf16>, vector<128x128xf32> -> vector<128x128xf32>
    %71 = arith.addf %66, %70 : vector<128x128xf32>
    %c0_78 = arith.constant 0 : index
    %c0_79 = arith.constant 0 : index
    %72 = vector.load %arg10[%c0_78, %c0_79] : memref<128x128xf32, #tpu.memory_space<vmem>>, vector<128x128xf32>
    tpu.vector_store %arg10[%c0_78, %c0_79], %71 {strides = array<i32>} : memref<128x128xf32, #tpu.memory_space<vmem>>, vector<128x128xf32>,
    %c0_80 = arith.constant 0 : index
    %c0_81 = arith.constant 0 : index
    %73 = vector.load %arg10[%c0_80, %c0_81] : memref<128x128xf32, #tpu.memory_space<vmem>>, vector<128x128xf32>
    %c0_82 = arith.constant 0 : index
    %c0_83 = arith.constant 0 : index
    %74 = vector.load %arg4[%c0_82, %c0_83] : memref<1x128xf32, #tpu.memory_space<vmem>>, vector<1x128xf32>
    %75 = vector.broadcast %74 : vector<1x128xf32> to vector<128x128xf32>
    %76 = arith.mulf %73, %75 : vector<128x128xf32>
    %c0_84 = arith.constant 0 : index
    %c0_85 = arith.constant 0 : index
    %77 = vector.load %arg5[%c0_84, %c0_85] : memref<1x128xf32, #tpu.memory_space<vmem>>, vector<1x128xf32>
    %78 = vector.broadcast %77 : vector<1x128xf32> to vector<128x128xf32>
    %79 = arith.addf %76, %78 : vector<128x128xf32>
    %80 = arith.truncf %79 : vector<128x128xf32> to vector<128x128xbf16>
    %c0_86 = arith.constant 0 : index
    %c0_87 = arith.constant 0 : index
    %81 = vector.load %arg6[%c0_86, %c0_87] : memref<256x128xbf16, #tpu.memory_space<vmem>>, vector<128x128xbf16>
    tpu.vector_store %arg6[%c0_86, %c0_87], %80 {strides = array<i32>} : memref<256x128xbf16, #tpu.memory_space<vmem>>, vector<128x128xbf16>,
    %c1_i32 = arith.constant 1 : i32
    %82 = arith.addi %arg1, %c1_i32 : i32
    %c1_i32_88 = arith.constant 1 : i32
    %83 = arith.cmpi slt, %82, %c1_i32_88 : i32
    %84 = arith.extui %83 : i1 to i32
    %c0_i32_89 = arith.constant 0 : i32
    %85 = arith.cmpi ne, %84, %c0_i32_89 : i32
    scf.if %85 {
      %c256_i32_195 = arith.constant 256 : i32
      %168 = arith.addi %1, %c256_i32_195 : i32
      %c0_i32_196 = arith.constant 0 : i32
      %c0_i32_197 = arith.constant 0 : i32
      %169 = tpu.memref_slice %arg2[%168, %c0_i32_197] : memref<288x128xbf16, #tpu.memory_space<any>> -> memref<160x128xbf16, #tpu.memory_space<any>>
      %170 = tpu.memref_slice %arg9[%c0_i32_196] : memref<2x!tpu.dma_semaphore, #tpu.memory_space<semaphore_mem>> -> memref<1x!tpu.dma_semaphore, #tpu.memory_space<semaphore_mem>>
      %171 = tpu.memref_squeeze %170 : memref<1x!tpu.dma_semaphore, #tpu.memory_space<semaphore_mem>> -> memref<!tpu.dma_semaphore, #tpu.memory_space<semaphore_mem>>
      tpu.enqueue_dma source(%169 : memref<160x128xbf16, #tpu.memory_space<any>>) target(%arg7 : memref<160x128xbf16, #tpu.memory_space<vmem>>) target_semaphore(%171 : memref<!tpu.dma_semaphore, #tpu.memory_space<semaphore_mem>>)
    } else {
    }
    %c128_i32 = arith.constant 128 : i32
    %86 = arith.addi %1, %c128_i32 : i32
    %c1_i32_90 = arith.constant 1 : i32
    %c0_i32_91 = arith.constant 0 : i32
    %87 = tpu.memref_slice %arg2[%86, %c0_i32_91] : memref<288x128xbf16, #tpu.memory_space<any>> -> memref<160x128xbf16, #tpu.memory_space<any>>
    %88 = tpu.memref_slice %arg9[%c1_i32_90] : memref<2x!tpu.dma_semaphore, #tpu.memory_space<semaphore_mem>> -> memref<1x!tpu.dma_semaphore, #tpu.memory_space<semaphore_mem>>
    %89 = tpu.memref_squeeze %88 : memref<1x!tpu.dma_semaphore, #tpu.memory_space<semaphore_mem>> -> memref<!tpu.dma_semaphore, #tpu.memory_space<semaphore_mem>>
    tpu.wait_dma2 semaphore(%89 : memref<!tpu.dma_semaphore, #tpu.memory_space<semaphore_mem>>) src(%87 : memref<160x128xbf16, #tpu.memory_space<any>>) dst(%arg8 : memref<160x128xbf16, #tpu.memory_space<vmem>>)
    %cst_92 = arith.constant 0.000000e+00 : f32
    %90 = vector.broadcast %cst_92 : f32 to vector<128x128xf32>
    %c0_93 = arith.constant 0 : index
    %c0_94 = arith.constant 0 : index
    %91 = vector.load %arg10[%c0_93, %c0_94] : memref<128x128xf32, #tpu.memory_space<vmem>>, vector<128x128xf32>
    tpu.vector_store %arg10[%c0_93, %c0_94], %90 {strides = array<i32>} : memref<128x128xf32, #tpu.memory_space<vmem>>, vector<128x128xf32>,
    %c0_95 = arith.constant 0 : index
    %c0_96 = arith.constant 0 : index
    %92 = vector.load %arg10[%c0_95, %c0_96] : memref<128x128xf32, #tpu.memory_space<vmem>>, vector<128x128xf32>
    %c0_97 = arith.constant 0 : index
    %c0_98 = arith.constant 0 : index
    %93 = vector.load %arg8[%c0_97, %c0_98] : memref<160x128xbf16, #tpu.memory_space<vmem>>, vector<128x128xbf16>
    %c0_99 = arith.constant 0 : index
    %c0_100 = arith.constant 0 : index
    %c0_101 = arith.constant 0 : index
    %94 = vector.load %arg3[%c0_99, %c0_100, %c0_101] : memref<9x128x128xbf16, #tpu.memory_space<vmem>>, vector<1x128x128xbf16>
    %95 = vector.shape_cast %94 : vector<1x128x128xbf16> to vector<128x128xbf16>
    %cst_102 = arith.constant dense<0.000000e+00> : vector<128x128xf32>
    %96 = tpu.matmul %93, %95, %cst_102 {dimension_numbers = #tpu.dot_dimension_numbers<[1], [0], [0], [1], [0, 0, 1, 1], [], []>} : vector<128x128xbf16>, vector<128x128xbf16>, vector<128x128xf32> -> vector<128x128xf32>
    %97 = arith.addf %92, %96 : vector<128x128xf32>
    %c0_103 = arith.constant 0 : index
    %c0_104 = arith.constant 0 : index
    %98 = vector.load %arg10[%c0_103, %c0_104] : memref<128x128xf32, #tpu.memory_space<vmem>>, vector<128x128xf32>
    tpu.vector_store %arg10[%c0_103, %c0_104], %97 {strides = array<i32>} : memref<128x128xf32, #tpu.memory_space<vmem>>, vector<128x128xf32>,
    %c0_105 = arith.constant 0 : index
    %c0_106 = arith.constant 0 : index
    %99 = vector.load %arg10[%c0_105, %c0_106] : memref<128x128xf32, #tpu.memory_space<vmem>>, vector<128x128xf32>
    %c1_107 = arith.constant 1 : index
    %c0_108 = arith.constant 0 : index
    %100 = vector.load %arg8[%c1_107, %c0_108] : memref<160x128xbf16, #tpu.memory_space<vmem>>, vector<128x128xbf16>
    %c1_109 = arith.constant 1 : index
    %c0_110 = arith.constant 0 : index
    %c0_111 = arith.constant 0 : index
    %101 = vector.load %arg3[%c1_109, %c0_110, %c0_111] : memref<9x128x128xbf16, #tpu.memory_space<vmem>>, vector<1x128x128xbf16>
    %102 = vector.shape_cast %101 : vector<1x128x128xbf16> to vector<128x128xbf16>
    %cst_112 = arith.constant dense<0.000000e+00> : vector<128x128xf32>
    %103 = tpu.matmul %100, %102, %cst_112 {dimension_numbers = #tpu.dot_dimension_numbers<[1], [0], [0], [1], [0, 0, 1, 1], [], []>} : vector<128x128xbf16>, vector<128x128xbf16>, vector<128x128xf32> -> vector<128x128xf32>
    %104 = arith.addf %99, %103 : vector<128x128xf32>
    %c0_113 = arith.constant 0 : index
    %c0_114 = arith.constant 0 : index
    %105 = vector.load %arg10[%c0_113, %c0_114] : memref<128x128xf32, #tpu.memory_space<vmem>>, vector<128x128xf32>
    tpu.vector_store %arg10[%c0_113, %c0_114], %104 {strides = array<i32>} : memref<128x128xf32, #tpu.memory_space<vmem>>, vector<128x128xf32>,
    %c0_115 = arith.constant 0 : index
    %c0_116 = arith.constant 0 : index
    %106 = vector.load %arg10[%c0_115, %c0_116] : memref<128x128xf32, #tpu.memory_space<vmem>>, vector<128x128xf32>
    %c2_117 = arith.constant 2 : index
    %c0_118 = arith.constant 0 : index
    %107 = vector.load %arg8[%c2_117, %c0_118] : memref<160x128xbf16, #tpu.memory_space<vmem>>, vector<128x128xbf16>
    %c2_119 = arith.constant 2 : index
    %c0_120 = arith.constant 0 : index
    %c0_121 = arith.constant 0 : index
    %108 = vector.load %arg3[%c2_119, %c0_120, %c0_121] : memref<9x128x128xbf16, #tpu.memory_space<vmem>>, vector<1x128x128xbf16>
    %109 = vector.shape_cast %108 : vector<1x128x128xbf16> to vector<128x128xbf16>
    %cst_122 = arith.constant dense<0.000000e+00> : vector<128x128xf32>
    %110 = tpu.matmul %107, %109, %cst_122 {dimension_numbers = #tpu.dot_dimension_numbers<[1], [0], [0], [1], [0, 0, 1, 1], [], []>} : vector<128x128xbf16>, vector<128x128xbf16>, vector<128x128xf32> -> vector<128x128xf32>
    %111 = arith.addf %106, %110 : vector<128x128xf32>
    %c0_123 = arith.constant 0 : index
    %c0_124 = arith.constant 0 : index
    %112 = vector.load %arg10[%c0_123, %c0_124] : memref<128x128xf32, #tpu.memory_space<vmem>>, vector<128x128xf32>
    tpu.vector_store %arg10[%c0_123, %c0_124], %111 {strides = array<i32>} : memref<128x128xf32, #tpu.memory_space<vmem>>, vector<128x128xf32>,
    %c0_125 = arith.constant 0 : index
    %c0_126 = arith.constant 0 : index
    %113 = vector.load %arg10[%c0_125, %c0_126] : memref<128x128xf32, #tpu.memory_space<vmem>>, vector<128x128xf32>
    %c12_127 = arith.constant 12 : index
    %c0_128 = arith.constant 0 : index
    %114 = vector.load %arg8[%c12_127, %c0_128] : memref<160x128xbf16, #tpu.memory_space<vmem>>, vector<128x128xbf16>
    %c3_129 = arith.constant 3 : index
    %c0_130 = arith.constant 0 : index
    %c0_131 = arith.constant 0 : index
    %115 = vector.load %arg3[%c3_129, %c0_130, %c0_131] : memref<9x128x128xbf16, #tpu.memory_space<vmem>>, vector<1x128x128xbf16>
    %116 = vector.shape_cast %115 : vector<1x128x128xbf16> to vector<128x128xbf16>
    %cst_132 = arith.constant dense<0.000000e+00> : vector<128x128xf32>
    %117 = tpu.matmul %114, %116, %cst_132 {dimension_numbers = #tpu.dot_dimension_numbers<[1], [0], [0], [1], [0, 0, 1, 1], [], []>} : vector<128x128xbf16>, vector<128x128xbf16>, vector<128x128xf32> -> vector<128x128xf32>
    %118 = arith.addf %113, %117 : vector<128x128xf32>
    %c0_133 = arith.constant 0 : index
    %c0_134 = arith.constant 0 : index
    %119 = vector.load %arg10[%c0_133, %c0_134] : memref<128x128xf32, #tpu.memory_space<vmem>>, vector<128x128xf32>
    tpu.vector_store %arg10[%c0_133, %c0_134], %118 {strides = array<i32>} : memref<128x128xf32, #tpu.memory_space<vmem>>, vector<128x128xf32>,
    %c0_135 = arith.constant 0 : index
    %c0_136 = arith.constant 0 : index
    %120 = vector.load %arg10[%c0_135, %c0_136] : memref<128x128xf32, #tpu.memory_space<vmem>>, vector<128x128xf32>
    %c13_137 = arith.constant 13 : index
    %c0_138 = arith.constant 0 : index
    %121 = vector.load %arg8[%c13_137, %c0_138] : memref<160x128xbf16, #tpu.memory_space<vmem>>, vector<128x128xbf16>
    %c4_139 = arith.constant 4 : index
    %c0_140 = arith.constant 0 : index
    %c0_141 = arith.constant 0 : index
    %122 = vector.load %arg3[%c4_139, %c0_140, %c0_141] : memref<9x128x128xbf16, #tpu.memory_space<vmem>>, vector<1x128x128xbf16>
    %123 = vector.shape_cast %122 : vector<1x128x128xbf16> to vector<128x128xbf16>
    %cst_142 = arith.constant dense<0.000000e+00> : vector<128x128xf32>
    %124 = tpu.matmul %121, %123, %cst_142 {dimension_numbers = #tpu.dot_dimension_numbers<[1], [0], [0], [1], [0, 0, 1, 1], [], []>} : vector<128x128xbf16>, vector<128x128xbf16>, vector<128x128xf32> -> vector<128x128xf32>
    %125 = arith.addf %120, %124 : vector<128x128xf32>
    %c0_143 = arith.constant 0 : index
    %c0_144 = arith.constant 0 : index
    %126 = vector.load %arg10[%c0_143, %c0_144] : memref<128x128xf32, #tpu.memory_space<vmem>>, vector<128x128xf32>
    tpu.vector_store %arg10[%c0_143, %c0_144], %125 {strides = array<i32>} : memref<128x128xf32, #tpu.memory_space<vmem>>, vector<128x128xf32>,
    %c0_145 = arith.constant 0 : index
    %c0_146 = arith.constant 0 : index
    %127 = vector.load %arg10[%c0_145, %c0_146] : memref<128x128xf32, #tpu.memory_space<vmem>>, vector<128x128xf32>
    %c14_147 = arith.constant 14 : index
    %c0_148 = arith.constant 0 : index
    %128 = vector.load %arg8[%c14_147, %c0_148] : memref<160x128xbf16, #tpu.memory_space<vmem>>, vector<128x128xbf16>
    %c5_149 = arith.constant 5 : index
    %c0_150 = arith.constant 0 : index
    %c0_151 = arith.constant 0 : index
    %129 = vector.load %arg3[%c5_149, %c0_150, %c0_151] : memref<9x128x128xbf16, #tpu.memory_space<vmem>>, vector<1x128x128xbf16>
    %130 = vector.shape_cast %129 : vector<1x128x128xbf16> to vector<128x128xbf16>
    %cst_152 = arith.constant dense<0.000000e+00> : vector<128x128xf32>
    %131 = tpu.matmul %128, %130, %cst_152 {dimension_numbers = #tpu.dot_dimension_numbers<[1], [0], [0], [1], [0, 0, 1, 1], [], []>} : vector<128x128xbf16>, vector<128x128xbf16>, vector<128x128xf32> -> vector<128x128xf32>
    %132 = arith.addf %127, %131 : vector<128x128xf32>
    %c0_153 = arith.constant 0 : index
    %c0_154 = arith.constant 0 : index
    %133 = vector.load %arg10[%c0_153, %c0_154] : memref<128x128xf32, #tpu.memory_space<vmem>>, vector<128x128xf32>
    tpu.vector_store %arg10[%c0_153, %c0_154], %132 {strides = array<i32>} : memref<128x128xf32, #tpu.memory_space<vmem>>, vector<128x128xf32>,
    %c0_155 = arith.constant 0 : index
    %c0_156 = arith.constant 0 : index
    %134 = vector.load %arg10[%c0_155, %c0_156] : memref<128x128xf32, #tpu.memory_space<vmem>>, vector<128x128xf32>
    %c24_157 = arith.constant 24 : index
    %c0_158 = arith.constant 0 : index
    %135 = vector.load %arg8[%c24_157, %c0_158] : memref<160x128xbf16, #tpu.memory_space<vmem>>, vector<128x128xbf16>
    %c6_159 = arith.constant 6 : index
    %c0_160 = arith.constant 0 : index
    %c0_161 = arith.constant 0 : index
    %136 = vector.load %arg3[%c6_159, %c0_160, %c0_161] : memref<9x128x128xbf16, #tpu.memory_space<vmem>>, vector<1x128x128xbf16>
    %137 = vector.shape_cast %136 : vector<1x128x128xbf16> to vector<128x128xbf16>
    %cst_162 = arith.constant dense<0.000000e+00> : vector<128x128xf32>
    %138 = tpu.matmul %135, %137, %cst_162 {dimension_numbers = #tpu.dot_dimension_numbers<[1], [0], [0], [1], [0, 0, 1, 1], [], []>} : vector<128x128xbf16>, vector<128x128xbf16>, vector<128x128xf32> -> vector<128x128xf32>
    %139 = arith.addf %134, %138 : vector<128x128xf32>
    %c0_163 = arith.constant 0 : index
    %c0_164 = arith.constant 0 : index
    %140 = vector.load %arg10[%c0_163, %c0_164] : memref<128x128xf32, #tpu.memory_space<vmem>>, vector<128x128xf32>
    tpu.vector_store %arg10[%c0_163, %c0_164], %139 {strides = array<i32>} : memref<128x128xf32, #tpu.memory_space<vmem>>, vector<128x128xf32>,
    %c0_165 = arith.constant 0 : index
    %c0_166 = arith.constant 0 : index
    %141 = vector.load %arg10[%c0_165, %c0_166] : memref<128x128xf32, #tpu.memory_space<vmem>>, vector<128x128xf32>
    %c25_167 = arith.constant 25 : index
    %c0_168 = arith.constant 0 : index
    %142 = vector.load %arg8[%c25_167, %c0_168] : memref<160x128xbf16, #tpu.memory_space<vmem>>, vector<128x128xbf16>
    %c7_169 = arith.constant 7 : index
    %c0_170 = arith.constant 0 : index
    %c0_171 = arith.constant 0 : index
    %143 = vector.load %arg3[%c7_169, %c0_170, %c0_171] : memref<9x128x128xbf16, #tpu.memory_space<vmem>>, vector<1x128x128xbf16>
    %144 = vector.shape_cast %143 : vector<1x128x128xbf16> to vector<128x128xbf16>
    %cst_172 = arith.constant dense<0.000000e+00> : vector<128x128xf32>
    %145 = tpu.matmul %142, %144, %cst_172 {dimension_numbers = #tpu.dot_dimension_numbers<[1], [0], [0], [1], [0, 0, 1, 1], [], []>} : vector<128x128xbf16>, vector<128x128xbf16>, vector<128x128xf32> -> vector<128x128xf32>
    %146 = arith.addf %141, %145 : vector<128x128xf32>
    %c0_173 = arith.constant 0 : index
    %c0_174 = arith.constant 0 : index
    %147 = vector.load %arg10[%c0_173, %c0_174] : memref<128x128xf32, #tpu.memory_space<vmem>>, vector<128x128xf32>
    tpu.vector_store %arg10[%c0_173, %c0_174], %146 {strides = array<i32>} : memref<128x128xf32, #tpu.memory_space<vmem>>, vector<128x128xf32>,
    %c0_175 = arith.constant 0 : index
    %c0_176 = arith.constant 0 : index
    %148 = vector.load %arg10[%c0_175, %c0_176] : memref<128x128xf32, #tpu.memory_space<vmem>>, vector<128x128xf32>
    %c26_177 = arith.constant 26 : index
    %c0_178 = arith.constant 0 : index
    %149 = vector.load %arg8[%c26_177, %c0_178] : memref<160x128xbf16, #tpu.memory_space<vmem>>, vector<128x128xbf16>
    %c8_179 = arith.constant 8 : index
    %c0_180 = arith.constant 0 : index
    %c0_181 = arith.constant 0 : index
    %150 = vector.load %arg3[%c8_179, %c0_180, %c0_181] : memref<9x128x128xbf16, #tpu.memory_space<vmem>>, vector<1x128x128xbf16>
    %151 = vector.shape_cast %150 : vector<1x128x128xbf16> to vector<128x128xbf16>
    %cst_182 = arith.constant dense<0.000000e+00> : vector<128x128xf32>
    %152 = tpu.matmul %149, %151, %cst_182 {dimension_numbers = #tpu.dot_dimension_numbers<[1], [0], [0], [1], [0, 0, 1, 1], [], []>} : vector<128x128xbf16>, vector<128x128xbf16>, vector<128x128xf32> -> vector<128x128xf32>
    %153 = arith.addf %148, %152 : vector<128x128xf32>
    %c0_183 = arith.constant 0 : index
    %c0_184 = arith.constant 0 : index
    %154 = vector.load %arg10[%c0_183, %c0_184] : memref<128x128xf32, #tpu.memory_space<vmem>>, vector<128x128xf32>
    tpu.vector_store %arg10[%c0_183, %c0_184], %153 {strides = array<i32>} : memref<128x128xf32, #tpu.memory_space<vmem>>, vector<128x128xf32>,
    %c0_185 = arith.constant 0 : index
    %c0_186 = arith.constant 0 : index
    %155 = vector.load %arg10[%c0_185, %c0_186] : memref<128x128xf32, #tpu.memory_space<vmem>>, vector<128x128xf32>
    %c0_187 = arith.constant 0 : index
    %c0_188 = arith.constant 0 : index
    %156 = vector.load %arg4[%c0_187, %c0_188] : memref<1x128xf32, #tpu.memory_space<vmem>>, vector<1x128xf32>
    %157 = vector.broadcast %156 : vector<1x128xf32> to vector<128x128xf32>
    %158 = arith.mulf %155, %157 : vector<128x128xf32>
    %c0_189 = arith.constant 0 : index
    %c0_190 = arith.constant 0 : index
    %159 = vector.load %arg5[%c0_189, %c0_190] : memref<1x128xf32, #tpu.memory_space<vmem>>, vector<1x128xf32>
    %160 = vector.broadcast %159 : vector<1x128xf32> to vector<128x128xf32>
    %161 = arith.addf %158, %160 : vector<128x128xf32>
    %162 = arith.truncf %161 : vector<128x128xf32> to vector<128x128xbf16>
    %c128 = arith.constant 128 : index
    %c0_191 = arith.constant 0 : index
    %163 = vector.load %arg6[%c128, %c0_191] : memref<256x128xbf16, #tpu.memory_space<vmem>>, vector<128x128xbf16>
    tpu.vector_store %arg6[%c128, %c0_191], %162 {strides = array<i32>} : memref<256x128xbf16, #tpu.memory_space<vmem>>, vector<128x128xbf16>,
    %c1_i32_192 = arith.constant 1 : i32
    %164 = arith.addi %arg1, %c1_i32_192 : i32
    %c1_i32_193 = arith.constant 1 : i32
    %165 = arith.cmpi slt, %164, %c1_i32_193 : i32
    %166 = arith.extui %165 : i1 to i32
    %c0_i32_194 = arith.constant 0 : i32
    %167 = arith.cmpi ne, %166, %c0_i32_194 : i32
    scf.if %167 {
      %c256_i32_195 = arith.constant 256 : i32
      %168 = arith.addi %1, %c256_i32_195 : i32
      %c128_i32_196 = arith.constant 128 : i32
      %169 = arith.addi %168, %c128_i32_196 : i32
      %c1_i32_197 = arith.constant 1 : i32
      %c0_i32_198 = arith.constant 0 : i32
      %170 = tpu.memref_slice %arg2[%169, %c0_i32_198] : memref<288x128xbf16, #tpu.memory_space<any>> -> memref<160x128xbf16, #tpu.memory_space<any>>
      %171 = tpu.memref_slice %arg9[%c1_i32_197] : memref<2x!tpu.dma_semaphore, #tpu.memory_space<semaphore_mem>> -> memref<1x!tpu.dma_semaphore, #tpu.memory_space<semaphore_mem>>
      %172 = tpu.memref_squeeze %171 : memref<1x!tpu.dma_semaphore, #tpu.memory_space<semaphore_mem>> -> memref<!tpu.dma_semaphore, #tpu.memory_space<semaphore_mem>>
      tpu.enqueue_dma source(%170 : memref<160x128xbf16, #tpu.memory_space<any>>) target(%arg8 : memref<160x128xbf16, #tpu.memory_space<vmem>>) target_semaphore(%172 : memref<!tpu.dma_semaphore, #tpu.memory_space<semaphore_mem>>)
    } else {
    }
    return
  }
  func.func @transform_1(%arg0: i32, %arg1: i32) -> (i32, i32, i32) {
    %c0_i32 = arith.constant 0 : i32
    %c0_i32_0 = arith.constant 0 : i32
    %c0_i32_1 = arith.constant 0 : i32
    return %c0_i32, %c0_i32_0, %arg0 : i32, i32, i32
  }
  func.func @transform_2(%arg0: i32, %arg1: i32) -> (i32, i32) {
    %c0_i32 = arith.constant 0 : i32
    %c0_i32_0 = arith.constant 0 : i32
    return %c0_i32, %arg0 : i32, i32
  }
  func.func @transform_3(%arg0: i32, %arg1: i32) -> (i32, i32) {
    %c0_i32 = arith.constant 0 : i32
    %c0_i32_0 = arith.constant 0 : i32
    return %c0_i32, %arg0 : i32, i32
  }
  func.func @transform_4(%arg0: i32, %arg1: i32) -> (i32, i32) {
    %c0_i32 = arith.constant 0 : i32
    return %arg1, %arg0 : i32, i32
  }
}

</mosaic_0001>

<bundles_post_ra>
// kernel: tpu_custom_call.1
= control target key start
LH: loop header
LB: loop body
LE: loop exit
PB: predicated region body
PF: predicated region fallthrough
CT: control target
= control target key end

     0   :  { %9 = vsyncpa [#allocation7], 0  ;;  %s8427_s0 = inlined_call_operand.hbm [shape: bf16[288,128], index: 0, kind: input, shape index: {}]   ;;  %s8428_s1 = inlined_call_operand.hbm [shape: bf16[9,128,128], index: 1, kind: input, shape index: {}]   ;;  %s8429_s2 = inlined_call_operand.vmem [shape: f32[1,128], index: 2, kind: input, shape index: {}]   ;;  %s8430_s3 = inlined_call_operand.vmem [shape: f32[1,128], index: 3, kind: input, shape index: {}]   ;;  %s8431_s4 = inlined_call_operand.hbm [shape: bf16[256,128], index: 4, kind: output, shape index: {}]  }
   0x1   :  { %10 = vsyncpa [#allocation8], 0  ;;  %s7750_s15 = smov [#allocation6]  }
   0x2   :  { %s16_s16 = sshll.u32 %s7750_s15, 4  ;;  %s17_s16 = int_to_ptr.vmem [resolvable:$true] %s16_s16 }
   0x3   :  { %s7667_s17 = scalar_lea.vmem %s17_s16, 9216  ;;  %p7672_p1 = scmp.lt.s32.totalorder %s17_s16, %s17_s16 }
   0x4   :  { %p7668_p0 = scmp.ne.s32.totalorder %s17_s16, %s7667_s17  ;;  %p7673_p2 = scmp.lt.s32.totalorder %s7667_s17, %s7667_s17 }
   0x6   :  { %p7674_p3 = por %p7673_p2, %p7672_p1 }
   0x8   :  { %p7675_p4 = pnand %p7674_p3, %p7668_p0 }
   0xa   :  { %7678 = shalt.err (!%p7675_p4)
}
   0xb   :  { %s7751_s18 = smov 64   ;;  %s7752_s19 = smov 4  }
   0xc   :  { %22 = dma.hbm_to_vmem [thread:$0]  %s8428_s1, 9216, %s17_s16, [#allocation7], %s7751_s18, %s7751_s18, %s7752_s19  }
   0xd   :  { %7742 = dma.done.wait [#allocation7], 9216  }
   0xe   :  { %7743 = vsyncadd [#allocation7], 4294958080  ;;  %s55_s24 = scalar_lea.hbm %s8427_s0, 1024  ;;  %s7753_s25 = smov [#allocation2]  }
   0xf   :  { %s47_s26 = sshll.u32 %s7753_s25, 4  ;;  %s7754_s27 = smov [#allocation3]   ;;  %s48_s26 = int_to_ptr.vmem [resolvable:$true] %s47_s26 }
  0x10   :  { %s64_s28 = sshll.u32 %s7754_s27, 4  ;;  %s7687_s29 = scalar_lea.vmem %s48_s26, 1280  ;;  %s65_s28 = int_to_ptr.vmem [resolvable:$true] %s64_s28 }
  0x11   :  { %p7688_p5 = scmp.ne.s32.totalorder %s48_s26, %s7687_s29  ;;  %p7692_p6 = scmp.lt.s32.totalorder %s48_s26, %s48_s26 }
  0x12   :  { %p7693_p7 = scmp.lt.s32.totalorder %s7687_s29, %s7687_s29 }
  0x14   :  { %p7694_p8 = por %p7693_p7, %p7692_p6 }
  0x16   :  { %p7695_p9 = pnand %p7694_p8, %p7688_p5 }
  0x18   :  { %7698 = shalt.err (!%p7695_p9)  }
  0x19   :  { %50 = dma.hbm_to_vmem [thread:$0]  %s8427_s0, 1280, %s48_s26, [#allocation4] }
  0x1a   :  { %s7709_s5 = scalar_lea.vmem %s65_s28, 1280  ;;  %p7714_p11 = scmp.lt.s32.totalorder %s65_s28, %s65_s28 }
  0x1b   :  { %p7710_p10 = scmp.ne.s32.totalorder %s65_s28, %s7709_s5  ;;  %p7715_p12 = scmp.lt.s32.totalorder %s7709_s5, %s7709_s5 }
  0x1d   :  { %p7716_p13 = por %p7715_p12, %p7714_p11 }
  0x1f   :  { %p7717_p0 = pnand %p7716_p13, %p7710_p10 }
  0x21   :  { %7720 = shalt.err (!%p7717_p0)  }
  0x22   :  { %67 = dma.hbm_to_vmem [thread:$0]  %s55_s24, 1280, %s65_s28, [#allocation4 + $0x1] }
  0x23   :  { %7744 = dma.done.wait [#allocation4], 1280 }
  0x24   :  { %7745 = vsyncadd [#allocation4], 4294966016  ;;  %v7357_v0 = vld [vmem:[#allocation6 + $0x38] sm:$0xff]   ;;  %v7359_v2 = vld [vmem:[#allocation6 + $0x30] sm:$0xff]   ;;  %vm454_vm0 = vsmask.f32 7424 }
  0x25   :  { %v7358_v1 = vld [vmem:[#allocation6 + $0x78] sm:$0xff]   ;;  %6775 = vmatprep.subr.bf16.mxu0 %v7357_v0  ;;  %v7360_v3 = vld [vmem:[#allocation6 + $0x70] sm:$0xff]   ;;  %v7361_v4 = vld [vmem:[#allocation6 + $0x28] sm:$0xff]   ;;  %vm801_vm1 = vcmask 1046528   ;;  %vm1097_vm2 = vcmask 1045504   ;;  %vm1752_vm4 = vcmask 1044480  }
  0x26   :  { %6807 = vmatprep.subr.bf16.mxu1 %v7358_v1  ;;  %6776 = vmatpush3.bf16.msra.mxu0 %v7357_v0  ;;  %v7362_v5 = vld [vmem:[#allocation6 + $0x68] sm:$0xff]   ;;  %v7363_v6 = vld [vmem:[#allocation6 + $0x20] sm:$0xff]   ;;  %v7365_v8 = vld [vmem:[#allocation6 + $0x18] sm:$0xff]   ;;  %vm1393_vm3 = vsmask.f32 5376 }
  0x27   :  { %6808 = vmatpush3.bf16.msra.mxu1 %v7358_v1  ;;  %6777 = vmatprep.subr.bf16.mxu0 %v7359_v2  ;;  %v7364_v7 = vld [vmem:[#allocation6 + $0x60] sm:$0xff]   ;;  %v7366_v9 = vld [vmem:[#allocation6 + $0x58] sm:$0xff]   ;;  %v7367_v10 = vld [vmem:[#allocation6 + $0x10] sm:$0xff]  }
  0x28   :  { %6809 = vmatprep.subr.bf16.mxu1 %v7360_v3  ;;  %v7368_v11 = vld [vmem:[#allocation6 + $0x50] sm:$0xff]   ;;  %v7373_v12 = vld [vmem:[#allocation2] sm:$0xff]   ;;  %v7375_v14 = vld [vmem:[#allocation2 + $0x8] sm:$0xff]  }
  0x29   :  { %6791 = vmatprep.mubr.bf16.mxu0 %v7373_v12  ;;  %v7374_v13 = vld [vmem:[#allocation2] sm:$0xff]   ;;  %v7369_v15 = vld [vmem:[#allocation6 + $0x8] sm:$0xff]   ;;  %v463_v18 = vshll.u32 %v7375_v14, 16  ;;  %v7377_v19 = vld [vmem:[#allocation2 + $0x10] sm:$0xff]   ;;  %v467_v25 = vshrl.u32 %v7375_v14, 16 }
  0x2a   :  { %6778 = vmatpush3.bf16.msra.mxu0 %v7359_v2  ;;  %v456_v16 = vshrl.u32 %v7374_v13, 16  ;;  %v458_v17 = vshll.u32 %v7374_v13, 16  ;;  %v7370_v20 = vld [vmem:[#allocation6 + $0x48] sm:$0xff]   ;;  %v7371_v21 = vld [vmem:[#allocation6] sm:$0xff]   ;;  %v471_v26 = vshll.u32 %v7377_v19, 16  ;;  %v7383_v29 = vld [vmem:[#allocation2 + $0x18] sm:$0xff]  }
  0x2b   :  { %6810 = vmatpush3.bf16.msra.mxu1 %v7360_v3  ;;  %6779 = vmatprep.subr.bf16.mxu0 %v7361_v4  ;;  %v465_v23 = vrot.slane %v463_v18, 1  ;;  %v7372_v27 = vld [vmem:[#allocation6 + $0x40] sm:$0xff]   ;;  %v475_v30 = vshrl.u32 %v7377_v19, 16  ;;  %v7376_v31 = vld [vmem:[#allocation2 + $0x8] sm:$0xff]   ;;  %v7378_v34 = vld [vmem:[#allocation6 + $0xb8] sm:$0xff]   ;;  %v479_v36 = vshll.u32 %v7383_v29, 16 }
  0x2c   :  { %6811 = vmatprep.subr.bf16.mxu1 %v7362_v5  ;;  %v460_v22 = vrot.slane %v458_v17, 1  ;;  %v473_v33 = vrot.slane %v471_v26, 1  ;;  %v7379_v35 = vld [vmem:[#allocation6 + $0xf8] sm:$0xff]   ;;  %v7385_v37 = vld [vmem:[#allocation2 + $0x20] sm:$0xff]   ;;  %v7380_v38 = vld [vmem:[#allocation6 + $0xb0] sm:$0xff]   ;;  %v483_v42 = vshrl.u32 %v7383_v29, 16 }
  0x2d   :  { %v469_v32 = vor.u32 %v467_v25, %v465_v23  ;;  %v7381_v39 = vld [vmem:[#allocation6 + $0xf0] sm:$0xff]   ;;  %v481_v41 = vrot.slane %v479_v36, 1  ;;  %v487_v43 = vshll.u32 %v7385_v37, 16  ;;  %v7391_v47 = vld [vmem:[#allocation2 + $0x28] sm:$0xff]   ;;  %v491_v48 = vshrl.u32 %v7385_v37, 16  ;;  %v7384_v49 = vld [vmem:[#allocation2 + $0x18] sm:$0xff]  }
  0x2e   :  { %6780 = vmatpush3.bf16.msra.mxu0 %v7361_v4  ;;  %v461_v24 = vor.u32 %v460_v22, %v456_v16  ;;  %v477_v40 = vor.u32 %v475_v30, %v473_v33  ;;  %v7382_v45 = vld [vmem:[#allocation2 + $0x10] sm:$0xff]   ;;  %v7386_v52 = vld [vmem:[#allocation6 + $0xa8] sm:$0xff]   ;;  %v495_v54 = vshll.u32 %v7391_v47, 16  ;;  %v7388_v56 = vld [vmem:[#allocation6 + $0xa0] sm:$0xff]   ;;  %v499_v60 = vshrl.u32 %v7391_v47, 16 }
  0x2f   :  { %6812 = vmatpush3.bf16.msra.mxu1 %v7362_v5  ;;  %6781 = vmatprep.subr.bf16.mxu0 %v7363_v6  ;;  %v474_v44 = vsel %vm454_vm0, %v469_v32, %v473_v33  ;;  %v485_v50 = vor.u32 %v483_v42, %v481_v41  ;;  %v489_v51 = vrot.slane %v487_v43, 1  ;;  %v7387_v53 = vld [vmem:[#allocation6 + $0xe8] sm:$0xff]   ;;  %v7393_v55 = vld [vmem:[#allocation2 + $0x30] sm:$0xff]   ;;  %v7389_v57 = vld [vmem:[#allocation6 + $0xe0] sm:$0xff]  }
  0x30   :  { %6813 = vmatprep.subr.bf16.mxu1 %v7364_v7  ;;  %v466_v28 = vsel %vm454_vm0, %v461_v24, %v465_v23  ;;  %v482_v46 = vsel %vm454_vm0, %v477_v40, %v481_v41  ;;  %v497_v59 = vrot.slane %v495_v54, 1  ;;  %v503_v61 = vshll.u32 %v7393_v55, 16  ;;  %v7390_v63 = vld [vmem:[#allocation2 + $0x20] sm:$0xff]   ;;  %v7399_v1 = vld [vmem:[#allocation2 + $0x38] sm:$0xff]   ;;  %v7398_v17 = vld [vmem:[#allocation2 + $0x30] sm:$0xff]  }
  0x31   :  { %6823 = vmatprep.mubr.bf16.mxu1 %v466_v28  ;;  %v493_v58 = vor.u32 %v491_v48, %v489_v51  ;;  %v490_v62 = vsel %vm454_vm0, %v485_v50, %v489_v51  ;;  %v507_v2 = vshrl.u32 %v7393_v55, 16  ;;  %v7394_v5 = vld [vmem:[#allocation6 + $0x98] sm:$0xff]   ;;  %v515_v14 = vshrl.u32 %v7399_v1, 16  ;;  %v7402_v18 = vld [vmem:[#allocation6 + $0x88] sm:$0xff]   ;;  %v7408_v26 = vld [vmem:[#allocation2 + $0x10] sm:$0xff]  }
  0x32   :  { %6782 = vmatpush3.bf16.msra.mxu0 %v7363_v6  ;;  %v501_v3 = vor.u32 %v499_v60, %v497_v59  ;;  %v505_v4 = vrot.slane %v503_v61, 1  ;;  %v7392_v6 = vld [vmem:[#allocation2 + $0x28] sm:$0xff]   ;;  %v7400_v22 = vld [vmem:[#allocation2 + $0x38] sm:$0xff]   ;;  %v7404_v28 = vld [vmem:[#allocation6 + $0x80] sm:$0xff]  }
  0x33   :  { %6814 = vmatpush3.bf16.msra.mxu1 %v7364_v7  ;;  %6783 = vmatprep.subr.bf16.mxu0 %v7365_v8  ;;  %v498_v0 = vsel %vm454_vm0, %v493_v58, %v497_v59  ;;  %v7395_v7 = vld [vmem:[#allocation6 + $0xd8] sm:$0xff]   ;;  %v7403_v25 = vld [vmem:[#allocation6 + $0xc8] sm:$0xff]   ;;  %v7415_v51 = vld [vmem:[#allocation6 + $0x170] sm:$0xff]  }
  0x34   :  { %6815 = vmatprep.subr.bf16.mxu1 %v7366_v9  ;;  %v509_v12 = vor.u32 %v507_v2, %v505_v4  ;;  %v506_v16 = vsel %vm454_vm0, %v501_v3, %v505_v4  ;;  %v7416_v42 = vld [vmem:[#allocation2 + $0x18] sm:$0xff]   ;;  %v7420_v50 = vld [vmem:[#allocation2 + $0x24] sm:$0xff]  }
  0x35   :  { %v7413_v43 = vld [vmem:[#allocation6 + $0x178] sm:$0xff]   ;;  %v7418_v55 = vld [vmem:[#allocation6 + $0x128] sm:$0xff]   ;;  %v7422_v60 = vld [vmem:[#allocation6 + $0x120] sm:$0xff]  }
  0x36   :  { %6784 = vmatpush3.bf16.msra.mxu0 %v7365_v8  ;;  %v511_v8 = vshll.u32 %v7399_v1, 16  ;;  %v7419_v48 = vld [vmem:[#allocation2 + $0x1c] sm:$0xff]   ;;  %v7424_v58 = vld [vmem:[#allocation2 + $0x28] sm:$0xff]   ;;  %v7428_v2 = vld [vmem:[#allocation2 + $0x34] sm:$0xff]  }
  0x37   :  { %6816 = vmatpush3.bf16.msra.mxu1 %v7366_v9  ;;  %6785 = vmatprep.subr.bf16.mxu0 %v7367_v10  ;;  %v7401_v9 = vld [vmem:[#allocation2 + $0x40] ss:$0 sps:$4 sm:$0x11]   ;;  %v7421_v59 = vld [vmem:[#allocation6 + $0x168] sm:$0xff]   ;;  %v811_v61 = vrot.slane %v7424_v58, 1  ;;  %v7448_v58 = vld [vmem:[#allocation6 + $0x1b0] sm:$0xff]  }
  0x38   :  { %6817 = vmatprep.subr.bf16.mxu1 %v7368_v11  ;;  %v513_v13 = vrot.slane %v511_v8, 1  ;;  %v7423_v3 = vld [vmem:[#allocation6 + $0x160] sm:$0xff]  }
  0x3a   :  { %6786 = vmatpush3.bf16.msra.mxu0 %v7367_v10  ;;  %v7396_v10 = vld [vmem:[#allocation6 + $0x90] sm:$0xff]   ;;  %v514_v19 = vsel %vm454_vm0, %v509_v12, %v513_v13  ;;  %v517_v23 = vor.u32 %v515_v14, %v513_v13  ;;  %v7433_v12 = vld [vmem:[#allocation2 + $0x40] ss:$0 sps:$4 sm:$0x11]  }
  0x3b   :  { %6818 = vmatpush3.bf16.msra.mxu1 %v7368_v11  ;;  %6787 = vmatprep.subr.bf16.mxu0 %v7369_v15  ;;  %v7397_v11 = vld [vmem:[#allocation6 + $0xd0] sm:$0xff]  }
  0x3c   :  { %6819 = vmatprep.subr.bf16.mxu1 %v7370_v20  ;;  %v7430_v13 = vld [vmem:[#allocation6 + $0x110] sm:$0xff]  }
  0x3e   :  { %6788 = vmatpush3.bf16.msra.mxu0 %v7369_v15  ;;  %v519_v15 = vshll.u32 %v7401_v9, 16  ;;  %v1109_v9 = vrot.slane %v7428_v2, 2 }
  0x3f   :  { %6820 = vmatpush3.bf16.msra.mxu1 %v7370_v20  ;;  %6789 = vmatprep.subr.bf16.mxu0 %v7371_v21  ;;  %v7406_v20 = vld [vmem:[#allocation2] sm:$0xfe]  }
  0x40   :  { %6821 = vmatprep.subr.bf16.mxu1 %v7372_v27  ;;  %v521_v24 = vrot.slane %v519_v15, 1  ;;  %v802_v29 = vrot.slane %v7406_v20, 1  ;;  %v7435_v15 = vld [vmem:[#allocation2 + $0x3c] sm:$0xff]   ;;  %v7436_v20 = vld [vmem:[#allocation2 + $0x44] ss:$0 sps:$4 sm:$0x33]  }
  0x42   :  { %6790 = vmatpush3.bf16.msra.mxu0 %v7371_v21  ;;  %v7407_v21 = vld [vmem:[#allocation2 + $0x8] sm:$0xff]   ;;  %v522_v32 = vsel %vm454_vm0, %v517_v23, %v521_v24 }
  0x43   :  { %6822 = vmatpush3.bf16.msra.mxu1 %v7372_v27  ;;  %6839 = vmatprep.subr.bf16.mxu0 %v7378_v34  ;;  %v7411_v27 = vld [vmem:[#allocation2 + $0xc] sm:$0xff]   ;;  %v803_v30 = vrot.slane %v7407_v21, 1 }
  0x44   :  { %6871 = vmatprep.subr.bf16.mxu1 %v7379_v35  ;;  %v1099_v33 = vrot.slane %v7411_v27, 2  ;;  %v7434_v23 = vld [vmem:[#allocation6 + $0x108] sm:$0xff]  }
  0x45   :  { %6792 = vmatmul.mubr.bf16.vlgmr.msra.gmra.mxu0 %v7376_v31  ;;  %v7410_v31 = vld [vmem:[#allocation2 + $0x4] sm:$0xfc]   ;;  %v804_v37 = vsel %vm801_vm1, %v802_v29, %v803_v30 }
  0x46   :  { %6824 = vmatmul.mubr.bf16.vlgmr.msra.gmra.mxu1 %v474_v44  ;;  %6840 = vmatpush3.bf16.msra.mxu0 %v7378_v34  ;;  %v7412_v34 = vld [vmem:[#allocation2 + $0x14] sm:$0xff]   ;;  %v1098_v36 = vrot.slane %v7410_v31, 2  ;;  %v7440_v27 = vld [vmem:[#allocation2 + $0x4] sm:$0xfc]  }
  0x47   :  { %6872 = vmatpush3.bf16.msra.mxu1 %v7379_v35  ;;  %6841 = vmatprep.subr.bf16.mxu0 %v7380_v38  ;;  %v7405_v35 = vld [vmem:[#allocation6 + $0xc0] sm:$0xff]   ;;  %v1101_v41 = vrot.slane %v7412_v34, 2  ;;  %v7414_v44 = vld [vmem:[#allocation6 + $0x130] sm:$0xff]  }
  0x48   :  { %6873 = vmatprep.subr.bf16.mxu1 %v7381_v39  ;;  %6795 = vmatprep.mubr.bf16.mxu0 %v7382_v45  ;;  %v1100_v40 = vsel %vm1097_vm2, %v1098_v36, %v1099_v33  ;;  %v807_v45 = vrot.slane %v7416_v42, 1  ;;  %v7442_v31 = vld [vmem:[#allocation2 + $0x14] sm:$0xff]  }
  0x49   :  { %6827 = vmatprep.mubr.bf16.mxu1 %v482_v46  ;;  %v7417_v46 = vld [vmem:[#allocation2 + $0x20] sm:$0xff]  }
  0x4a   :  { %6842 = vmatpush3.bf16.msra.mxu0 %v7380_v38  ;;  %v805_v38 = vrot.slane %v7408_v26, 1  ;;  %v809_v54 = vrot.slane %v7417_v46, 1  ;;  %v7437_v26 = vld [vmem:[#allocation6 + $0x148] sm:$0xff]  }
  0x4b   :  { %6874 = vmatpush3.bf16.msra.mxu1 %v7381_v39  ;;  %6843 = vmatprep.subr.bf16.mxu0 %v7386_v52  ;;  %v7409_v39 = vld [vmem:[#allocation6 + $0x138] sm:$0xff]  }
  0x4c   :  { %6875 = vmatprep.subr.bf16.mxu1 %v7387_v53  ;;  %v806_v47 = vsel %vm801_vm1, %v803_v30, %v805_v38  ;;  %v7438_v30 = vld [vmem:[#allocation6 + $0x100] sm:$0xff]  }
  0x4d   :  { %6796 = vmatmul.mubr.bf16.gmra.mxu0 %v7384_v49  ;;  %v1102_v49 = vsel %vm1097_vm2, %v1099_v33, %v1101_v41  ;;  %v1398_v33 = vshll.u32 %v7440_v27, 16 }
  0x4e   :  { %6828 = vmatmul.mubr.bf16.gmra.mxu1 %v490_v62  ;;  %6844 = vmatpush3.bf16.msra.mxu0 %v7386_v52  ;;  %v1103_v52 = vrot.slane %v7419_v48, 2  ;;  %v7425_v62 = vld [vmem:[#allocation2 + $0x30] sm:$0xff]  }
  0x4f   :  { %6876 = vmatpush3.bf16.msra.mxu1 %v7387_v53  ;;  %6845 = vmatprep.subr.bf16.mxu0 %v7388_v56  ;;  %v808_v53 = vsel %vm801_vm1, %v805_v38, %v807_v45  ;;  %v1412_v38 = vshrl.u32 %v7442_v31, 16  ;;  %v1400_v42 = vrot.slane %v1398_v33, 3 }
  0x50   :  { %6877 = vmatprep.subr.bf16.mxu1 %v7389_v57  ;;  %6799 = vmatprep.mubr.bf16.mxu0 %v7390_v63  ;;  %v810_v63 = vsel %vm801_vm1, %v807_v45, %v809_v54 }
  0x51   :  { %6831 = vmatprep.mubr.bf16.mxu1 %v498_v0  ;;  %v7427_v0 = vld [vmem:[#allocation2 + $0x2c] sm:$0xff]   ;;  %v1414_v45 = vrot.slane %v1412_v38, 2 }
  0x52   :  { %6846 = vmatpush3.bf16.msra.mxu0 %v7388_v56  ;;  %v1104_v56 = vsel %vm1097_vm2, %v1101_v41, %v1103_v52  ;;  %v1107_v4 = vrot.slane %v7427_v0, 2  ;;  %v7451_v0 = vld [vmem:[#allocation2 + $0x24] sm:$0xff]  }
  0x53   :  { %6878 = vmatpush3.bf16.msra.mxu1 %v7389_v57  ;;  %6847 = vmatprep.subr.bf16.mxu0 %v7394_v5  ;;  %v1105_v57 = vrot.slane %v7420_v50, 2  ;;  %v7444_v50 = vld [vmem:[#allocation2 + $0x4] sm:$0xf8]  }
  0x54   :  { %6879 = vmatprep.subr.bf16.mxu1 %v7395_v7 }
  0x55   :  { %6800 = vmatmul.mubr.bf16.gmra.mxu0 %v7392_v6  ;;  %v1106_v1 = vsel %vm1097_vm2, %v1103_v52, %v1105_v57  ;;  %v813_v6 = vrot.slane %v7425_v62, 1  ;;  %v1108_v8 = vsel %vm1097_vm2, %v1105_v57, %v1107_v4  ;;  %v7446_v52 = vld [vmem:[#allocation2 + $0x14] sm:$0xff]  }
  0x56   :  { %6832 = vmatmul.mubr.bf16.gmra.mxu1 %v506_v16  ;;  %6848 = vmatpush3.bf16.msra.mxu0 %v7394_v5  ;;  %v812_v5 = vsel %vm801_vm1, %v809_v54, %v811_v61  ;;  %v7447_v57 = vld [vmem:[#allocation6 + $0x1f8] sm:$0xff]  }
  0x57   :  { %6880 = vmatpush3.bf16.msra.mxu1 %v7395_v7  ;;  %6849 = vmatprep.subr.bf16.mxu0 %v7396_v10  ;;  %v7426_v7 = vld [vmem:[#allocation6 + $0x118] sm:$0xff]   ;;  %v814_v16 = vsel %vm801_vm1, %v811_v61, %v813_v6  ;;  %v7449_v61 = vld [vmem:[#allocation6 + $0x1f0] sm:$0xff]  }
  0x58   :  { %6881 = vmatprep.subr.bf16.mxu1 %v7397_v11  ;;  %6803 = vmatprep.mubr.bf16.mxu0 %v7398_v17  ;;  %v7431_v17 = vld [vmem:[#allocation6 + $0x150] sm:$0xff]  }
  0x59   :  { %6835 = vmatprep.mubr.bf16.mxu1 %v514_v19  ;;  %v1111_v19 = vrot.slane %v7435_v15, 2 }
  0x5a   :  { %6850 = vmatpush3.bf16.msra.mxu0 %v7396_v10  ;;  %v7432_v10 = vld [vmem:[#allocation2 + $0x38] sm:$0xff]  }
  0x5b   :  { %6882 = vmatpush3.bf16.msra.mxu1 %v7397_v11  ;;  %6851 = vmatprep.subr.bf16.mxu0 %v7402_v18  ;;  %v7429_v11 = vld [vmem:[#allocation6 + $0x158] sm:$0xff]   ;;  %v815_v14 = vrot.slane %v7432_v10, 1  ;;  %v1112_v24 = vsel %vm1097_vm2, %v1109_v9, %v1111_v19  ;;  %v7454_v10 = vld [vmem:[#allocation2 + $0x24] sm:$0xff]  }
  0x5c   :  { %6883 = vmatprep.subr.bf16.mxu1 %v7403_v25  ;;  %v1760_v15 = vrot.slane %v7454_v10, 3  ;;  %v7478_v10 = vld [vmem:[#allocation2 + $0x14] sm:$0xff]  }
  0x5d   :  { %6804 = vmatmul.mubr.bf16.gmra.mxu0 %v7400_v22  ;;  %v816_v21 = vsel %vm801_vm1, %v813_v6, %v815_v14  ;;  %v817_v22 = vrot.slane %v7433_v12, 1  ;;  %v1433_v6 = vshll.u32 %v7451_v0, 16 }
  0x5e   :  { %6836 = vmatmul.mubr.bf16.gmra.mxu1 %v522_v32  ;;  %6852 = vmatpush3.bf16.msra.mxu0 %v7402_v18  ;;  %v1110_v18 = vsel %vm1097_vm2, %v1107_v4, %v1109_v9  ;;  %v1395_v32 = vshrl.u32 %v7440_v27, 16  ;;  %v7453_v4 = vld [vmem:[#allocation2 + $0x1c] sm:$0xff]  }
  0x5f   :  { %6884 = vmatpush3.bf16.msra.mxu1 %v7403_v25  ;;  %6853 = vmatprep.subr.bf16.mxu0 %v7404_v28  ;;  %v1113_v25 = vrot.slane %v7436_v20, 2  ;;  %v818_v29 = vsel %vm801_vm1, %v815_v14, %v817_v22  ;;  %v1758_v9 = vrot.slane %v7453_v4, 3  ;;  %v1435_v12 = vrot.slane %v1433_v6, 3  ;;  %v7460_v27 = vld [vmem:[#allocation6 + $0x198] sm:$0xff]  }
  0x60   :  { %6885 = vmatprep.subr.bf16.mxu1 %v7405_v35  ;;  %6855 = vmatprep.mubr.bf16.mxu0 %v804_v37  ;;  %v7439_v37 = vld [vmem:[#allocation6 + $0x140] sm:$0xff]   ;;  %v1397_v41 = vrot.slane %v1395_v32, 2 }
  0x61   :  { %6887 = vmatprep.mubr.bf16.mxu1 %v1100_v40  ;;  %v1114_v36 = vsel %vm1097_vm2, %v1111_v19, %v1113_v25  ;;  %v7445_v40 = vld [vmem:[#allocation2 + $0xc] sm:$0xff]   ;;  %v1761_v20 = vsel %vm1752_vm4, %v1758_v9, %v1760_v15 }
  0x62   :  { %6854 = vmatpush3.bf16.msra.mxu0 %v7404_v28  ;;  %v7441_v28 = vld [vmem:[#allocation2 + $0xc] sm:$0xff]   ;;  %v1401_v48 = vor.u32 %v1400_v42, %v1397_v41 }
  0x63   :  { %6886 = vmatpush3.bf16.msra.mxu1 %v7405_v35  ;;  %6903 = vmatprep.subr.bf16.mxu0 %v7409_v39  ;;  %v1403_v34 = vshrl.u32 %v7441_v28, 16  ;;  %v1406_v35 = vshll.u32 %v7441_v28, 16  ;;  %v7461_v28 = vld [vmem:[#allocation2 + $0x2c] sm:$0xff]  }
  0x64   :  { %6935 = vmatprep.subr.bf16.mxu1 %v7413_v43  ;;  %v1762_v33 = vrot.slane %v7461_v28, 3  ;;  %v7464_v42 = vld [vmem:[#allocation6 + $0x190] sm:$0xff]  }
  0x65   :  { %6856 = vmatmul.mubr.bf16.vlgmr.msra.gmra.mxu0 %v806_v47  ;;  %v7443_v47 = vld [vmem:[#allocation6 + $0x1b8] sm:$0xff]   ;;  %v7485_v28 = vld [vmem:[#allocation2 + $0x2c] sm:$0xff]  }
  0x66   :  { %6904 = vmatpush3.bf16.msra.mxu0 %v7409_v39  ;;  %6888 = vmatmul.mubr.bf16.vlgmr.msra.gmra.mxu1 %v1102_v49  ;;  %v1415_v39 = vshll.u32 %v7442_v31, 16  ;;  %v1763_v38 = vsel %vm1752_vm4, %v1760_v15, %v1762_v33  ;;  %v2330_v15 = vshll.u32 %v7478_v10, 16 }
  0x67   :  { %6936 = vmatpush3.bf16.msra.mxu1 %v7413_v43  ;;  %6905 = vmatprep.subr.bf16.mxu0 %v7414_v44  ;;  %v1405_v43 = vrot.slane %v1403_v34, 2  ;;  %v7462_v34 = vld [vmem:[#allocation2 + $0x34] sm:$0xff]  }
  0x68   :  { %6937 = vmatprep.subr.bf16.mxu1 %v7415_v51  ;;  %6859 = vmatprep.mubr.bf16.mxu0 %v808_v53  ;;  %v1417_v46 = vrot.slane %v1415_v39, 3  ;;  %v1764_v39 = vrot.slane %v7462_v34, 3  ;;  %v2354_v34 = vshll.u32 %v7485_v28, 16 }
  0x69   :  { %6891 = vmatprep.mubr.bf16.mxu1 %v1104_v56  ;;  %v1756_v56 = vrot.slane %v7446_v52, 3 }
  0x6a   :  { %6906 = vmatpush3.bf16.msra.mxu0 %v7414_v44  ;;  %v1408_v44 = vrot.slane %v1406_v35, 3  ;;  %v1418_v53 = vor.u32 %v1417_v46, %v1414_v45  ;;  %v7465_v45 = vld [vmem:[#allocation6 + $0x1d0] sm:$0xff]  }
  0x6b   :  { %6938 = vmatpush3.bf16.msra.mxu1 %v7415_v51  ;;  %6907 = vmatprep.subr.bf16.mxu0 %v7418_v55  ;;  %v1754_v51 = vrot.slane %v7445_v40, 3  ;;  %v1759_v14 = vsel %vm1752_vm4, %v1756_v56, %v1758_v9  ;;  %v7463_v40 = vld [vmem:[#allocation6 + $0x1d8] sm:$0xff]   ;;  %v7477_v9 = vld [vmem:[#allocation2 + $0xc] sm:$0xff]  }
  0x6c   :  { %6939 = vmatprep.subr.bf16.mxu1 %v7421_v59  ;;  %v1409_v49 = vor.u32 %v1408_v44, %v1405_v43  ;;  %v1765_v44 = vsel %vm1752_vm4, %v1762_v33, %v1764_v39 }
  0x6d   :  { %6860 = vmatmul.mubr.bf16.gmra.mxu0 %v810_v63  ;;  %v1757_v62 = vsel %vm1752_vm4, %v1754_v51, %v1756_v56  ;;  %v7450_v63 = vld [vmem:[#allocation2 + $0x1c] sm:$0xff]  }
  0x6e   :  { %6908 = vmatpush3.bf16.msra.mxu0 %v7418_v55  ;;  %6892 = vmatmul.mubr.bf16.gmra.mxu1 %v1106_v1  ;;  %v1410_v54 = vsel %vm1393_vm3, %v1401_v48, %v1409_v49  ;;  %v1753_v55 = vrot.slane %v7444_v50, 3  ;;  %v1421_v1 = vshrl.u32 %v7450_v63, 16  ;;  %v1424_v2 = vshll.u32 %v7450_v63, 16  ;;  %v7467_v48 = vld [vmem:[#allocation2 + $0x44] ss:$0 sps:$4 sm:$0x77]  }
  0x6f   :  { %6940 = vmatpush3.bf16.msra.mxu1 %v7421_v59  ;;  %6909 = vmatprep.subr.bf16.mxu0 %v7422_v60  ;;  %v1419_v59 = vsel %vm1393_vm3, %v1409_v49, %v1418_v53  ;;  %v7468_v49 = vld [vmem:[#allocation6 + $0x188] sm:$0xff]   ;;  %v1466_v52 = vshrl.u32 %v7467_v48, 16 }
  0x70   :  { %6941 = vmatprep.subr.bf16.mxu1 %v7423_v3  ;;  %6863 = vmatprep.mubr.bf16.mxu0 %v812_v5  ;;  %v1430_v5 = vshrl.u32 %v7451_v0, 16  ;;  %v7471_v63 = vld [vmem:[#allocation6 + $0x1c8] sm:$0xff]  }
  0x71   :  { %6895 = vmatprep.mubr.bf16.mxu1 %v1108_v8  ;;  %v1426_v8 = vrot.slane %v1424_v2, 3  ;;  %v7472_v2 = vld [vmem:[#allocation6 + $0x180] sm:$0xff]  }
  0x72   :  { %6910 = vmatpush3.bf16.msra.mxu0 %v7422_v60  ;;  %v1755_v60 = vsel %vm1752_vm4, %v1753_v55, %v1754_v51 }
  0x73   :  { %6942 = vmatpush3.bf16.msra.mxu1 %v7423_v3  ;;  %6911 = vmatprep.subr.bf16.mxu0 %v7426_v7  ;;  %v7452_v3 = vld [vmem:[#allocation6 + $0x1a8] sm:$0xff]  }
  0x74   :  { %6943 = vmatprep.subr.bf16.mxu1 %v7429_v11 }
  0x75   :  { %6864 = vmatmul.mubr.bf16.gmra.mxu0 %v814_v16  ;;  %v7455_v16 = vld [vmem:[#allocation6 + $0x1e8] sm:$0xff]  }
  0x76   :  { %6912 = vmatpush3.bf16.msra.mxu0 %v7426_v7  ;;  %6896 = vmatmul.mubr.bf16.gmra.mxu1 %v1110_v18  ;;  %v1423_v7 = vrot.slane %v1421_v1, 2  ;;  %v7456_v18 = vld [vmem:[#allocation6 + $0x1a0] sm:$0xff]  }
  0x77   :  { %6944 = vmatpush3.bf16.msra.mxu1 %v7429_v11  ;;  %6913 = vmatprep.subr.bf16.mxu0 %v7430_v13  ;;  %v1432_v11 = vrot.slane %v1430_v5, 2  ;;  %v7473_v5 = vld [vmem:[#allocation6 + $0x1c0] sm:$0xff]  }
  0x78   :  { %6945 = vmatprep.subr.bf16.mxu1 %v7431_v17  ;;  %6867 = vmatprep.mubr.bf16.mxu0 %v816_v21  ;;  %v7457_v21 = vld [vmem:[#allocation6 + $0x1e0] sm:$0xff]  }
  0x79   :  { %6899 = vmatprep.mubr.bf16.mxu1 %v1112_v24  ;;  %v7459_v24 = vld [vmem:[#allocation2 + $0x34] sm:$0xff]  }
  0x7a   :  { %6914 = vmatpush3.bf16.msra.mxu0 %v7430_v13  ;;  %v1427_v13 = vor.u32 %v1426_v8, %v1423_v7  ;;  %v7474_v7 = vld [vmem:[#allocation2 + $0xc] sm:$0xff]   ;;  %v7476_v8 = vld [vmem:[#allocation6 + $0x238] sm:$0xff]  }
  0x7b   :  { %6946 = vmatpush3.bf16.msra.mxu1 %v7431_v17  ;;  %6915 = vmatprep.subr.bf16.mxu0 %v7434_v23  ;;  %v1436_v17 = vor.u32 %v1435_v12, %v1432_v11  ;;  %v7475_v11 = vld [vmem:[#allocation2 + $0x14] sm:$0xff]   ;;  %v2323_v12 = vshrl.u32 %v7477_v9, 16 }
  0x7c   :  { %6947 = vmatprep.subr.bf16.mxu1 %v7437_v26  ;;  %v1428_v19 = vsel %vm1393_vm3, %v1418_v53, %v1427_v13  ;;  %v1469_v53 = vshll.u32 %v7467_v48, 16 }
  0x7d   :  { %6868 = vmatmul.mubr.bf16.gmra.mxu0 %v818_v29  ;;  %v1437_v22 = vsel %vm1393_vm3, %v1427_v13, %v1436_v17  ;;  %v1448_v29 = vshrl.u32 %v7459_v24, 16  ;;  %v2325_v13 = vshll.u32 %v7477_v9, 16 }
  0x7e   :  { %6916 = vmatpush3.bf16.msra.mxu0 %v7434_v23  ;;  %6900 = vmatmul.mubr.bf16.gmra.mxu1 %v1114_v36  ;;  %v7458_v23 = vld [vmem:[#allocation2 + $0x2c] sm:$0xff]  }
  0x7f   :  { %6948 = vmatpush3.bf16.msra.mxu1 %v7437_v26  ;;  %6917 = vmatprep.subr.bf16.mxu0 %v7438_v30  ;;  %v1439_v25 = vshrl.u32 %v7458_v23, 16  ;;  %v1442_v26 = vshll.u32 %v7458_v23, 16  ;;  %v1450_v35 = vrot.slane %v1448_v29, 2 }
  0x80   :  { %6949 = vmatprep.subr.bf16.mxu1 %v7439_v37  ;;  %6919 = vmatprep.mubr.bf16.mxu0 %v1410_v54  ;;  %v7469_v54 = vld [vmem:[#allocation2 + $0x3c] sm:$0xff]  }
  0x81   :  { %6951 = vmatprep.mubr.bf16.mxu1 %v1755_v60  ;;  %v1441_v31 = vrot.slane %v1439_v25, 2  ;;  %v1444_v32 = vrot.slane %v1442_v26, 3  ;;  %v7470_v60 = vld [vmem:[#allocation2 + $0x44] ss:$0 sps:$4 sm:$0x77]  }
  0x82   :  { %6918 = vmatpush3.bf16.msra.mxu0 %v7438_v30  ;;  %v1451_v30 = vshll.u32 %v7459_v24, 16  ;;  %v1768_v1 = vrot.slane %v7470_v60, 3  ;;  %v7483_v24 = vld [vmem:[#allocation6 + $0x228] sm:$0xff]  }
  0x83   :  { %6950 = vmatpush3.bf16.msra.mxu1 %v7439_v37  ;;  %6967 = vmatprep.subr.bf16.mxu0 %v7443_v47  ;;  %v1445_v37 = vor.u32 %v1444_v32, %v1441_v31  ;;  %v7484_v25 = vld [vmem:[#allocation2 + $0x24] sm:$0xff]   ;;  %v7497_v60 = vld [vmem:[#allocation2 + $0x4c] ss:$0 sps:$4 sm:$0x11]  }
  0x84   :  { %6999 = vmatprep.subr.bf16.mxu1 %v7447_v57  ;;  %v1453_v36 = vrot.slane %v1451_v30, 3  ;;  %v2346_v30 = vshll.u32 %v7484_v25, 16  ;;  %v2350_v31 = vshrl.u32 %v7484_v25, 16 }
  0x85   :  { %6920 = vmatmul.mubr.bf16.vlgmr.msra.gmra.mxu0 %v1419_v59  ;;  %v1446_v43 = vsel %vm1393_vm3, %v1436_v17, %v1445_v37  ;;  %v1766_v59 = vrot.slane %v7469_v54, 3  ;;  %v2327_v17 = vrot.slane %v2325_v13, 1  ;;  %v7493_v54 = vld [vmem:[#allocation2 + $0x3c] sm:$0xff]  }
  0x86   :  { %6968 = vmatpush3.bf16.msra.mxu0 %v7443_v47  ;;  %6952 = vmatmul.mubr.bf16.vlgmr.msra.gmra.mxu1 %v1757_v62  ;;  %v1454_v41 = vor.u32 %v1453_v36, %v1450_v35  ;;  %v7466_v47 = vld [vmem:[#allocation2 + $0x3c] sm:$0xff]   ;;  %v7482_v35 = vld [vmem:[#allocation2 + $0x24] sm:$0xff]   ;;  %v2348_v36 = vrot.slane %v2346_v30, 1 }
  0x87   :  { %7000 = vmatpush3.bf16.msra.mxu1 %v7447_v57  ;;  %6969 = vmatprep.subr.bf16.mxu0 %v7448_v58  ;;  %v1457_v50 = vshrl.u32 %v7466_v47, 16  ;;  %v1460_v51 = vshll.u32 %v7466_v47, 16  ;;  %v1468_v57 = vrot.slane %v1466_v52, 2  ;;  %v1767_v0 = vsel %vm1752_vm4, %v1764_v39, %v1766_v59 }
  0x88   :  { %7001 = vmatprep.subr.bf16.mxu1 %v7449_v61  ;;  %6955 = vmatprep.mubr.bf16.mxu1 %v1759_v14  ;;  %v1455_v46 = vsel %vm1393_vm3, %v1445_v37, %v1454_v41  ;;  %v1769_v6 = vsel %vm1752_vm4, %v1766_v59, %v1768_v1  ;;  %v7479_v14 = vld [vmem:[#allocation2 + $0x1c] sm:$0xff]   ;;  %v2356_v37 = vrot.slane %v2354_v34, 1  ;;  %v7496_v59 = vld [vmem:[#allocation2 + $0x44] sm:$0xff]   ;;  %v7500_v1 = vld [vmem:[#allocation2 + $0x14] sm:$0xff]  }
  0x89   :  { %6923 = vmatprep.mubr.bf16.mxu0 %v1428_v19  ;;  %v1459_v55 = vrot.slane %v1457_v50, 2  ;;  %v1462_v56 = vrot.slane %v1460_v51, 3  ;;  %v7480_v19 = vld [vmem:[#allocation6 + $0x230] sm:$0xff]  }
  0x8a   :  { %6970 = vmatpush3.bf16.msra.mxu0 %v7448_v58  ;;  %v1471_v58 = vrot.slane %v1469_v53, 3  ;;  %v7488_v51 = vld [vmem:[#allocation2 + $0x34] sm:$0xff]  }
  0x8b   :  { %7002 = vmatpush3.bf16.msra.mxu1 %v7449_v61  ;;  %6971 = vmatprep.subr.bf16.mxu0 %v7452_v3  ;;  %v1463_v61 = vor.u32 %v1462_v56, %v1459_v55  ;;  %v7492_v53 = vld [vmem:[#allocation6 + $0x210] sm:$0xff]  }
  0x8c   :  { %7003 = vmatprep.subr.bf16.mxu1 %v7455_v16  ;;  %v1472_v62 = vor.u32 %v1471_v58, %v1468_v57 }
  0x8d   :  { %6924 = vmatmul.mubr.bf16.gmra.mxu0 %v1437_v22  ;;  %v2328_v22 = vor.u32 %v2327_v17, %v2323_v12  ;;  %v7501_v12 = vld [vmem:[#allocation2 + $0x1c] sm:$0xff]  }
  0x8e   :  { %6972 = vmatpush3.bf16.msra.mxu0 %v7452_v3  ;;  %6956 = vmatmul.mubr.bf16.gmra.mxu1 %v1761_v20  ;;  %v1464_v3 = vsel %vm1393_vm3, %v1454_v41, %v1463_v61  ;;  %v1473_v4 = vsel %vm1393_vm3, %v1463_v61, %v1472_v62  ;;  %v7481_v20 = vld [vmem:[#allocation2 + $0x1c] sm:$0xff]   ;;  %v2378_v62 = vshll.u32 %v7496_v59, 16  ;;  %v2671_v17 = vrot.slane %v7501_v12, 1 }
  0x8f   :  { %7004 = vmatpush3.bf16.msra.mxu1 %v7455_v16  ;;  %6973 = vmatprep.subr.bf16.mxu0 %v7456_v18  ;;  %v2334_v16 = vshrl.u32 %v7478_v10, 16  ;;  %v7486_v41 = vld [vmem:[#allocation6 + $0x220] sm:$0xff]  }
  0x90   :  { %7005 = vmatprep.subr.bf16.mxu1 %v7457_v21  ;;  %6959 = vmatprep.mubr.bf16.mxu1 %v1763_v38  ;;  %v7487_v38 = vld [vmem:[#allocation2 + $0x2c] sm:$0xff]   ;;  %v7498_v10 = vld [vmem:[#allocation6 + $0x200] sm:$0xff]  }
  0x91   :  { %6927 = vmatprep.mubr.bf16.mxu0 %v1446_v43  ;;  %v7490_v43 = vld [vmem:[#allocation2 + $0x34] sm:$0xff]  }
  0x92   :  { %6974 = vmatpush3.bf16.msra.mxu0 %v7456_v18  ;;  %v2338_v18 = vshll.u32 %v7479_v14, 16  ;;  %v2362_v47 = vshll.u32 %v7490_v43, 16  ;;  %v2366_v48 = vshrl.u32 %v7490_v43, 16 }
  0x93   :  { %7006 = vmatpush3.bf16.msra.mxu1 %v7457_v21  ;;  %6975 = vmatprep.subr.bf16.mxu0 %v7460_v27  ;;  %v2332_v21 = vrot.slane %v2330_v15, 1  ;;  %v7502_v15 = vld [vmem:[#allocation2 + $0x24] sm:$0xff]  }
  0x94   :  { %7007 = vmatprep.subr.bf16.mxu1 %v7463_v40  ;;  %v2340_v23 = vrot.slane %v2338_v18, 1  ;;  %v2364_v52 = vrot.slane %v2362_v47, 1  ;;  %v2673_v18 = vrot.slane %v7502_v15, 1 }
  0x95   :  { %6928 = vmatmul.mubr.bf16.gmra.mxu0 %v1455_v46  ;;  %v2336_v26 = vor.u32 %v2334_v16, %v2332_v21  ;;  %v2333_v29 = vsel %vm454_vm0, %v2328_v22, %v2332_v21  ;;  %v7504_v22 = vld [vmem:[#allocation2 + $0x34] sm:$0xff]  }
  0x96   :  { %6960 = vmatmul.mubr.bf16.gmra.mxu1 %v1765_v44  ;;  %6976 = vmatpush3.bf16.msra.mxu0 %v7460_v27  ;;  %v2342_v27 = vshrl.u32 %v7479_v14, 16  ;;  %v7491_v44 = vld [vmem:[#allocation2 + $0x3c] sm:$0xff]   ;;  %v2368_v56 = vor.u32 %v2366_v48, %v2364_v52  ;;  %v2674_v21 = vsel %vm801_vm1, %v2671_v17, %v2673_v18 }
  0x97   :  { %7008 = vmatpush3.bf16.msra.mxu1 %v7463_v40  ;;  %6977 = vmatprep.subr.bf16.mxu0 %v7464_v42  ;;  %v2341_v32 = vsel %vm454_vm0, %v2336_v26, %v2340_v23  ;;  %v2352_v40 = vor.u32 %v2350_v31, %v2348_v36  ;;  %v2370_v50 = vshll.u32 %v7491_v44, 16  ;;  %v2374_v58 = vshrl.u32 %v7491_v44, 16  ;;  %v7505_v26 = vld [vmem:[#allocation2 + $0x3c] sm:$0xff]  }
  0x98   :  { %7009 = vmatprep.subr.bf16.mxu1 %v7465_v45  ;;  %6963 = vmatprep.mubr.bf16.mxu1 %v1767_v0  ;;  %v2344_v33 = vor.u32 %v2342_v27, %v2340_v23  ;;  %v2386_v0 = vshll.u32 %v7497_v60, 16 }
  0x99   :  { %6931 = vmatprep.mubr.bf16.mxu0 %v1464_v3  ;;  %v2372_v57 = vrot.slane %v2370_v50, 1  ;;  %v7494_v3 = vld [vmem:[#allocation2 + $0x44] sm:$0xff]  }
  0x9a   :  { %6978 = vmatpush3.bf16.msra.mxu0 %v7464_v42  ;;  %v2349_v39 = vsel %vm454_vm0, %v2344_v33, %v2348_v36  ;;  %v2358_v42 = vshrl.u32 %v7485_v28, 16  ;;  %v2388_v9 = vrot.slane %v2386_v0, 1  ;;  %v7506_v28 = vld [vmem:[#allocation2 + $0x44] sm:$0xff]  }
  0x9b   :  { %7010 = vmatpush3.bf16.msra.mxu1 %v7465_v45  ;;  %6979 = vmatprep.subr.bf16.mxu0 %v7468_v49  ;;  %v2357_v45 = vsel %vm454_vm0, %v2352_v40, %v2356_v37  ;;  %v2376_v61 = vor.u32 %v2374_v58, %v2372_v57  ;;  %v2681_v30 = vrot.slane %v7506_v28, 1 }
  0x9c   :  { %7011 = vmatprep.subr.bf16.mxu1 %v7471_v63  ;;  %v2360_v46 = vor.u32 %v2358_v42, %v2356_v37 }
  0x9d   :  { %6932 = vmatmul.mubr.bf16.gmra.mxu0 %v1473_v4  ;;  %v7495_v4 = vld [vmem:[#allocation6 + $0x208] sm:$0xff]  }
  0x9e   :  { %6964 = vmatmul.mubr.bf16.gmra.mxu1 %v1769_v6  ;;  %6980 = vmatpush3.bf16.msra.mxu0 %v7468_v49  ;;  %v7489_v49 = vld [vmem:[#allocation6 + $0x218] sm:$0xff]   ;;  %v2365_v55 = vsel %vm454_vm0, %v2360_v46, %v2364_v52  ;;  %v7499_v6 = vld [vmem:[#allocation2 + $0xc] sm:$0xfe]  }
  0x9f   :  { %7012 = vmatpush3.bf16.msra.mxu1 %v7471_v63  ;;  %6981 = vmatprep.subr.bf16.mxu0 %v7472_v2  ;;  %v2382_v63 = vshrl.u32 %v7496_v59, 16 }
  0xa0   :  { %7013 = vmatprep.subr.bf16.mxu1 %v7473_v5  ;;  %6983 = vmatprep.mubr.bf16.mxu0 %v7474_v7  ;;  %v2669_v7 = vrot.slane %v7500_v1, 1 }
  0xa1   :  { %7015 = vmatprep.mubr.bf16.mxu1 %v2333_v29  ;;  %v2679_v29 = vrot.slane %v7505_v26, 1 }
  0xa2   :  { %6982 = vmatpush3.bf16.msra.mxu0 %v7472_v2  ;;  %v2373_v2 = vsel %vm454_vm0, %v2368_v56, %v2372_v57 }
  0xa3   :  { %7014 = vmatpush3.bf16.msra.mxu1 %v7473_v5  ;;  %7031 = vmatprep.subr.bf16.mxu0 %v7476_v8  ;;  %v2380_v5 = vrot.slane %v2378_v62, 1  ;;  %v2682_v33 = vsel %vm801_vm1, %v2679_v29, %v2681_v30 }
  0xa5   :  { %6984 = vmatmul.mubr.bf16.vlgmr.msra.gmra.mxu0 %v7475_v11  ;;  %v2668_v11 = vrot.slane %v7499_v6, 1  ;;  %v2384_v13 = vor.u32 %v2382_v63, %v2380_v5 }
  0xa6   :  { %7032 = vmatpush3.bf16.msra.mxu0 %v7476_v8  ;;  %6987 = vmatprep.mubr.bf16.mxu0 %v7481_v20  ;;  %v2381_v8 = vsel %vm454_vm0, %v2376_v61, %v2380_v5  ;;  %v7503_v20 = vld [vmem:[#allocation2 + $0x2c] sm:$0xff]  }
  0xa7   :  { %7033 = vmatprep.subr.bf16.mxu0 %v7480_v19  ;;  %7016 = vmatmul.mubr.bf16.vlgmr.msra.gmra.mxu1 %v2341_v32  ;;  %v2670_v14 = vsel %vm801_vm1, %v2668_v11, %v2669_v7  ;;  %v2389_v16 = vsel %vm454_vm0, %v2384_v13, %v2388_v9  ;;  %v2675_v23 = vrot.slane %v7503_v20, 1  ;;  %v7507_v32 = vld [vmem:[#allocation2 + $0x4c] ss:$0 sps:$4 sm:$0x11]  }
  0xa8   :  { %7019 = vmatprep.mubr.bf16.mxu1 %v2349_v39  ;;  %v2683_v34 = vrot.slane %v7507_v32, 1 }
  0xa9   :  { %v2676_v25 = vsel %vm801_vm1, %v2673_v18, %v2675_v23 }
  0xaa   :  { %7034 = vmatpush3.bf16.msra.mxu0 %v7480_v19  ;;  %v2672_v19 = vsel %vm801_vm1, %v2669_v7, %v2671_v17 }
  0xab   :  { %7035 = vmatprep.subr.bf16.mxu0 %v7483_v24 }
  0xad   :  { %6988 = vmatmul.mubr.bf16.gmra.mxu0 %v7482_v35  ;;  %v2684_v35 = vsel %vm801_vm1, %v2681_v30, %v2683_v34 }
  0xae   :  { %7036 = vmatpush3.bf16.msra.mxu0 %v7483_v24  ;;  %6991 = vmatprep.mubr.bf16.mxu0 %v7487_v38  ;;  %v2677_v24 = vrot.slane %v7504_v22, 1 }
  0xaf   :  { %7037 = vmatprep.subr.bf16.mxu0 %v7486_v41  ;;  %7020 = vmatmul.mubr.bf16.gmra.mxu1 %v2357_v45 }
  0xb0   :  { %7023 = vmatprep.mubr.bf16.mxu1 %v2365_v55  ;;  %v2678_v27 = vsel %vm801_vm1, %v2675_v23, %v2677_v24  ;;  %v2680_v31 = vsel %vm801_vm1, %v2677_v24, %v2679_v29 }
  0xb2   :  { %7038 = vmatpush3.bf16.msra.mxu0 %v7486_v41 }
  0xb3   :  { %7039 = vmatprep.subr.bf16.mxu0 %v7489_v49 }
  0xb5   :  { %6992 = vmatmul.mubr.bf16.gmra.mxu0 %v7488_v51 }
  0xb6   :  { %7040 = vmatpush3.bf16.msra.mxu0 %v7489_v49  ;;  %6995 = vmatprep.mubr.bf16.mxu0 %v7493_v54 }
  0xb7   :  { %7041 = vmatprep.subr.bf16.mxu0 %v7492_v53  ;;  %7024 = vmatmul.mubr.bf16.gmra.mxu1 %v2373_v2 }
  0xb8   :  { %7027 = vmatprep.mubr.bf16.mxu1 %v2381_v8 }
  0xba   :  { %7042 = vmatpush3.bf16.msra.mxu0 %v7492_v53 }
  0xbb   :  { %7043 = vmatprep.subr.bf16.mxu0 %v7495_v4 }
  0xbd   :  { %6996 = vmatmul.mubr.bf16.gmra.mxu0 %v7494_v3 }
  0xbe   :  { %7044 = vmatpush3.bf16.msra.mxu0 %v7495_v4  ;;  %7047 = vmatprep.mubr.bf16.mxu0 %v2670_v14 }
  0xbf   :  { %7045 = vmatprep.subr.bf16.mxu0 %v7498_v10  ;;  %7028 = vmatmul.mubr.bf16.gmra.mxu1 %v2389_v16 }
  0xc2   :  { %7046 = vmatpush3.bf16.msra.mxu0 %v7498_v10 }
  0xc5   :  { %7048 = vmatmul.mubr.bf16.vlgmr.msra.gmra.mxu0 %v2672_v19 }
  0xc6   :  { %7051 = vmatprep.mubr.bf16.mxu0 %v2674_v21 }
  0xcd   :  { %7052 = vmatmul.mubr.bf16.gmra.mxu0 %v2676_v25 }
  0xce   :  { %7055 = vmatprep.mubr.bf16.mxu0 %v2678_v27 }
  0xd5   :  { %7056 = vmatmul.mubr.bf16.gmra.mxu0 %v2680_v31 }
  0xd6   :  { %7059 = vmatprep.mubr.bf16.mxu0 %v2682_v33 }
  0xdd   :  { %7060 = vmatmul.mubr.bf16.gmra.mxu0 %v2684_v35 }
 0x105   :  { %v6793_v36 = vpop.f32.mrf.mxu0 }
 0x106   :  { %v6825_v37 = vpop.f32.mrf.mxu1 }
 0x107   :  { %v678_v38 = vadd.f32 %v6825_v37, %v6793_v36  ;;  %v266_v39 = vpop.f32.mrf.mxu0 }
 0x108   :  { %v613_v40 = vpop.f32.mrf.mxu1 }
 0x109   :  { %v676_v41 = vadd.f32 %v613_v40, %v266_v39  ;;  %v6794_v42 = vpop.f32.mrf.mxu0 }
 0x10a   :  { %v6826_v43 = vpop.f32.mrf.mxu1 }
 0x10b   :  { %v679_v44 = vadd.f32 %v6826_v43, %v6794_v42  ;;  %v269_v45 = vpop.f32.mrf.mxu0 }
 0x10c   :  { %v616_v46 = vpop.f32.mrf.mxu1 }
 0x10d   :  { %v677_v47 = vadd.f32 %v616_v46, %v269_v45  ;;  %v6797_v48 = vpop.f32.mrf.mxu0 }
 0x10e   :  { %v6829_v49 = vpop.f32.mrf.mxu1 }
 0x10f   :  { %v682_v50 = vadd.f32 %v6829_v49, %v6797_v48  ;;  %v282_v51 = vpop.f32.mrf.mxu0 }
 0x110   :  { %v629_v52 = vpop.f32.mrf.mxu1 }
 0x111   :  { %v680_v53 = vadd.f32 %v629_v52, %v282_v51  ;;  %v6798_v54 = vpop.f32.mrf.mxu0 }
 0x112   :  { %v6830_v55 = vpop.f32.mrf.mxu1 }
 0x113   :  { %v683_v56 = vadd.f32 %v6830_v55, %v6798_v54  ;;  %v285_v57 = vpop.f32.mrf.mxu0 }
 0x114   :  { %v632_v58 = vpop.f32.mrf.mxu1 }
 0x115   :  { %v681_v59 = vadd.f32 %v632_v58, %v285_v57  ;;  %v6801_v60 = vpop.f32.mrf.mxu0 }
 0x116   :  { %v6833_v61 = vpop.f32.mrf.mxu1 }
 0x117   :  { %v686_v62 = vadd.f32 %v6833_v61, %v6801_v60  ;;  %v298_v63 = vpop.f32.mrf.mxu0 }
 0x118   :  { %v645_v0 = vpop.f32.mrf.mxu1 }
 0x119   :  { %v684_v1 = vadd.f32 %v645_v0, %v298_v63  ;;  %v6802_v2 = vpop.f32.mrf.mxu0 }
 0x11a   :  { %v6834_v3 = vpop.f32.mrf.mxu1 }
 0x11b   :  { %v687_v4 = vadd.f32 %v6834_v3, %v6802_v2  ;;  %v301_v5 = vpop.f32.mrf.mxu0 }
 0x11c   :  { %v648_v6 = vpop.f32.mrf.mxu1 }
 0x11d   :  { %v685_v7 = vadd.f32 %v648_v6, %v301_v5  ;;  %v6805_v8 = vpop.f32.mrf.mxu0 }
 0x11e   :  { %v6837_v9 = vpop.f32.mrf.mxu1 }
 0x11f   :  { %v690_v10 = vadd.f32 %v6837_v9, %v6805_v8  ;;  %v314_v11 = vpop.f32.mrf.mxu0 }
 0x120   :  { %v661_v12 = vpop.f32.mrf.mxu1 }
 0x121   :  { %v688_v13 = vadd.f32 %v661_v12, %v314_v11  ;;  %v6806_v14 = vpop.f32.mrf.mxu0 }
 0x122   :  { %v6838_v15 = vpop.f32.mrf.mxu1 }
 0x123   :  { %v691_v16 = vadd.f32 %v6838_v15, %v6806_v14  ;;  %v317_v17 = vpop.f32.mrf.mxu0 }
 0x124   :  { %v664_v18 = vpop.f32.mrf.mxu1 }
 0x125   :  { %v689_v19 = vadd.f32 %v664_v18, %v317_v17  ;;  %v6857_v20 = vpop.f32.mrf.mxu0 }
 0x126   :  { %v7849_v21 = vadd.f32 %v6857_v20, %v678_v38  ;;  %v7851_v22 = vpop.f32.mrf.mxu1 }
 0x127   :  { %v909_v23 = vpop.f32.mrf.mxu0 }
 0x128   :  { %v7853_v24 = vadd.f32 %v909_v23, %v676_v41  ;;  %v7855_v25 = vpop.f32.mrf.mxu1 }
 0x129   :  { %v6858_v26 = vpop.f32.mrf.mxu0 }
 0x12a   :  { %v7857_v27 = vadd.f32 %v6858_v26, %v679_v44  ;;  %v7859_v28 = vpop.f32.mrf.mxu1 }
 0x12b   :  { %v912_v29 = vpop.f32.mrf.mxu0 }
 0x12c   :  { %v7861_v30 = vadd.f32 %v912_v29, %v677_v47  ;;  %v7863_v31 = vpop.f32.mrf.mxu1 }
 0x12d   :  { %v6861_v32 = vpop.f32.mrf.mxu0 }
 0x12e   :  { %v7865_v33 = vadd.f32 %v6861_v32, %v682_v50  ;;  %v7867_v34 = vpop.f32.mrf.mxu1 }
 0x12f   :  { %v925_v35 = vpop.f32.mrf.mxu0 }
 0x130   :  { %v7869_v36 = vadd.f32 %v925_v35, %v680_v53  ;;  %v7871_v37 = vpop.f32.mrf.mxu1 }
 0x131   :  { %v6862_v38 = vpop.f32.mrf.mxu0 }
 0x132   :  { %v7873_v39 = vadd.f32 %v6862_v38, %v683_v56  ;;  %v7875_v40 = vpop.f32.mrf.mxu1 }
 0x133   :  { %v928_v41 = vpop.f32.mrf.mxu0 }
 0x134   :  { %v7877_v42 = vadd.f32 %v928_v41, %v681_v59  ;;  %v7879_v43 = vpop.f32.mrf.mxu1 }
 0x135   :  { %v6865_v44 = vpop.f32.mrf.mxu0 }
 0x136   :  { %v7881_v45 = vadd.f32 %v6865_v44, %v686_v62  ;;  %v7883_v46 = vpop.f32.mrf.mxu1 }
 0x137   :  { %v941_v47 = vpop.f32.mrf.mxu0 }
 0x138   :  { %v7885_v48 = vadd.f32 %v941_v47, %v684_v1  ;;  %v7887_v49 = vpop.f32.mrf.mxu1 }
 0x139   :  { %v6866_v50 = vpop.f32.mrf.mxu0 }
 0x13a   :  { %v7889_v51 = vadd.f32 %v6866_v50, %v687_v4  ;;  %v7891_v52 = vpop.f32.mrf.mxu1 }
 0x13b   :  { %v944_v53 = vpop.f32.mrf.mxu0 }
 0x13c   :  { %v7893_v54 = vadd.f32 %v944_v53, %v685_v7  ;;  %v7895_v55 = vpop.f32.mrf.mxu1 }
 0x13d   :  { %v6869_v56 = vpop.f32.mrf.mxu0 }
 0x13e   :  { %v7897_v57 = vadd.f32 %v6869_v56, %v690_v10  ;;  %v7899_v58 = vpop.f32.mrf.mxu1 }
 0x13f   :  { %v957_v59 = vpop.f32.mrf.mxu0 }
 0x140   :  { %v7901_v60 = vadd.f32 %v957_v59, %v688_v13  ;;  %v7903_v61 = vpop.f32.mrf.mxu1 }
 0x141   :  { %8432 = vst [vmem:[#allocation24_spill] sm:$0xff] %v7903_v61  ;;  %v6870_v62 = vpop.f32.mrf.mxu0 }
 0x142   :  { %v7905_v63 = vadd.f32 %v6870_v62, %v691_v16  ;;  %v7907_v0 = vpop.f32.mrf.mxu1 }
 0x143   :  { %8434 = vst [vmem:[#allocation26_spill] sm:$0xff] %v7907_v0  ;;  %v960_v1 = vpop.f32.mrf.mxu0 }
 0x144   :  { %8433 = vst [vmem:[#allocation25_spill] sm:$0xff] %v7905_v63  ;;  %v7909_v2 = vadd.f32 %v960_v1, %v689_v19  ;;  %v7911_v3 = vpop.f32.mrf.mxu1 }
 0x145   :  { %8436 = vst [vmem:[#allocation28_spill] sm:$0xff] %v7911_v3  ;;  %v6921_v4 = vpop.f32.mrf.mxu0 }
 0x146   :  { %8435 = vst [vmem:[#allocation27_spill] sm:$0xff] %v7909_v2  ;;  %v6953_v5 = vpop.f32.mrf.mxu1 }
 0x147   :  { %v1564_v6 = vpop.f32.mrf.mxu0 }
 0x148   :  { %v1860_v7 = vpop.f32.mrf.mxu1 }
 0x149   :  { %v6922_v8 = vpop.f32.mrf.mxu0 }
 0x14a   :  { %v7913_v9 = vpop.f32.mrf.mxu1 }
 0x14b   :  { %v1567_v10 = vpop.f32.mrf.mxu0 }
 0x14c   :  { %v7915_v11 = vpop.f32.mrf.mxu1 }
 0x14d   :  { %v6925_v12 = vpop.f32.mrf.mxu0 }
 0x14e   :  { %v7917_v13 = vpop.f32.mrf.mxu1 }
 0x14f   :  { %v1580_v14 = vpop.f32.mrf.mxu0 }
 0x150   :  { %v7919_v15 = vpop.f32.mrf.mxu1 }
 0x151   :  { %v7921_v16 = vpop.f32.mrf.mxu0 }
 0x152   :  { %v7923_v17 = vpop.f32.mrf.mxu1 }
 0x153   :  { %v7925_v18 = vpop.f32.mrf.mxu0 }
 0x154   :  { %v7927_v19 = vpop.f32.mrf.mxu1 }
 0x155   :  { %8437 = vst [vmem:[#allocation29_spill] sm:$0xff] %v7927_v19  ;;  %v7929_v20 = vpop.f32.mrf.mxu0 }
 0x156   :  { %v7931_v23 = vpop.f32.mrf.mxu1 }
 0x157   :  { %8438 = vst [vmem:[#allocation30_spill] sm:$0xff] %v7931_v23  ;;  %v7933_v26 = vpop.f32.mrf.mxu0 }
 0x158   :  { %8439 = vst [vmem:[#allocation31_spill] sm:$0xff] %v7933_v26  ;;  %v7935_v29 = vpop.f32.mrf.mxu1  ;;  %v1268_v26 = vadd.f32 %v7855_v25, %v7853_v24  ;;  %v1274_v24 = vadd.f32 %v7867_v34, %v7865_v33 }
 0x159   :  { %8440 = vst [vmem:[#allocation32_spill] sm:$0xff] %v7935_v29  ;;  %v7937_v32 = vpop.f32.mrf.mxu0 }
 0x15a   :  { %8441 = vst [vmem:[#allocation33_spill] sm:$0xff] %v7937_v32  ;;  %v7939_v35 = vpop.f32.mrf.mxu1  ;;  %v1270_v32 = vadd.f32 %v7851_v22, %v7849_v21 }
 0x15b   :  { %8442 = vst [vmem:[#allocation34_spill] sm:$0xff] %v7939_v35  ;;  %v7941_v38 = vpop.f32.mrf.mxu0 }
 0x15c   :  { %8443 = vst [vmem:[#allocation35_spill] sm:$0xff] %v7941_v38  ;;  %v7943_v41 = vpop.f32.mrf.mxu1  ;;  %v1629_v19 = vadd.f32 %v6921_v4, %v1270_v32 }
 0x15d   :  { %8444 = vst [vmem:[#allocation36_spill] sm:$0xff] %v7943_v41  ;;  %v7945_v44 = vpop.f32.mrf.mxu0 }
 0x15e   :  { %8445 = vst [vmem:[#allocation37_spill] sm:$0xff] %v7945_v44  ;;  %v7947_v47 = vpop.f32.mrf.mxu1  ;;  %v1925_v21 = vadd.f32 %v6953_v5, %v1629_v19  ;;  %v1275_v5 = vadd.f32 %v7875_v40, %v7873_v39  ;;  %v1278_v40 = vadd.f32 %v7883_v46, %v7881_v45 }
 0x15f   :  { %8446 = vst [vmem:[#allocation38_spill] sm:$0xff] %v7947_v47  ;;  %v7949_v50 = vpop.f32.mrf.mxu0 }
 0x160   :  { %8447 = vst [vmem:[#allocation39_spill] sm:$0xff] %v7949_v50  ;;  %v7951_v53 = vpop.f32.mrf.mxu1 }
 0x161   :  { %8448 = vst [vmem:[#allocation40_spill] sm:$0xff] %v7951_v53  ;;  %v7953_v56 = vpop.f32.mrf.mxu0 }
 0x162   :  { %8449 = vst [vmem:[#allocation41_spill] sm:$0xff] %v7953_v56  ;;  %v7955_v59 = vpop.f32.mrf.mxu1 }
 0x163   :  { %8450 = vst [vmem:[#allocation42_spill] sm:$0xff] %v7955_v59  ;;  %v7957_v62 = vpop.f32.mrf.mxu0 }
 0x164   :  { %8451 = vst [vmem:[#allocation43_spill] sm:$0xff] %v7957_v62  ;;  %v7959_v1 = vpop.f32.mrf.mxu1 }
 0x165   :  { %8452 = vst [vmem:[#allocation44_spill] sm:$0xff] %v7959_v1  ;;  %v6985_v3 = vpop.f32.mrf.mxu0 }
 0x166   :  { %v2199_v32 = vadd.f32 %v6985_v3, %v1925_v21 }
 0x167   :  { %v2134_v2 = vpop.f32.mrf.mxu0  ;;  %v7017_v35 = vpop.f32.mrf.mxu1 }
 0x168   :  { %v2545_v34 = vadd.f32 %v7017_v35, %v2199_v32 }
 0x169   :  { %v6986_v41 = vpop.f32.mrf.mxu0  ;;  %v2480_v0 = vpop.f32.mrf.mxu1 }
 0x16b   :  { %v2137_v44 = vpop.f32.mrf.mxu0  ;;  %v7018_v63 = vpop.f32.mrf.mxu1 }
 0x16d   :  { %v6989_v47 = vpop.f32.mrf.mxu0  ;;  %v2483_v38 = vpop.f32.mrf.mxu1 }
 0x16f   :  { %v2150_v50 = vpop.f32.mrf.mxu0  ;;  %v7963_v53 = vpop.f32.mrf.mxu1 }
 0x170   :  { %8454 = vst [vmem:[#allocation46_spill] sm:$0xff] %v7963_v53 }
 0x171   :  { %v7961_v29 = vpop.f32.mrf.mxu0  ;;  %v7969_v62 = vpop.f32.mrf.mxu1 }
 0x172   :  { %8453 = vst [vmem:[#allocation45_spill] sm:$0xff] %v7961_v29  ;;  %8457 = vst [vmem:[#allocation49_spill] sm:$0xff] %v7969_v62 }
 0x173   :  { %v7965_v56 = vpop.f32.mrf.mxu0  ;;  %v7979_v29 = vpop.f32.mrf.mxu1 }
 0x174   :  { %8455 = vst [vmem:[#allocation47_spill] sm:$0xff] %v7965_v56  ;;  %v1627_v56 = vadd.f32 %v1564_v6, %v1268_v26 }
 0x175   :  { %v7967_v59 = vpop.f32.mrf.mxu0 }
 0x176   :  { %8456 = vst [vmem:[#allocation48_spill] sm:$0xff] %v7967_v59  ;;  %v1271_v59 = vadd.f32 %v7859_v28, %v7857_v27  ;;  %v1923_v25 = vadd.f32 %v1860_v7, %v1627_v56  ;;  %v1272_v27 = vadd.f32 %v7871_v37, %v7869_v36  ;;  %v1273_v36 = vadd.f32 %v7879_v43, %v7877_v42  ;;  %v8022_v42 = vld [vmem:[%s8429_s2] ss:$0 sm:$0xff] }
 0x177   :  { %v7971_v1 = vpop.f32.mrf.mxu0  ;;  %v1634_v37 = vadd.f32 %v7921_v16, %v1275_v5 }
 0x178   :  { %8458 = vst [vmem:[#allocation50_spill] sm:$0xff] %v7971_v1  ;;  %v1269_v1 = vadd.f32 %v7863_v31, %v7861_v30  ;;  %v1630_v22 = vadd.f32 %v6922_v8, %v1271_v59  ;;  %v1633_v30 = vadd.f32 %v6925_v12, %v1274_v24  ;;  %v2197_v31 = vadd.f32 %v2134_v2, %v1923_v25  ;;  %v8465_v24 = vld [vmem:[#allocation30_spill] sm:$0xff] }
 0x179   :  { %v7975_v23 = vpop.f32.mrf.mxu0  ;;  %v1631_v8 = vadd.f32 %v1580_v14, %v1272_v27  ;;  %v1276_v12 = vadd.f32 %v7887_v49, %v7885_v48  ;;  %v1632_v14 = vadd.f32 %v7925_v18, %v1273_v36  ;;  %v1277_v48 = vadd.f32 %v7895_v55, %v7893_v54  ;;  %v8463_v55 = vld [vmem:[#allocation45_spill] sm:$0xff]  ;;  %v8469_v36 = vld [vmem:[#allocation32_spill] sm:$0xff] }
 0x17a   :  { %8459 = vst [vmem:[#allocation51_spill] sm:$0xff] %v7975_v23  ;;  %v7989_v23 = vpop.f32.mrf.mxu1  ;;  %v1628_v4 = vadd.f32 %v1567_v10, %v1269_v1  ;;  %v1926_v6 = vadd.f32 %v7913_v9, %v1630_v22  ;;  %v1929_v2 = vadd.f32 %v7917_v13, %v1633_v30  ;;  %v2543_v9 = vadd.f32 %v2480_v0, %v2197_v31  ;;  %v8462_v1 = vld [vmem:[#allocation31_spill] sm:$0xff]  ;;  %v8467_v27 = vld [vmem:[#allocation49_spill] sm:$0xff] }
 0x17b   :  { %v7981_v53 = vpop.f32.mrf.mxu0  ;;  %v1279_v0 = vadd.f32 %v7891_v52, %v7889_v51  ;;  %v1930_v49 = vadd.f32 %v7923_v17, %v1634_v37  ;;  %v8460_v51 = vld [vmem:[#allocation24_spill] sm:$0xff]  ;;  %v1635_v54 = vadd.f32 %v8462_v1, %v1276_v12  ;;  %v8468_v30 = vld [vmem:[#allocation47_spill] sm:$0xff] }
 0x17c   :  { %v8002_v19 = vpop.f32.mrf.mxu1  ;;  %v1924_v33 = vadd.f32 %v7915_v11, %v1628_v4  ;;  %v2200_v3 = vadd.f32 %v6986_v41, %v1926_v6  ;;  %v1927_v11 = vadd.f32 %v7919_v15, %v1631_v8  ;;  %v2203_v45 = vadd.f32 %v6989_v47, %v1929_v2  ;;  %v8466_v4 = vld [vmem:[#allocation33_spill] sm:$0xff]  ;;  %v8478_v1 = vld [vmem:[#allocation28_spill] sm:$0xff] }
 0x17d   :  { %v7985_v62 = vpop.f32.mrf.mxu0  ;;  %v1637_v15 = vadd.f32 %v7929_v20, %v1278_v40  ;;  %v1282_v41 = vadd.f32 %v7899_v58, %v7897_v57  ;;  %v1280_v52 = vadd.f32 %v8460_v51, %v7901_v60  ;;  %v2204_v17 = vadd.f32 %v8463_v55, %v1930_v49  ;;  %v8041_v20 = vld [vmem:[%s8430_s3] ss:$0 sm:$0xff]  ;;  %v8464_v58 = vld [vmem:[#allocation46_spill] sm:$0xff] }
 0x17e   :  { %v2198_v10 = vadd.f32 %v2137_v44, %v1924_v33  ;;  %v8017_v35 = vpop.f32.mrf.mxu1  ;;  %v2546_v13 = vadd.f32 %v7018_v63, %v2200_v3  ;;  %v2201_v16 = vadd.f32 %v2150_v50, %v1927_v11  ;;  %v8461_v63 = vld [vmem:[#allocation29_spill] sm:$0xff]  ;;  %v1638_v32 = vadd.f32 %v8466_v4, %v1279_v0  ;;  %v8474_v49 = vld [vmem:[#allocation34_spill] sm:$0xff]  ;;  %v8479_v55 = vld [vmem:[#allocation36_spill] sm:$0xff] }
 0x17f   :  { %v7991_v61 = vpop.f32.mrf.mxu0  ;;  %v1928_v47 = vadd.f32 %v8461_v63, %v1632_v14  ;;  %v1933_v25 = vadd.f32 %v8465_v24, %v1637_v15  ;;  %v1931_v37 = vadd.f32 %v8469_v36, %v1635_v54  ;;  %v8482_v4 = vld [vmem:[#allocation38_spill] sm:$0xff]  ;;  %v8485_v36 = vld [vmem:[#allocation43_spill] sm:$0xff] }
 0x180   :  { %v2544_v44 = vadd.f32 %v2483_v38, %v2198_v10  ;;  %v7026_v21 = vpop.f32.mrf.mxu1  ;;  %v2549_v38 = vadd.f32 %v8464_v58, %v2203_v45  ;;  %v2547_v6 = vadd.f32 %v8467_v27, %v2201_v16  ;;  %v8471_v10 = vld [vmem:[#allocation48_spill] sm:$0xff]  ;;  %v8473_v45 = vld [vmem:[#allocation26_spill] sm:$0xff]  ;;  %v1934_v15 = vadd.f32 %v8474_v49, %v1638_v32  ;;  %v8475_v16 = vld [vmem:[#allocation37_spill] sm:$0xff] }
 0x181   :  { %v7997_v28 = vpop.f32.mrf.mxu0  ;;  %v2202_v31 = vadd.f32 %v8468_v30, %v1928_v47  ;;  %v8477_v47 = vld [vmem:[#allocation27_spill] sm:$0xff]  ;;  %v8483_v27 = vld [vmem:[#allocation41_spill] sm:$0xff] }
 0x182   :  { %v2515_v40 = vpop.f32.mrf.mxu1  ;;  %v1281_v54 = vadd.f32 %v8478_v1, %v8477_v47 }
 0x183   :  { %v8004_v26 = vpop.f32.mrf.mxu0 }
 0x185   :  { %v7049_v7 = vpop.f32.mrf.mxu0 }
 0x186   :  { %v2840_v39 = vadd.f32 %v7049_v7, %v2545_v34  ;;  %v8470_v7 = vld [vmem:[#allocation35_spill] sm:$0xff] }
 0x187   :  { %v2775_v43 = vpop.f32.mrf.mxu0  ;;  %v1636_v2 = vadd.f32 %v8470_v7, %v1277_v48  ;;  %v8476_v48 = vld [vmem:[#allocation50_spill] sm:$0xff] }
 0x188   :  { %v2838_v46 = vadd.f32 %v2775_v43, %v2543_v9  ;;  %v2895_v56 = vmul.f32 %v8022_v42, %v2840_v39  ;;  %v2550_v9 = vadd.f32 %v7979_v29, %v2204_v17  ;;  %v2207_v39 = vadd.f32 %v8471_v10, %v1933_v25 }
 0x189   :  { %v7050_v18 = vpop.f32.mrf.mxu0  ;;  %v1932_v17 = vadd.f32 %v8479_v55, %v1636_v2 }
 0x18a   :  { %v2841_v59 = vadd.f32 %v7050_v18, %v2546_v13  ;;  %v2893_v50 = vmul.f32 %v8022_v42, %v2838_v46  ;;  %v2918_v8 = vadd.f32 %v8041_v20, %v2895_v56  ;;  %v8472_v13 = vld [vmem:[#allocation25_spill] sm:$0xff]  ;;  %v1641_v18 = vadd.f32 %v8475_v16, %v1282_v41  ;;  %v7029_v41 = vpop.f32.mrf.mxu1 }
 0x18b   :  { %v2778_v57 = vpop.f32.mrf.mxu0  ;;  %v1283_v46 = vadd.f32 %v8473_v45, %v8472_v13  ;;  %v2548_v56 = vadd.f32 %v7989_v23, %v2202_v31 }
 0x18c   :  { %v2896_v22 = vmul.f32 %v8022_v42, %v2841_v59  ;;  %v2839_v60 = vadd.f32 %v2778_v57, %v2544_v44  ;;  %v2916_v11 = vadd.f32 %v8041_v20, %v2893_v50  ;;  %v2205_v44 = vadd.f32 %v8476_v48, %v1931_v37  ;;  %v8480_v57 = vld [vmem:[#allocation39_spill] sm:$0xff] }
 0x18d   :  { %v7053_v5 = vpop.f32.mrf.mxu0  ;;  %v1639_v58 = vadd.f32 %v8480_v57, %v1280_v52  ;;  %v1937_v32 = vadd.f32 %v8482_v4, %v1641_v18  ;;  %v2206_v52 = vadd.f32 %v7981_v53, %v1932_v17  ;;  %v1640_v37 = vadd.f32 %v8485_v36, %v1281_v54 }
 0x18e   :  { %v2919_v33 = vadd.f32 %v8041_v20, %v2896_v22  ;;  %v2894_v34 = vmul.f32 %v8022_v42, %v2839_v60  ;;  %v2844_v3 = vadd.f32 %v7053_v5, %v2549_v38  ;;  %v8481_v38 = vld [vmem:[#allocation51_spill] sm:$0xff]  ;;  %v2553_v60 = vadd.f32 %v8002_v19, %v2207_v39 }
 0x18f   :  { %v2791_v12 = vpop.f32.mrf.mxu0  ;;  %v2208_v50 = vadd.f32 %v8481_v38, %v1934_v15  ;;  %v2551_v30 = vadd.f32 %v8017_v35, %v2205_v44  ;;  %v2211_v2 = vadd.f32 %v7985_v62, %v1937_v32  ;;  %v2552_v13 = vadd.f32 %v2515_v40, %v2206_v52  ;;  %v8487_v62 = vld [vmem:[#allocation44_spill] sm:$0xff] }
 0x190   :  { %v6400_v14 = vpack.c.bf16 %v2919_v33, %v2918_v8  ;;  %v2917_v43 = vadd.f32 %v8041_v20, %v2894_v34  ;;  %v2842_v0 = vadd.f32 %v2791_v12, %v2547_v6  ;;  %v2899_v51 = vmul.f32 %v8022_v42, %v2844_v3  ;;  %v8484_v34 = vld [vmem:[#allocation40_spill] sm:$0xff] }
 0x191   :  { %v7054_v29 = vpop.f32.mrf.mxu0  ;;  %v1642_v6 = vadd.f32 %v8483_v27, %v1283_v46  ;;  %v1935_v3 = vadd.f32 %v8484_v34, %v1639_v58  ;;  %v2554_v7 = vadd.f32 %v7026_v21, %v2208_v50  ;;  %v1936_v49 = vadd.f32 %v8487_v62, %v1640_v37 }
 0x192   :  { %6472 = vst [vmem:[#allocation9 + $0x8] sm:$0xff] %v6400_v14   ;;  %v6395_v59 = vpack.c.bf16 %v2917_v43, %v2916_v11  ;;  %v2845_v63 = vadd.f32 %v7054_v29, %v2550_v9  ;;  %v2897_v23 = vmul.f32 %v8022_v42, %v2842_v0  ;;  %v2922_v5 = vadd.f32 %v8041_v20, %v2899_v51  ;;  %v2528_v9 = vpop.f32.mrf.mxu1  ;;  %v8486_v11 = vld [vmem:[#allocation42_spill] sm:$0xff] }
 0x193   :  { %v2794_v22 = vpop.f32.mrf.mxu0  ;;  %v1938_v14 = vadd.f32 %v8486_v11, %v1642_v6  ;;  %v2209_v43 = vadd.f32 %v7991_v61, %v1935_v3  ;;  %v2557_v48 = vadd.f32 %v7029_v41, %v2211_v2  ;;  %v2210_v40 = vadd.f32 %v8004_v26, %v1936_v49 }
 0x194   :  { %6396 = vst [vmem:[#allocation9] sm:$0xff] %v6395_v59   ;;  %v2900_v24 = vmul.f32 %v8022_v42, %v2845_v63  ;;  %v2843_v25 = vadd.f32 %v2794_v22, %v2548_v56  ;;  %v2920_v35 = vadd.f32 %v8041_v20, %v2897_v23  ;;  %v7030_v16 = vpop.f32.mrf.mxu1 }
 0x195   :  { %v7057_v31 = vpop.f32.mrf.mxu0  ;;  %v2212_v15 = vadd.f32 %v7997_v28, %v1938_v14  ;;  %v2555_v56 = vadd.f32 %v2528_v9, %v2209_v43 }
 0x196   :  { %v2923_v8 = vadd.f32 %v8041_v20, %v2900_v24  ;;  %v2898_v19 = vmul.f32 %v8022_v42, %v2843_v25  ;;  %v2848_v33 = vadd.f32 %v7057_v31, %v2553_v60  ;;  %v2531_v54 = vpop.f32.mrf.mxu1 }
 0x197   :  { %v2807_v10 = vpop.f32.mrf.mxu0  ;;  %v2558_v1 = vadd.f32 %v7030_v16, %v2212_v15  ;;  %v2556_v41 = vadd.f32 %v2531_v54, %v2210_v40 }
 0x198   :  { %v6410_v53 = vpack.c.bf16 %v2923_v8, %v2922_v5  ;;  %v2921_v39 = vadd.f32 %v8041_v20, %v2898_v19  ;;  %v2846_v12 = vadd.f32 %v2807_v10, %v2551_v30  ;;  %v2903_v21 = vmul.f32 %v8022_v42, %v2848_v33 }
 0x199   :  { %v7058_v0 = vpop.f32.mrf.mxu0 }
 0x19a   :  { %6474 = vst [vmem:[#allocation9 + $0x18] sm:$0xff] %v6410_v53   ;;  %v6405_v45 = vpack.c.bf16 %v2921_v39, %v2920_v35  ;;  %v2849_v46 = vadd.f32 %v7058_v0, %v2554_v7  ;;  %v2901_v44 = vmul.f32 %v8022_v42, %v2846_v12  ;;  %v2926_v51 = vadd.f32 %v8041_v20, %v2903_v21 }
 0x19b   :  { %v2810_v18 = vpop.f32.mrf.mxu0 }
 0x19c   :  { %6473 = vst [vmem:[#allocation9 + $0x10] sm:$0xff] %v6405_v45   ;;  %v2904_v29 = vmul.f32 %v8022_v42, %v2849_v46  ;;  %v2847_v61 = vadd.f32 %v2810_v18, %v2552_v13  ;;  %v2924_v17 = vadd.f32 %v8041_v20, %v2901_v44 }
 0x19d   :  { %v7061_v59 = vpop.f32.mrf.mxu0 }
 0x19e   :  { %v2927_v63 = vadd.f32 %v8041_v20, %v2904_v29  ;;  %v2902_v47 = vmul.f32 %v8022_v42, %v2847_v61  ;;  %v2852_v28 = vadd.f32 %v7061_v59, %v2557_v48 }
 0x19f   :  { %v2823_v55 = vpop.f32.mrf.mxu0 }
 0x1a0   :  { %v6420_v57 = vpack.c.bf16 %v2927_v63, %v2926_v51  ;;  %v2925_v58 = vadd.f32 %v8041_v20, %v2902_v47  ;;  %v2850_v38 = vadd.f32 %v2823_v55, %v2555_v56  ;;  %v2907_v22 = vmul.f32 %v8022_v42, %v2852_v28 }
 0x1a1   :  { %v7062_v50 = vpop.f32.mrf.mxu0 }
 0x1a2   :  { %6476 = vst [vmem:[#allocation9 + $0x28] sm:$0xff] %v6420_v57   ;;  %v6415_v26 = vpack.c.bf16 %v2925_v58, %v2924_v17  ;;  %v2853_v60 = vadd.f32 %v7062_v50, %v2558_v1  ;;  %v2905_v24 = vmul.f32 %v8022_v42, %v2850_v38  ;;  %v2930_v32 = vadd.f32 %v8041_v20, %v2907_v22 }
 0x1a3   :  { %v2826_v23 = vpop.f32.mrf.mxu0 }
 0x1a4   :  { %6475 = vst [vmem:[#allocation9 + $0x20] sm:$0xff] %v6415_v26   ;;  %v2908_v25 = vmul.f32 %v8022_v42, %v2853_v60  ;;  %v2851_v4 = vadd.f32 %v2826_v23, %v2556_v41  ;;  %v2928_v30 = vadd.f32 %v8041_v20, %v2905_v24 }
 0x1a6   :  { %v2931_v27 = vadd.f32 %v8041_v20, %v2908_v25  ;;  %v2906_v6 = vmul.f32 %v8022_v42, %v2851_v4 }
 0x1a8   :  { %v6430_v52 = vpack.c.bf16 %v2931_v27, %v2930_v32  ;;  %v2929_v31 = vadd.f32 %v8041_v20, %v2906_v6 }
 0x1aa   :  { %6478 = vst [vmem:[#allocation9 + $0x38] sm:$0xff] %v6430_v52   ;;  %v6425_v5 = vpack.c.bf16 %v2929_v31, %v2928_v30 }
 0x1ac   :  { %6477 = vst [vmem:[#allocation9 + $0x30] sm:$0xff] %v6425_v5  }
 0x1ad   :  { %7746 = dma.done.wait [#allocation4 + $0x1], 1280 }
 0x1ae   :  { %7747 = vsyncadd [#allocation4 + $0x1], 4294966016  ;;  %v7508_v8 = vld [vmem:[#allocation6 + $0x38] sm:$0xff]   ;;  %v7510_v33 = vld [vmem:[#allocation6 + $0x30] sm:$0xff]  }
 0x1af   :  { %v7509_v19 = vld [vmem:[#allocation6 + $0x78] sm:$0xff]   ;;  %7063 = vmatprep.subr.bf16.mxu1 %v7508_v8  ;;  %v7511_v34 = vld [vmem:[#allocation6 + $0x70] sm:$0xff]   ;;  %v7512_v42 = vld [vmem:[#allocation6 + $0x28] sm:$0xff]  }
 0x1b0   :  { %7095 = vmatprep.subr.bf16.mxu0 %v7509_v19  ;;  %7064 = vmatpush3.bf16.msra.mxu1 %v7508_v8  ;;  %v7513_v3 = vld [vmem:[#allocation6 + $0x68] sm:$0xff]   ;;  %v7514_v20 = vld [vmem:[#allocation6 + $0x20] sm:$0xff]   ;;  %v7516_v37 = vld [vmem:[#allocation6 + $0x18] sm:$0xff]  }
 0x1b1   :  { %7096 = vmatpush3.bf16.msra.mxu0 %v7509_v19  ;;  %7065 = vmatprep.subr.bf16.mxu1 %v7510_v33  ;;  %v7515_v36 = vld [vmem:[#allocation6 + $0x60] sm:$0xff]   ;;  %v7517_v7 = vld [vmem:[#allocation6 + $0x58] sm:$0xff]   ;;  %v7518_v2 = vld [vmem:[#allocation6 + $0x10] sm:$0xff]  }
 0x1b2   :  { %7097 = vmatprep.subr.bf16.mxu0 %v7511_v34  ;;  %v7519_v9 = vld [vmem:[#allocation6 + $0x50] sm:$0xff]   ;;  %v7526_v53 = vld [vmem:[#allocation3 + $0x8] sm:$0xff]   ;;  %v7520_v39 = vld [vmem:[#allocation6 + $0x8] sm:$0xff]  }
 0x1b3   :  { %v7524_v10 = vld [vmem:[#allocation3] sm:$0xff]   ;;  %v3425_v14 = vshll.u32 %v7526_v53, 16  ;;  %v7528_v43 = vld [vmem:[#allocation3 + $0x10] sm:$0xff]   ;;  %v7521_v0 = vld [vmem:[#allocation6 + $0x48] sm:$0xff]   ;;  %v3429_v62 = vshrl.u32 %v7526_v53, 16 }
 0x1b4   :  { %7066 = vmatpush3.bf16.msra.mxu1 %v7510_v33  ;;  %7079 = vmatprep.mubr.bf16.mxu1 %v7524_v10  ;;  %v7525_v35 = vld [vmem:[#allocation3] sm:$0xff]   ;;  %v7522_v13 = vld [vmem:[#allocation6] sm:$0xff]   ;;  %v3433_v49 = vshll.u32 %v7528_v43, 16  ;;  %v7534_v18 = vld [vmem:[#allocation3 + $0x18] sm:$0xff]   ;;  %v3437_v48 = vshrl.u32 %v7528_v43, 16 }
 0x1b5   :  { %7098 = vmatpush3.bf16.msra.mxu0 %v7511_v34  ;;  %7067 = vmatprep.subr.bf16.mxu1 %v7512_v42  ;;  %v3418_v12 = vshrl.u32 %v7525_v35, 16  ;;  %v3420_v11 = vshll.u32 %v7525_v35, 16  ;;  %v3427_v21 = vrot.slane %v3425_v14, 1  ;;  %v7523_v15 = vld [vmem:[#allocation6 + $0x40] sm:$0xff]   ;;  %v7527_v44 = vld [vmem:[#allocation3 + $0x8] sm:$0xff]   ;;  %v3441_v59 = vshll.u32 %v7534_v18, 16 }
 0x1b6   :  { %7099 = vmatprep.subr.bf16.mxu0 %v7513_v3  ;;  %v3435_v61 = vrot.slane %v3433_v49, 1  ;;  %v7529_v56 = vld [vmem:[#allocation6 + $0xb8] sm:$0xff]   ;;  %v7536_v51 = vld [vmem:[#allocation3 + $0x20] sm:$0xff]   ;;  %v3445_v54 = vshrl.u32 %v7534_v18, 16  ;;  %v7533_v57 = vld [vmem:[#allocation3 + $0x10] sm:$0xff]  }
 0x1b7   :  { %v3422_v45 = vrot.slane %v3420_v11, 1  ;;  %v3431_v29 = vor.u32 %v3429_v62, %v3427_v21  ;;  %v7530_v40 = vld [vmem:[#allocation6 + $0xf8] sm:$0xff]   ;;  %v7531_v63 = vld [vmem:[#allocation6 + $0xb0] sm:$0xff]   ;;  %v3443_v1 = vrot.slane %v3441_v59, 1  ;;  %v3449_v55 = vshll.u32 %v7536_v51, 16  ;;  %v7535_v41 = vld [vmem:[#allocation3 + $0x18] sm:$0xff]  }
 0x1b8   :  { %7068 = vmatpush3.bf16.msra.mxu1 %v7512_v42  ;;  %v7532_v47 = vld [vmem:[#allocation6 + $0xf0] sm:$0xff]   ;;  %v3439_v28 = vor.u32 %v3437_v48, %v3435_v61  ;;  %v7542_v38 = vld [vmem:[#allocation3 + $0x28] sm:$0xff]   ;;  %v3453_v50 = vshrl.u32 %v7536_v51, 16  ;;  %v7537_v60 = vld [vmem:[#allocation6 + $0xa8] sm:$0xff]  }
 0x1b9   :  { %7100 = vmatpush3.bf16.msra.mxu0 %v7513_v3  ;;  %7069 = vmatprep.subr.bf16.mxu1 %v7514_v20  ;;  %v3423_v46 = vor.u32 %v3422_v45, %v3418_v12  ;;  %v3436_v17 = vsel %vm454_vm0, %v3431_v29, %v3435_v61  ;;  %v3447_v26 = vor.u32 %v3445_v54, %v3443_v1  ;;  %v3451_v22 = vrot.slane %v3449_v55, 1  ;;  %v7538_v23 = vld [vmem:[#allocation6 + $0xe8] sm:$0xff]   ;;  %v7544_v25 = vld [vmem:[#allocation3 + $0x30] sm:$0xff]   ;;  %v7541_v5 = vld [vmem:[#allocation3 + $0x20] sm:$0xff]  }
 0x1ba   :  { %7101 = vmatprep.subr.bf16.mxu0 %v7515_v36  ;;  %v3444_v58 = vsel %vm454_vm0, %v3439_v28, %v3443_v1  ;;  %v3457_v24 = vshll.u32 %v7542_v38, 16  ;;  %v7539_v4 = vld [vmem:[#allocation6 + $0xa0] sm:$0xff]   ;;  %v3461_v30 = vshrl.u32 %v7542_v38, 16  ;;  %v3465_v52 = vshll.u32 %v7544_v25, 16  ;;  %v7550_v19 = vld [vmem:[#allocation3 + $0x38] sm:$0xff]   ;;  %v7545_v3 = vld [vmem:[#allocation6 + $0x98] sm:$0xff]  }
 0x1bb   :  { %v3428_v16 = vsel %vm454_vm0, %v3423_v46, %v3427_v21  ;;  %v7540_v32 = vld [vmem:[#allocation6 + $0xe0] sm:$0xff]   ;;  %v3455_v27 = vor.u32 %v3453_v50, %v3451_v22  ;;  %v3452_v31 = vsel %vm454_vm0, %v3447_v26, %v3451_v22  ;;  %v3469_v33 = vshrl.u32 %v7544_v25, 16  ;;  %v7553_v14 = vld [vmem:[#allocation6 + $0x88] sm:$0xff]   ;;  %v7564_v55 = vld [vmem:[#allocation6 + $0x178] sm:$0xff]  }
 0x1bc   :  { %7070 = vmatpush3.bf16.msra.mxu1 %v7514_v20  ;;  %7111 = vmatprep.mubr.bf16.mxu0 %v3428_v16  ;;  %v3459_v6 = vrot.slane %v3457_v24, 1  ;;  %v3467_v42 = vrot.slane %v3465_v52, 1  ;;  %v7543_v20 = vld [vmem:[#allocation3 + $0x28] sm:$0xff]   ;;  %v3477_v53 = vshrl.u32 %v7550_v19, 16  ;;  %v7549_v11 = vld [vmem:[#allocation3 + $0x30] sm:$0xff]   ;;  %v7551_v45 = vld [vmem:[#allocation3 + $0x38] sm:$0xff]  }
 0x1bd   :  { %7102 = vmatpush3.bf16.msra.mxu0 %v7515_v36  ;;  %7071 = vmatprep.subr.bf16.mxu1 %v7516_v37  ;;  %v7546_v36 = vld [vmem:[#allocation6 + $0xd8] sm:$0xff]   ;;  %v7554_v62 = vld [vmem:[#allocation6 + $0xc8] sm:$0xff]   ;;  %v7559_v49 = vld [vmem:[#allocation3 + $0x10] sm:$0xff]  }
 0x1be   :  { %7103 = vmatprep.subr.bf16.mxu0 %v7517_v7  ;;  %v3460_v8 = vsel %vm454_vm0, %v3455_v27, %v3459_v6  ;;  %v3463_v34 = vor.u32 %v3461_v30, %v3459_v6  ;;  %v3471_v10 = vor.u32 %v3469_v33, %v3467_v42  ;;  %v7555_v16 = vld [vmem:[#allocation6 + $0x80] sm:$0xff]   ;;  %v7567_v54 = vld [vmem:[#allocation3 + $0x18] sm:$0xff]   ;;  %v7571_v26 = vld [vmem:[#allocation3 + $0x24] sm:$0xff]  }
 0x1bf   :  { %v7570_v50 = vld [vmem:[#allocation3 + $0x1c] sm:$0xff]   ;;  %v7575_v27 = vld [vmem:[#allocation3 + $0x28] sm:$0xff]   ;;  %v7573_v30 = vld [vmem:[#allocation6 + $0x120] sm:$0xff]  }
 0x1c0   :  { %7072 = vmatpush3.bf16.msra.mxu1 %v7516_v37  ;;  %v3473_v37 = vshll.u32 %v7550_v19, 16  ;;  %v3468_v12 = vsel %vm454_vm0, %v3463_v34, %v3467_v42  ;;  %v7566_v22 = vld [vmem:[#allocation6 + $0x170] sm:$0xff]   ;;  %v7569_v25 = vld [vmem:[#allocation6 + $0x128] sm:$0xff]   ;;  %v3771_v52 = vrot.slane %v7575_v27, 1  ;;  %v7574_v34 = vld [vmem:[#allocation6 + $0x160] sm:$0xff]  }
 0x1c1   :  { %7104 = vmatpush3.bf16.msra.mxu0 %v7517_v7  ;;  %7073 = vmatprep.subr.bf16.mxu1 %v7518_v2  ;;  %v7552_v7 = vld [vmem:[#allocation3 + $0x40] ss:$0 sps:$4 sm:$0x11]   ;;  %v7572_v6 = vld [vmem:[#allocation6 + $0x168] sm:$0xff]  }
 0x1c2   :  { %7105 = vmatprep.subr.bf16.mxu0 %v7519_v9  ;;  %v3475_v35 = vrot.slane %v3473_v37, 1  ;;  %v7579_v33 = vld [vmem:[#allocation3 + $0x34] sm:$0xff]   ;;  %v7599_v27 = vld [vmem:[#allocation6 + $0x1b0] sm:$0xff]  }
 0x1c4   :  { %7074 = vmatpush3.bf16.msra.mxu1 %v7518_v2  ;;  %v7547_v2 = vld [vmem:[#allocation6 + $0x90] sm:$0xff]   ;;  %v3476_v43 = vsel %vm454_vm0, %v3471_v10, %v3475_v35  ;;  %v3479_v21 = vor.u32 %v3477_v53, %v3475_v35 }
 0x1c5   :  { %7106 = vmatpush3.bf16.msra.mxu0 %v7519_v9  ;;  %7075 = vmatprep.subr.bf16.mxu1 %v7520_v39  ;;  %v7548_v9 = vld [vmem:[#allocation6 + $0xd0] sm:$0xff]  }
 0x1c6   :  { %7107 = vmatprep.subr.bf16.mxu0 %v7521_v0  ;;  %v7584_v10 = vld [vmem:[#allocation3 + $0x40] ss:$0 sps:$4 sm:$0x11]  }
 0x1c7   :  { %v7581_v35 = vld [vmem:[#allocation6 + $0x110] sm:$0xff]  }
 0x1c8   :  { %7076 = vmatpush3.bf16.msra.mxu1 %v7520_v39  ;;  %v3481_v39 = vshll.u32 %v7552_v7, 16  ;;  %v4067_v7 = vrot.slane %v7579_v33, 2 }
 0x1c9   :  { %7108 = vmatpush3.bf16.msra.mxu0 %v7521_v0  ;;  %7077 = vmatprep.subr.bf16.mxu1 %v7522_v13  ;;  %v7557_v0 = vld [vmem:[#allocation3] sm:$0xfe]  }
 0x1ca   :  { %7109 = vmatprep.subr.bf16.mxu0 %v7523_v15  ;;  %v3483_v46 = vrot.slane %v3481_v39, 1  ;;  %v3762_v18 = vrot.slane %v7557_v0, 1  ;;  %v7586_v39 = vld [vmem:[#allocation3 + $0x3c] sm:$0xff]   ;;  %v7587_v0 = vld [vmem:[#allocation3 + $0x44] ss:$0 sps:$4 sm:$0x33]  }
 0x1cc   :  { %7078 = vmatpush3.bf16.msra.mxu1 %v7522_v13  ;;  %v7558_v13 = vld [vmem:[#allocation3 + $0x8] sm:$0xff]   ;;  %v3484_v29 = vsel %vm454_vm0, %v3479_v21, %v3483_v46  ;;  %v7585_v21 = vld [vmem:[#allocation6 + $0x108] sm:$0xff]  }
 0x1cd   :  { %7110 = vmatpush3.bf16.msra.mxu0 %v7523_v15  ;;  %7127 = vmatprep.subr.bf16.mxu1 %v7529_v56  ;;  %v7562_v15 = vld [vmem:[#allocation3 + $0xc] sm:$0xff]   ;;  %v3763_v48 = vrot.slane %v7558_v13, 1 }
 0x1ce   :  { %7159 = vmatprep.subr.bf16.mxu0 %v7530_v40  ;;  %v4057_v61 = vrot.slane %v7562_v15, 2  ;;  %v7591_v15 = vld [vmem:[#allocation3 + $0x4] sm:$0xfc]  }
 0x1cf   :  { %7080 = vmatmul.mubr.bf16.vlgmr.msra.gmra.mxu1 %v7527_v44  ;;  %v7561_v44 = vld [vmem:[#allocation3 + $0x4] sm:$0xfc]   ;;  %v3764_v51 = vsel %vm801_vm1, %v3762_v18, %v3763_v48 }
 0x1d0   :  { %7112 = vmatmul.mubr.bf16.vlgmr.msra.gmra.mxu0 %v3436_v17  ;;  %7128 = vmatpush3.bf16.msra.mxu1 %v7529_v56  ;;  %v7563_v56 = vld [vmem:[#allocation3 + $0x14] sm:$0xff]   ;;  %v4056_v59 = vrot.slane %v7561_v44, 2  ;;  %v7565_v17 = vld [vmem:[#allocation6 + $0x130] sm:$0xff]  }
 0x1d1   :  { %7160 = vmatpush3.bf16.msra.mxu0 %v7530_v40  ;;  %7129 = vmatprep.subr.bf16.mxu1 %v7531_v63  ;;  %v7556_v40 = vld [vmem:[#allocation6 + $0xc0] sm:$0xff]   ;;  %v4059_v1 = vrot.slane %v7563_v56, 2 }
 0x1d2   :  { %7161 = vmatprep.subr.bf16.mxu0 %v7532_v47  ;;  %7083 = vmatprep.mubr.bf16.mxu1 %v7533_v57  ;;  %v4058_v28 = vsel %vm1097_vm2, %v4056_v59, %v4057_v61  ;;  %v3767_v57 = vrot.slane %v7567_v54, 1  ;;  %v7593_v44 = vld [vmem:[#allocation3 + $0x14] sm:$0xff]  }
 0x1d3   :  { %7115 = vmatprep.mubr.bf16.mxu0 %v3444_v58  ;;  %v7568_v58 = vld [vmem:[#allocation3 + $0x20] sm:$0xff]  }
 0x1d4   :  { %7130 = vmatpush3.bf16.msra.mxu1 %v7531_v63  ;;  %v3765_v63 = vrot.slane %v7559_v49, 1  ;;  %v3769_v24 = vrot.slane %v7568_v58, 1  ;;  %v7588_v49 = vld [vmem:[#allocation6 + $0x148] sm:$0xff]  }
 0x1d5   :  { %7162 = vmatpush3.bf16.msra.mxu0 %v7532_v47  ;;  %7131 = vmatprep.subr.bf16.mxu1 %v7537_v60  ;;  %v7560_v47 = vld [vmem:[#allocation6 + $0x138] sm:$0xff]  }
 0x1d6   :  { %7163 = vmatprep.subr.bf16.mxu0 %v7538_v23  ;;  %v3766_v38 = vsel %vm801_vm1, %v3763_v48, %v3765_v63  ;;  %v7589_v48 = vld [vmem:[#allocation6 + $0x100] sm:$0xff]  }
 0x1d7   :  { %7084 = vmatmul.mubr.bf16.gmra.mxu1 %v7535_v41  ;;  %v4060_v41 = vsel %vm1097_vm2, %v4057_v61, %v4059_v1  ;;  %v4354_v61 = vshll.u32 %v7591_v15, 16 }
 0x1d8   :  { %7116 = vmatmul.mubr.bf16.gmra.mxu0 %v3452_v31  ;;  %7132 = vmatpush3.bf16.msra.mxu1 %v7537_v60  ;;  %v4061_v60 = vrot.slane %v7570_v50, 2  ;;  %v7576_v31 = vld [vmem:[#allocation3 + $0x30] sm:$0xff]  }
 0x1d9   :  { %7164 = vmatpush3.bf16.msra.mxu0 %v7538_v23  ;;  %7133 = vmatprep.subr.bf16.mxu1 %v7539_v4  ;;  %v3768_v23 = vsel %vm801_vm1, %v3765_v63, %v3767_v57  ;;  %v4368_v63 = vshrl.u32 %v7593_v44, 16  ;;  %v4356_v54 = vrot.slane %v4354_v61, 3 }
 0x1da   :  { %7165 = vmatprep.subr.bf16.mxu0 %v7540_v32  ;;  %7087 = vmatprep.mubr.bf16.mxu1 %v7541_v5  ;;  %v3770_v5 = vsel %vm801_vm1, %v3767_v57, %v3769_v24 }
 0x1db   :  { %7119 = vmatprep.mubr.bf16.mxu0 %v3460_v8  ;;  %v7578_v8 = vld [vmem:[#allocation3 + $0x2c] sm:$0xff]   ;;  %v4370_v57 = vrot.slane %v4368_v63, 2 }
 0x1dc   :  { %7134 = vmatpush3.bf16.msra.mxu1 %v7539_v4  ;;  %v4062_v4 = vsel %vm1097_vm2, %v4059_v1, %v4061_v60  ;;  %v4065_v42 = vrot.slane %v7578_v8, 2  ;;  %v7602_v8 = vld [vmem:[#allocation3 + $0x24] sm:$0xff]  }
 0x1dd   :  { %7166 = vmatpush3.bf16.msra.mxu0 %v7540_v32  ;;  %7135 = vmatprep.subr.bf16.mxu1 %v7545_v3  ;;  %v4063_v32 = vrot.slane %v7571_v26, 2  ;;  %v7595_v26 = vld [vmem:[#allocation3 + $0x4] sm:$0xf8]  }
 0x1de   :  { %7167 = vmatprep.subr.bf16.mxu0 %v7546_v36 }
 0x1df   :  { %7088 = vmatmul.mubr.bf16.gmra.mxu1 %v7543_v20  ;;  %v4064_v19 = vsel %vm1097_vm2, %v4061_v60, %v4063_v32  ;;  %v3773_v20 = vrot.slane %v7576_v31, 1  ;;  %v4066_v37 = vsel %vm1097_vm2, %v4063_v32, %v4065_v42  ;;  %v7597_v60 = vld [vmem:[#allocation3 + $0x14] sm:$0xff]   ;;  %v7598_v32 = vld [vmem:[#allocation6 + $0x1f8] sm:$0xff]  }
 0x1e0   :  { %7120 = vmatmul.mubr.bf16.gmra.mxu0 %v3468_v12  ;;  %7136 = vmatpush3.bf16.msra.mxu1 %v7545_v3  ;;  %v3772_v3 = vsel %vm801_vm1, %v3769_v24, %v3771_v52 }
 0x1e1   :  { %7168 = vmatpush3.bf16.msra.mxu0 %v7546_v36  ;;  %7137 = vmatprep.subr.bf16.mxu1 %v7547_v2  ;;  %v7577_v36 = vld [vmem:[#allocation6 + $0x118] sm:$0xff]   ;;  %v3774_v12 = vsel %vm801_vm1, %v3771_v52, %v3773_v20  ;;  %v7600_v52 = vld [vmem:[#allocation6 + $0x1f0] sm:$0xff]  }
 0x1e2   :  { %7169 = vmatprep.subr.bf16.mxu0 %v7548_v9  ;;  %7091 = vmatprep.mubr.bf16.mxu1 %v7549_v11  ;;  %v7582_v11 = vld [vmem:[#allocation6 + $0x150] sm:$0xff]  }
 0x1e3   :  { %7123 = vmatprep.mubr.bf16.mxu0 %v3476_v43  ;;  %v4069_v43 = vrot.slane %v7586_v39, 2 }
 0x1e4   :  { %7138 = vmatpush3.bf16.msra.mxu1 %v7547_v2  ;;  %v7583_v2 = vld [vmem:[#allocation3 + $0x38] sm:$0xff]  }
 0x1e5   :  { %7170 = vmatpush3.bf16.msra.mxu0 %v7548_v9  ;;  %7139 = vmatprep.subr.bf16.mxu1 %v7553_v14  ;;  %v7580_v9 = vld [vmem:[#allocation6 + $0x158] sm:$0xff]   ;;  %v3775_v53 = vrot.slane %v7583_v2, 1  ;;  %v4070_v46 = vsel %vm1097_vm2, %v4067_v7, %v4069_v43 }
 0x1e6   :  { %7171 = vmatprep.subr.bf16.mxu0 %v7554_v62  ;;  %v7605_v2 = vld [vmem:[#allocation3 + $0x24] sm:$0xff]  }
 0x1e7   :  { %7092 = vmatmul.mubr.bf16.gmra.mxu1 %v7551_v45  ;;  %v3776_v13 = vsel %vm801_vm1, %v3773_v20, %v3775_v53  ;;  %v3777_v45 = vrot.slane %v7584_v10, 1  ;;  %v4389_v20 = vshll.u32 %v7602_v8, 16  ;;  %v4714_v39 = vrot.slane %v7605_v2, 3  ;;  %v7629_v2 = vld [vmem:[#allocation3 + $0x14] sm:$0xff]  }
 0x1e8   :  { %7124 = vmatmul.mubr.bf16.gmra.mxu0 %v3484_v29  ;;  %7140 = vmatpush3.bf16.msra.mxu1 %v7553_v14  ;;  %v4068_v14 = vsel %vm1097_vm2, %v4065_v42, %v4067_v7  ;;  %v4351_v29 = vshrl.u32 %v7591_v15, 16  ;;  %v7604_v42 = vld [vmem:[#allocation3 + $0x1c] sm:$0xff]   ;;  %v7611_v15 = vld [vmem:[#allocation6 + $0x198] sm:$0xff]  }
 0x1e9   :  { %7172 = vmatpush3.bf16.msra.mxu0 %v7554_v62  ;;  %7141 = vmatprep.subr.bf16.mxu1 %v7555_v16  ;;  %v4071_v62 = vrot.slane %v7587_v0, 2  ;;  %v3778_v18 = vsel %vm801_vm1, %v3775_v53, %v3777_v45  ;;  %v4712_v7 = vrot.slane %v7604_v42, 3  ;;  %v4391_v10 = vrot.slane %v4389_v20, 3 }
 0x1ea   :  { %7173 = vmatprep.subr.bf16.mxu0 %v7556_v40  ;;  %7143 = vmatprep.mubr.bf16.mxu1 %v3764_v51  ;;  %v7590_v51 = vld [vmem:[#allocation6 + $0x140] sm:$0xff]   ;;  %v4353_v1 = vrot.slane %v4351_v29, 2 }
 0x1eb   :  { %7175 = vmatprep.mubr.bf16.mxu0 %v4058_v28  ;;  %v4072_v59 = vsel %vm1097_vm2, %v4069_v43, %v4071_v62  ;;  %v7596_v28 = vld [vmem:[#allocation3 + $0xc] sm:$0xff]   ;;  %v4715_v0 = vsel %vm1752_vm4, %v4712_v7, %v4714_v39 }
 0x1ec   :  { %7142 = vmatpush3.bf16.msra.mxu1 %v7555_v16  ;;  %v7592_v16 = vld [vmem:[#allocation3 + $0xc] sm:$0xff]   ;;  %v4357_v50 = vor.u32 %v4356_v54, %v4353_v1  ;;  %v7615_v54 = vld [vmem:[#allocation6 + $0x190] sm:$0xff]  }
 0x1ed   :  { %7174 = vmatpush3.bf16.msra.mxu0 %v7556_v40  ;;  %7191 = vmatprep.subr.bf16.mxu1 %v7560_v47  ;;  %v4359_v56 = vshrl.u32 %v7592_v16, 16  ;;  %v4362_v40 = vshll.u32 %v7592_v16, 16  ;;  %v7612_v16 = vld [vmem:[#allocation3 + $0x2c] sm:$0xff]  }
 0x1ee   :  { %7223 = vmatprep.subr.bf16.mxu0 %v7564_v55  ;;  %v4716_v61 = vrot.slane %v7612_v16, 3  ;;  %v7636_v16 = vld [vmem:[#allocation3 + $0x2c] sm:$0xff]  }
 0x1ef   :  { %7144 = vmatmul.mubr.bf16.vlgmr.msra.gmra.mxu1 %v3766_v38  ;;  %v7594_v38 = vld [vmem:[#allocation6 + $0x1b8] sm:$0xff]  }
 0x1f0   :  { %7192 = vmatpush3.bf16.msra.mxu1 %v7560_v47  ;;  %7176 = vmatmul.mubr.bf16.vlgmr.msra.gmra.mxu0 %v4060_v41  ;;  %v4371_v47 = vshll.u32 %v7593_v44, 16  ;;  %v4717_v63 = vsel %vm1752_vm4, %v4714_v39, %v4716_v61  ;;  %v5282_v39 = vshll.u32 %v7629_v2, 16 }
 0x1f1   :  { %7224 = vmatpush3.bf16.msra.mxu0 %v7564_v55  ;;  %7193 = vmatprep.subr.bf16.mxu1 %v7565_v17  ;;  %v4361_v55 = vrot.slane %v4359_v56, 2  ;;  %v7613_v56 = vld [vmem:[#allocation3 + $0x34] sm:$0xff]  }
 0x1f2   :  { %7225 = vmatprep.subr.bf16.mxu0 %v7566_v22  ;;  %7147 = vmatprep.mubr.bf16.mxu1 %v3768_v23  ;;  %v4373_v58 = vrot.slane %v4371_v47, 3  ;;  %v4718_v47 = vrot.slane %v7613_v56, 3  ;;  %v5306_v56 = vshll.u32 %v7636_v16, 16 }
 0x1f3   :  { %7179 = vmatprep.mubr.bf16.mxu0 %v4062_v4  ;;  %v4710_v4 = vrot.slane %v7597_v60, 3 }
 0x1f4   :  { %7194 = vmatpush3.bf16.msra.mxu1 %v7565_v17  ;;  %v4364_v17 = vrot.slane %v4362_v40, 3  ;;  %v4374_v23 = vor.u32 %v4373_v58, %v4370_v57  ;;  %v7616_v57 = vld [vmem:[#allocation6 + $0x1d0] sm:$0xff]  }
 0x1f5   :  { %7226 = vmatpush3.bf16.msra.mxu0 %v7566_v22  ;;  %7195 = vmatprep.subr.bf16.mxu1 %v7569_v25  ;;  %v4708_v22 = vrot.slane %v7596_v28, 3  ;;  %v4713_v53 = vsel %vm1752_vm4, %v4710_v4, %v4712_v7  ;;  %v7614_v28 = vld [vmem:[#allocation6 + $0x1d8] sm:$0xff]  }
 0x1f6   :  { %7227 = vmatprep.subr.bf16.mxu0 %v7572_v6  ;;  %v4365_v41 = vor.u32 %v4364_v17, %v4361_v55  ;;  %v4719_v17 = vsel %vm1752_vm4, %v4716_v61, %v4718_v47  ;;  %v7628_v7 = vld [vmem:[#allocation3 + $0xc] sm:$0xff]  }
 0x1f7   :  { %7148 = vmatmul.mubr.bf16.gmra.mxu1 %v3770_v5  ;;  %v4711_v31 = vsel %vm1752_vm4, %v4708_v22, %v4710_v4  ;;  %v7601_v5 = vld [vmem:[#allocation3 + $0x1c] sm:$0xff]  }
 0x1f8   :  { %7196 = vmatpush3.bf16.msra.mxu1 %v7569_v25  ;;  %7180 = vmatmul.mubr.bf16.gmra.mxu0 %v4064_v19  ;;  %v4366_v24 = vsel %vm1393_vm3, %v4357_v50, %v4365_v41  ;;  %v4707_v25 = vrot.slane %v7595_v26, 3  ;;  %v4377_v19 = vshrl.u32 %v7601_v5, 16  ;;  %v4380_v33 = vshll.u32 %v7601_v5, 16  ;;  %v7618_v50 = vld [vmem:[#allocation3 + $0x44] ss:$0 sps:$4 sm:$0x77]  }
 0x1f9   :  { %7228 = vmatpush3.bf16.msra.mxu0 %v7572_v6  ;;  %7197 = vmatprep.subr.bf16.mxu1 %v7573_v30  ;;  %v4375_v6 = vsel %vm1393_vm3, %v4365_v41, %v4374_v23  ;;  %v7619_v41 = vld [vmem:[#allocation6 + $0x188] sm:$0xff]   ;;  %v4422_v60 = vshrl.u32 %v7618_v50, 16 }
 0x1fa   :  { %7229 = vmatprep.subr.bf16.mxu0 %v7574_v34  ;;  %7151 = vmatprep.mubr.bf16.mxu1 %v3772_v3  ;;  %v4386_v3 = vshrl.u32 %v7602_v8, 16  ;;  %v7622_v5 = vld [vmem:[#allocation6 + $0x1c8] sm:$0xff]  }
 0x1fb   :  { %7183 = vmatprep.mubr.bf16.mxu0 %v4066_v37  ;;  %v4382_v37 = vrot.slane %v4380_v33, 3  ;;  %v7623_v33 = vld [vmem:[#allocation6 + $0x180] sm:$0xff]  }
 0x1fc   :  { %7198 = vmatpush3.bf16.msra.mxu1 %v7573_v30  ;;  %v4709_v30 = vsel %vm1752_vm4, %v4707_v25, %v4708_v22 }
 0x1fd   :  { %7230 = vmatpush3.bf16.msra.mxu0 %v7574_v34  ;;  %7199 = vmatprep.subr.bf16.mxu1 %v7577_v36  ;;  %v7603_v34 = vld [vmem:[#allocation6 + $0x1a8] sm:$0xff]  }
 0x1fe   :  { %7231 = vmatprep.subr.bf16.mxu0 %v7580_v9 }
 0x1ff   :  { %7152 = vmatmul.mubr.bf16.gmra.mxu1 %v3774_v12  ;;  %v7606_v12 = vld [vmem:[#allocation6 + $0x1e8] sm:$0xff]  }
 0x200   :  { %7200 = vmatpush3.bf16.msra.mxu1 %v7577_v36  ;;  %7184 = vmatmul.mubr.bf16.gmra.mxu0 %v4068_v14  ;;  %v4379_v36 = vrot.slane %v4377_v19, 2  ;;  %v7607_v14 = vld [vmem:[#allocation6 + $0x1a0] sm:$0xff]  }
 0x201   :  { %7232 = vmatpush3.bf16.msra.mxu0 %v7580_v9  ;;  %7201 = vmatprep.subr.bf16.mxu1 %v7581_v35  ;;  %v4388_v9 = vrot.slane %v4386_v3, 2  ;;  %v7624_v3 = vld [vmem:[#allocation6 + $0x1c0] sm:$0xff]  }
 0x202   :  { %7233 = vmatprep.subr.bf16.mxu0 %v7582_v11  ;;  %7155 = vmatprep.mubr.bf16.mxu1 %v3776_v13  ;;  %v7608_v13 = vld [vmem:[#allocation6 + $0x1e0] sm:$0xff]  }
 0x203   :  { %7187 = vmatprep.mubr.bf16.mxu0 %v4070_v46  ;;  %v7610_v46 = vld [vmem:[#allocation3 + $0x34] sm:$0xff]  }
 0x204   :  { %7202 = vmatpush3.bf16.msra.mxu1 %v7581_v35  ;;  %v4383_v35 = vor.u32 %v4382_v37, %v4379_v36  ;;  %v7625_v36 = vld [vmem:[#allocation3 + $0xc] sm:$0xff]  }
 0x205   :  { %7234 = vmatpush3.bf16.msra.mxu0 %v7582_v11  ;;  %7203 = vmatprep.subr.bf16.mxu1 %v7585_v21  ;;  %v4392_v11 = vor.u32 %v4391_v10, %v4388_v9  ;;  %v7627_v37 = vld [vmem:[#allocation6 + $0x238] sm:$0xff]   ;;  %v7626_v9 = vld [vmem:[#allocation3 + $0x14] sm:$0xff]   ;;  %v5275_v10 = vshrl.u32 %v7628_v7, 16 }
 0x206   :  { %7235 = vmatprep.subr.bf16.mxu0 %v7588_v49  ;;  %v4384_v43 = vsel %vm1393_vm3, %v4374_v23, %v4383_v35  ;;  %v4425_v23 = vshll.u32 %v7618_v50, 16 }
 0x207   :  { %7156 = vmatmul.mubr.bf16.gmra.mxu1 %v3778_v18  ;;  %v4393_v45 = vsel %vm1393_vm3, %v4383_v35, %v4392_v11  ;;  %v4404_v18 = vshrl.u32 %v7610_v46, 16  ;;  %v5277_v35 = vshll.u32 %v7628_v7, 16 }
 0x208   :  { %7204 = vmatpush3.bf16.msra.mxu1 %v7585_v21  ;;  %7188 = vmatmul.mubr.bf16.gmra.mxu0 %v4072_v59  ;;  %v7609_v21 = vld [vmem:[#allocation3 + $0x2c] sm:$0xff]  }
 0x209   :  { %7236 = vmatpush3.bf16.msra.mxu0 %v7588_v49  ;;  %7205 = vmatprep.subr.bf16.mxu1 %v7589_v48  ;;  %v4395_v62 = vshrl.u32 %v7609_v21, 16  ;;  %v4398_v49 = vshll.u32 %v7609_v21, 16  ;;  %v4406_v40 = vrot.slane %v4404_v18, 2 }
 0x20a   :  { %7237 = vmatprep.subr.bf16.mxu0 %v7590_v51  ;;  %7207 = vmatprep.mubr.bf16.mxu1 %v4366_v24  ;;  %v7620_v24 = vld [vmem:[#allocation3 + $0x3c] sm:$0xff]  }
 0x20b   :  { %7239 = vmatprep.mubr.bf16.mxu0 %v4709_v30  ;;  %v4397_v44 = vrot.slane %v4395_v62, 2  ;;  %v4400_v29 = vrot.slane %v4398_v49, 3  ;;  %v7621_v30 = vld [vmem:[#allocation3 + $0x44] ss:$0 sps:$4 sm:$0x77]  }
 0x20c   :  { %7206 = vmatpush3.bf16.msra.mxu1 %v7589_v48  ;;  %v4407_v48 = vshll.u32 %v7610_v46, 16  ;;  %v4722_v19 = vrot.slane %v7621_v30, 3  ;;  %v7634_v46 = vld [vmem:[#allocation6 + $0x228] sm:$0xff]   ;;  %v7635_v62 = vld [vmem:[#allocation3 + $0x24] sm:$0xff]  }
 0x20d   :  { %7238 = vmatpush3.bf16.msra.mxu0 %v7590_v51  ;;  %7255 = vmatprep.subr.bf16.mxu1 %v7594_v38  ;;  %v4401_v51 = vor.u32 %v4400_v29, %v4397_v44  ;;  %v5302_v44 = vshrl.u32 %v7635_v62, 16  ;;  %v7648_v30 = vld [vmem:[#allocation3 + $0x4c] ss:$0 sps:$4 sm:$0x11]  }
 0x20e   :  { %7287 = vmatprep.subr.bf16.mxu0 %v7598_v32  ;;  %v4409_v59 = vrot.slane %v4407_v48, 3  ;;  %v5298_v48 = vshll.u32 %v7635_v62, 16 }
 0x20f   :  { %7208 = vmatmul.mubr.bf16.vlgmr.msra.gmra.mxu1 %v4375_v6  ;;  %v4402_v55 = vsel %vm1393_vm3, %v4392_v11, %v4401_v51  ;;  %v4720_v6 = vrot.slane %v7620_v24, 3  ;;  %v5279_v11 = vrot.slane %v5277_v35, 1  ;;  %v7644_v24 = vld [vmem:[#allocation3 + $0x3c] sm:$0xff]  }
 0x210   :  { %7256 = vmatpush3.bf16.msra.mxu1 %v7594_v38  ;;  %7240 = vmatmul.mubr.bf16.vlgmr.msra.gmra.mxu0 %v4711_v31  ;;  %v4410_v1 = vor.u32 %v4409_v59, %v4406_v40  ;;  %v7617_v38 = vld [vmem:[#allocation3 + $0x3c] sm:$0xff]   ;;  %v7633_v40 = vld [vmem:[#allocation3 + $0x24] sm:$0xff]   ;;  %v5300_v59 = vrot.slane %v5298_v48, 1 }
 0x211   :  { %7288 = vmatpush3.bf16.msra.mxu0 %v7598_v32  ;;  %7257 = vmatprep.subr.bf16.mxu1 %v7599_v27  ;;  %v4413_v26 = vshrl.u32 %v7617_v38, 16  ;;  %v4416_v22 = vshll.u32 %v7617_v38, 16  ;;  %v4424_v32 = vrot.slane %v4422_v60, 2  ;;  %v4721_v8 = vsel %vm1752_vm4, %v4718_v47, %v4720_v6 }
 0x212   :  { %7289 = vmatprep.subr.bf16.mxu0 %v7600_v52  ;;  %7243 = vmatprep.mubr.bf16.mxu0 %v4713_v53  ;;  %v4411_v58 = vsel %vm1393_vm3, %v4401_v51, %v4410_v1  ;;  %v4723_v20 = vsel %vm1752_vm4, %v4720_v6, %v4722_v19  ;;  %v7630_v53 = vld [vmem:[#allocation3 + $0x1c] sm:$0xff]   ;;  %v5308_v51 = vrot.slane %v5306_v56, 1  ;;  %v7647_v6 = vld [vmem:[#allocation3 + $0x44] sm:$0xff]   ;;  %v7651_v19 = vld [vmem:[#allocation3 + $0x14] sm:$0xff]  }
 0x213   :  { %7211 = vmatprep.mubr.bf16.mxu1 %v4384_v43  ;;  %v4415_v25 = vrot.slane %v4413_v26, 2  ;;  %v4418_v4 = vrot.slane %v4416_v22, 3  ;;  %v7631_v43 = vld [vmem:[#allocation6 + $0x230] sm:$0xff]   ;;  %v7639_v22 = vld [vmem:[#allocation3 + $0x34] sm:$0xff]  }
 0x214   :  { %7258 = vmatpush3.bf16.msra.mxu1 %v7599_v27  ;;  %v4427_v27 = vrot.slane %v4425_v23, 3  ;;  %v7643_v23 = vld [vmem:[#allocation6 + $0x210] sm:$0xff]  }
 0x215   :  { %7290 = vmatpush3.bf16.msra.mxu0 %v7600_v52  ;;  %7259 = vmatprep.subr.bf16.mxu1 %v7603_v34  ;;  %v4419_v52 = vor.u32 %v4418_v4, %v4415_v25 }
 0x216   :  { %7291 = vmatprep.subr.bf16.mxu0 %v7606_v12  ;;  %v4428_v31 = vor.u32 %v4427_v27, %v4424_v32 }
 0x217   :  { %7212 = vmatmul.mubr.bf16.gmra.mxu1 %v4393_v45  ;;  %v5280_v45 = vor.u32 %v5279_v11, %v5275_v10  ;;  %v7652_v10 = vld [vmem:[#allocation3 + $0x1c] sm:$0xff]  }
 0x218   :  { %7260 = vmatpush3.bf16.msra.mxu1 %v7603_v34  ;;  %7244 = vmatmul.mubr.bf16.gmra.mxu0 %v4715_v0  ;;  %v4420_v34 = vsel %vm1393_vm3, %v4410_v1, %v4419_v52  ;;  %v4429_v42 = vsel %vm1393_vm3, %v4419_v52, %v4428_v31  ;;  %v7632_v0 = vld [vmem:[#allocation3 + $0x1c] sm:$0xff]   ;;  %v7637_v1 = vld [vmem:[#allocation6 + $0x220] sm:$0xff]   ;;  %v5330_v31 = vshll.u32 %v7647_v6, 16  ;;  %v5622_v11 = vrot.slane %v7652_v10, 1 }
 0x219   :  { %7292 = vmatpush3.bf16.msra.mxu0 %v7606_v12  ;;  %7261 = vmatprep.subr.bf16.mxu1 %v7607_v14  ;;  %v5286_v12 = vshrl.u32 %v7629_v2, 16  ;;  %v7649_v2 = vld [vmem:[#allocation6 + $0x200] sm:$0xff]  }
 0x21a   :  { %7293 = vmatprep.subr.bf16.mxu0 %v7608_v13  ;;  %7247 = vmatprep.mubr.bf16.mxu0 %v4717_v63  ;;  %v7638_v63 = vld [vmem:[#allocation3 + $0x2c] sm:$0xff]  }
 0x21b   :  { %7215 = vmatprep.mubr.bf16.mxu1 %v4402_v55  ;;  %v7641_v55 = vld [vmem:[#allocation3 + $0x34] sm:$0xff]  }
 0x21c   :  { %7262 = vmatpush3.bf16.msra.mxu1 %v7607_v14  ;;  %v5290_v14 = vshll.u32 %v7630_v53, 16  ;;  %v5314_v38 = vshll.u32 %v7641_v55, 16  ;;  %v5318_v50 = vshrl.u32 %v7641_v55, 16 }
 0x21d   :  { %7294 = vmatpush3.bf16.msra.mxu0 %v7608_v13  ;;  %7263 = vmatprep.subr.bf16.mxu1 %v7611_v15  ;;  %v5284_v13 = vrot.slane %v5282_v39, 1  ;;  %v7653_v39 = vld [vmem:[#allocation3 + $0x24] sm:$0xff]  }
 0x21e   :  { %7295 = vmatprep.subr.bf16.mxu0 %v7614_v28  ;;  %v5292_v21 = vrot.slane %v5290_v14, 1  ;;  %v5316_v60 = vrot.slane %v5314_v38, 1  ;;  %v5624_v14 = vrot.slane %v7653_v39, 1 }
 0x21f   :  { %7216 = vmatmul.mubr.bf16.gmra.mxu1 %v4411_v58  ;;  %v5288_v49 = vor.u32 %v5286_v12, %v5284_v13  ;;  %v5285_v18 = vsel %vm454_vm0, %v5280_v45, %v5284_v13  ;;  %v7655_v45 = vld [vmem:[#allocation3 + $0x34] sm:$0xff]  }
 0x220   :  { %7248 = vmatmul.mubr.bf16.gmra.mxu0 %v4719_v17  ;;  %7264 = vmatpush3.bf16.msra.mxu1 %v7611_v15  ;;  %v5294_v15 = vshrl.u32 %v7630_v53, 16  ;;  %v7642_v17 = vld [vmem:[#allocation3 + $0x3c] sm:$0xff]   ;;  %v5320_v4 = vor.u32 %v5318_v50, %v5316_v60  ;;  %v5625_v13 = vsel %vm801_vm1, %v5622_v11, %v5624_v14 }
 0x221   :  { %7296 = vmatpush3.bf16.msra.mxu0 %v7614_v28  ;;  %7265 = vmatprep.subr.bf16.mxu1 %v7615_v54  ;;  %v5293_v29 = vsel %vm454_vm0, %v5288_v49, %v5292_v21  ;;  %v5304_v28 = vor.u32 %v5302_v44, %v5300_v59  ;;  %v5322_v26 = vshll.u32 %v7642_v17, 16  ;;  %v5326_v27 = vshrl.u32 %v7642_v17, 16  ;;  %v7656_v49 = vld [vmem:[#allocation3 + $0x3c] sm:$0xff]  }
 0x222   :  { %7297 = vmatprep.subr.bf16.mxu0 %v7616_v57  ;;  %7251 = vmatprep.mubr.bf16.mxu0 %v4721_v8  ;;  %v5296_v61 = vor.u32 %v5294_v15, %v5292_v21  ;;  %v5338_v8 = vshll.u32 %v7648_v30, 16 }
 0x223   :  { %7219 = vmatprep.mubr.bf16.mxu1 %v4420_v34  ;;  %v5324_v32 = vrot.slane %v5322_v26, 1  ;;  %v7645_v34 = vld [vmem:[#allocation3 + $0x44] sm:$0xff]  }
 0x224   :  { %7266 = vmatpush3.bf16.msra.mxu1 %v7615_v54  ;;  %v5301_v47 = vsel %vm454_vm0, %v5296_v61, %v5300_v59  ;;  %v5310_v54 = vshrl.u32 %v7636_v16, 16  ;;  %v5340_v7 = vrot.slane %v5338_v8, 1  ;;  %v7657_v16 = vld [vmem:[#allocation3 + $0x44] sm:$0xff]  }
 0x225   :  { %7298 = vmatpush3.bf16.msra.mxu0 %v7616_v57  ;;  %7267 = vmatprep.subr.bf16.mxu1 %v7619_v41  ;;  %v5309_v57 = vsel %vm454_vm0, %v5304_v28, %v5308_v51  ;;  %v5328_v52 = vor.u32 %v5326_v27, %v5324_v32  ;;  %v5632_v48 = vrot.slane %v7657_v16, 1 }
 0x226   :  { %7299 = vmatprep.subr.bf16.mxu0 %v7622_v5  ;;  %v5312_v58 = vor.u32 %v5310_v54, %v5308_v51 }
 0x227   :  { %7220 = vmatmul.mubr.bf16.gmra.mxu1 %v4429_v42  ;;  %v7646_v42 = vld [vmem:[#allocation6 + $0x208] sm:$0xff]  }
 0x228   :  { %7252 = vmatmul.mubr.bf16.gmra.mxu0 %v4723_v20  ;;  %7268 = vmatpush3.bf16.msra.mxu1 %v7619_v41  ;;  %v7640_v41 = vld [vmem:[#allocation6 + $0x218] sm:$0xff]   ;;  %v5317_v25 = vsel %vm454_vm0, %v5312_v58, %v5316_v60 }
 0x229   :  { %7300 = vmatpush3.bf16.msra.mxu0 %v7622_v5  ;;  %7269 = vmatprep.subr.bf16.mxu1 %v7623_v33  ;;  %v5334_v5 = vshrl.u32 %v7647_v6, 16  ;;  %v7650_v20 = vld [vmem:[#allocation3 + $0xc] sm:$0xfe]  }
 0x22a   :  { %7301 = vmatprep.subr.bf16.mxu0 %v7624_v3  ;;  %7271 = vmatprep.mubr.bf16.mxu1 %v7625_v36  ;;  %v5620_v36 = vrot.slane %v7651_v19, 1 }
 0x22b   :  { %7303 = vmatprep.mubr.bf16.mxu0 %v5285_v18  ;;  %v5630_v18 = vrot.slane %v7656_v49, 1 }
 0x22c   :  { %7270 = vmatpush3.bf16.msra.mxu1 %v7623_v33  ;;  %v5325_v33 = vsel %vm454_vm0, %v5320_v4, %v5324_v32 }
 0x22d   :  { %7302 = vmatpush3.bf16.msra.mxu0 %v7624_v3  ;;  %7319 = vmatprep.subr.bf16.mxu1 %v7627_v37  ;;  %v5332_v3 = vrot.slane %v5330_v31, 1  ;;  %v5633_v61 = vsel %vm801_vm1, %v5630_v18, %v5632_v48 }
 0x22f   :  { %7272 = vmatmul.mubr.bf16.vlgmr.msra.gmra.mxu1 %v7626_v9  ;;  %v5619_v9 = vrot.slane %v7650_v20, 1  ;;  %v5336_v35 = vor.u32 %v5334_v5, %v5332_v3 }
 0x230   :  { %7320 = vmatpush3.bf16.msra.mxu1 %v7627_v37  ;;  %7275 = vmatprep.mubr.bf16.mxu1 %v7632_v0  ;;  %v5333_v37 = vsel %vm454_vm0, %v5328_v52, %v5332_v3  ;;  %v7654_v0 = vld [vmem:[#allocation3 + $0x2c] sm:$0xff]  }
 0x231   :  { %7321 = vmatprep.subr.bf16.mxu1 %v7631_v43  ;;  %7304 = vmatmul.mubr.bf16.vlgmr.msra.gmra.mxu0 %v5293_v29  ;;  %v5621_v53 = vsel %vm801_vm1, %v5619_v9, %v5620_v36  ;;  %v5341_v12 = vsel %vm454_vm0, %v5336_v35, %v5340_v7  ;;  %v5626_v21 = vrot.slane %v7654_v0, 1  ;;  %v7658_v29 = vld [vmem:[#allocation3 + $0x4c] ss:$0 sps:$4 sm:$0x11]  }
 0x232   :  { %7307 = vmatprep.mubr.bf16.mxu0 %v5301_v47  ;;  %v5634_v56 = vrot.slane %v7658_v29, 1 }
 0x233   :  { %v5627_v62 = vsel %vm801_vm1, %v5624_v14, %v5626_v21 }
 0x234   :  { %7322 = vmatpush3.bf16.msra.mxu1 %v7631_v43  ;;  %v5623_v43 = vsel %vm801_vm1, %v5620_v36, %v5622_v11 }
 0x235   :  { %7323 = vmatprep.subr.bf16.mxu1 %v7634_v46 }
 0x237   :  { %7276 = vmatmul.mubr.bf16.gmra.mxu1 %v7633_v40  ;;  %v5635_v40 = vsel %vm801_vm1, %v5632_v48, %v5634_v56 }
 0x238   :  { %7324 = vmatpush3.bf16.msra.mxu1 %v7634_v46  ;;  %7279 = vmatprep.mubr.bf16.mxu1 %v7638_v63  ;;  %v5628_v46 = vrot.slane %v7655_v45, 1 }
 0x239   :  { %7325 = vmatprep.subr.bf16.mxu1 %v7637_v1  ;;  %7308 = vmatmul.mubr.bf16.gmra.mxu0 %v5309_v57 }
 0x23a   :  { %7311 = vmatprep.mubr.bf16.mxu0 %v5317_v25  ;;  %v5629_v15 = vsel %vm801_vm1, %v5626_v21, %v5628_v46  ;;  %v5631_v44 = vsel %vm801_vm1, %v5628_v46, %v5630_v18 }
 0x23c   :  { %7326 = vmatpush3.bf16.msra.mxu1 %v7637_v1 }
 0x23d   :  { %7327 = vmatprep.subr.bf16.mxu1 %v7640_v41 }
 0x23f   :  { %7280 = vmatmul.mubr.bf16.gmra.mxu1 %v7639_v22 }
 0x240   :  { %7328 = vmatpush3.bf16.msra.mxu1 %v7640_v41  ;;  %7283 = vmatprep.mubr.bf16.mxu1 %v7644_v24 }
 0x241   :  { %7329 = vmatprep.subr.bf16.mxu1 %v7643_v23  ;;  %7312 = vmatmul.mubr.bf16.gmra.mxu0 %v5325_v33 }
 0x242   :  { %7315 = vmatprep.mubr.bf16.mxu0 %v5333_v37 }
 0x244   :  { %7330 = vmatpush3.bf16.msra.mxu1 %v7643_v23 }
 0x245   :  { %7331 = vmatprep.subr.bf16.mxu1 %v7646_v42 }
 0x247   :  { %7284 = vmatmul.mubr.bf16.gmra.mxu1 %v7645_v34 }
 0x248   :  { %7332 = vmatpush3.bf16.msra.mxu1 %v7646_v42  ;;  %7335 = vmatprep.mubr.bf16.mxu1 %v5621_v53 }
 0x249   :  { %7333 = vmatprep.subr.bf16.mxu1 %v7649_v2  ;;  %7316 = vmatmul.mubr.bf16.gmra.mxu0 %v5341_v12 }
 0x24c   :  { %7334 = vmatpush3.bf16.msra.mxu1 %v7649_v2 }
 0x24f   :  { %7336 = vmatmul.mubr.bf16.vlgmr.msra.gmra.mxu1 %v5623_v43 }
 0x250   :  { %7339 = vmatprep.mubr.bf16.mxu1 %v5625_v13 }
 0x257   :  { %7340 = vmatmul.mubr.bf16.gmra.mxu1 %v5627_v62 }
 0x258   :  { %7343 = vmatprep.mubr.bf16.mxu1 %v5629_v15 }
 0x25f   :  { %7344 = vmatmul.mubr.bf16.gmra.mxu1 %v5631_v44 }
 0x260   :  { %7347 = vmatprep.mubr.bf16.mxu1 %v5633_v61 }
 0x267   :  { %7348 = vmatmul.mubr.bf16.gmra.mxu1 %v5635_v40 }
 0x28f   :  { %v7081_v59 = vpop.f32.mrf.mxu1 }
 0x290   :  { %v7113_v51 = vpop.f32.mrf.mxu0 }
 0x291   :  { %v3640_v63 = vadd.f32 %v7113_v51, %v7081_v59  ;;  %v3230_v47 = vpop.f32.mrf.mxu1 }
 0x292   :  { %v3575_v28 = vpop.f32.mrf.mxu0 }
 0x293   :  { %v3638_v1 = vadd.f32 %v3575_v28, %v3230_v47  ;;  %v7082_v54 = vpop.f32.mrf.mxu1 }
 0x294   :  { %v7114_v55 = vpop.f32.mrf.mxu0 }
 0x295   :  { %v3641_v17 = vadd.f32 %v7114_v55, %v7082_v54  ;;  %v3233_v57 = vpop.f32.mrf.mxu1 }
 0x296   :  { %v3578_v58 = vpop.f32.mrf.mxu0 }
 0x297   :  { %v3639_v38 = vadd.f32 %v3578_v58, %v3233_v57  ;;  %v7085_v50 = vpop.f32.mrf.mxu1 }
 0x298   :  { %v7117_v41 = vpop.f32.mrf.mxu0 }
 0x299   :  { %v3644_v26 = vadd.f32 %v7117_v41, %v7085_v50  ;;  %v3246_v22 = vpop.f32.mrf.mxu1 }
 0x29a   :  { %v3591_v60 = vpop.f32.mrf.mxu0 }
 0x29b   :  { %v3642_v23 = vadd.f32 %v3591_v60, %v3246_v22  ;;  %v7086_v24 = vpop.f32.mrf.mxu1 }
 0x29c   :  { %v7118_v25 = vpop.f32.mrf.mxu0 }
 0x29d   :  { %v3645_v4 = vadd.f32 %v7118_v25, %v7086_v24  ;;  %v3249_v32 = vpop.f32.mrf.mxu1 }
 0x29e   :  { %v3594_v27 = vpop.f32.mrf.mxu0 }
 0x29f   :  { %v3643_v6 = vadd.f32 %v3594_v27, %v3249_v32  ;;  %v7089_v30 = vpop.f32.mrf.mxu1 }
 0x2a0   :  { %v7121_v52 = vpop.f32.mrf.mxu0 }
 0x2a1   :  { %v3648_v31 = vadd.f32 %v7121_v52, %v7089_v30  ;;  %v3262_v5 = vpop.f32.mrf.mxu1 }
 0x2a2   :  { %v3607_v8 = vpop.f32.mrf.mxu0 }
 0x2a3   :  { %v3646_v19 = vadd.f32 %v3607_v8, %v3262_v5  ;;  %v7090_v33 = vpop.f32.mrf.mxu1 }
 0x2a4   :  { %v7122_v34 = vpop.f32.mrf.mxu0 }
 0x2a5   :  { %v3649_v42 = vadd.f32 %v7122_v34, %v7090_v33  ;;  %v3265_v3 = vpop.f32.mrf.mxu1 }
 0x2a6   :  { %v3610_v20 = vpop.f32.mrf.mxu0 }
 0x2a7   :  { %v3647_v36 = vadd.f32 %v3610_v20, %v3265_v3  ;;  %v7093_v37 = vpop.f32.mrf.mxu1 }
 0x2a8   :  { %v7125_v7 = vpop.f32.mrf.mxu0 }
 0x2a9   :  { %v3652_v2 = vadd.f32 %v7125_v7, %v7093_v37  ;;  %v3278_v9 = vpop.f32.mrf.mxu1 }
 0x2aa   :  { %v3623_v10 = vpop.f32.mrf.mxu0 }
 0x2ab   :  { %v3650_v35 = vadd.f32 %v3623_v10, %v3278_v9  ;;  %v7094_v53 = vpop.f32.mrf.mxu1 }
 0x2ac   :  { %v7126_v39 = vpop.f32.mrf.mxu0 }
 0x2ad   :  { %v3653_v12 = vadd.f32 %v7126_v39, %v7094_v53  ;;  %v3281_v11 = vpop.f32.mrf.mxu1 }
 0x2ae   :  { %v3626_v14 = vpop.f32.mrf.mxu0 }
 0x2af   :  { %v3651_v43 = vadd.f32 %v3626_v14, %v3281_v11  ;;  %v7145_v0 = vpop.f32.mrf.mxu1 }
 0x2b0   :  { %v8163_v13 = vadd.f32 %v7145_v0, %v3640_v63  ;;  %v8165_v45 = vpop.f32.mrf.mxu0 }
 0x2b1   :  { %v3869_v21 = vpop.f32.mrf.mxu1 }
 0x2b2   :  { %v8167_v46 = vadd.f32 %v3869_v21, %v3638_v1  ;;  %v8169_v62 = vpop.f32.mrf.mxu0 }
 0x2b3   :  { %v7146_v49 = vpop.f32.mrf.mxu1 }
 0x2b4   :  { %v8171_v15 = vadd.f32 %v7146_v49, %v3641_v17  ;;  %v8173_v16 = vpop.f32.mrf.mxu0 }
 0x2b5   :  { %v3872_v18 = vpop.f32.mrf.mxu1 }
 0x2b6   :  { %v8175_v48 = vadd.f32 %v3872_v18, %v3639_v38  ;;  %v8177_v44 = vpop.f32.mrf.mxu0 }
 0x2b7   :  { %v7149_v29 = vpop.f32.mrf.mxu1 }
 0x2b8   :  { %v8179_v61 = vadd.f32 %v7149_v29, %v3644_v26  ;;  %v8181_v56 = vpop.f32.mrf.mxu0 }
 0x2b9   :  { %v3885_v40 = vpop.f32.mrf.mxu1 }
 0x2ba   :  { %v8183_v59 = vadd.f32 %v3885_v40, %v3642_v23  ;;  %v8185_v51 = vpop.f32.mrf.mxu0 }
 0x2bb   :  { %v7150_v63 = vpop.f32.mrf.mxu1 }
 0x2bc   :  { %v8187_v47 = vadd.f32 %v7150_v63, %v3645_v4  ;;  %v8189_v28 = vpop.f32.mrf.mxu0 }
 0x2bd   :  { %v3888_v1 = vpop.f32.mrf.mxu1 }
 0x2be   :  { %v8191_v54 = vadd.f32 %v3888_v1, %v3643_v6  ;;  %v8193_v55 = vpop.f32.mrf.mxu0 }
 0x2bf   :  { %v7153_v17 = vpop.f32.mrf.mxu1 }
 0x2c0   :  { %v8195_v57 = vadd.f32 %v7153_v17, %v3648_v31  ;;  %v8197_v58 = vpop.f32.mrf.mxu0 }
 0x2c1   :  { %v3901_v38 = vpop.f32.mrf.mxu1 }
 0x2c2   :  { %v8199_v50 = vadd.f32 %v3901_v38, %v3646_v19  ;;  %v8201_v41 = vpop.f32.mrf.mxu0 }
 0x2c3   :  { %v7154_v26 = vpop.f32.mrf.mxu1 }
 0x2c4   :  { %v8203_v22 = vadd.f32 %v7154_v26, %v3649_v42  ;;  %v8205_v60 = vpop.f32.mrf.mxu0 }
 0x2c5   :  { %v3904_v23 = vpop.f32.mrf.mxu1 }
 0x2c6   :  { %v8207_v24 = vadd.f32 %v3904_v23, %v3647_v36  ;;  %v8209_v25 = vpop.f32.mrf.mxu0 }
 0x2c7   :  { %v7157_v4 = vpop.f32.mrf.mxu1 }
 0x2c8   :  { %v8211_v32 = vadd.f32 %v7157_v4, %v3652_v2  ;;  %v8213_v27 = vpop.f32.mrf.mxu0 }
 0x2c9   :  { %v3917_v6 = vpop.f32.mrf.mxu1 }
 0x2ca   :  { %v8215_v30 = vadd.f32 %v3917_v6, %v3650_v35  ;;  %v8217_v52 = vpop.f32.mrf.mxu0 }
 0x2cb   :  { %8488 = vst [vmem:[#allocation24_spill] sm:$0xff] %v8217_v52  ;;  %v7158_v31 = vpop.f32.mrf.mxu1 }
 0x2cc   :  { %v8219_v5 = vadd.f32 %v7158_v31, %v3653_v12  ;;  %v8221_v8 = vpop.f32.mrf.mxu0 }
 0x2cd   :  { %8490 = vst [vmem:[#allocation31_spill] sm:$0xff] %v8221_v8  ;;  %v3920_v19 = vpop.f32.mrf.mxu1 }
 0x2ce   :  { %8489 = vst [vmem:[#allocation29_spill] sm:$0xff] %v8219_v5  ;;  %v8223_v33 = vadd.f32 %v3920_v19, %v3651_v43  ;;  %v8225_v34 = vpop.f32.mrf.mxu0 }
 0x2cf   :  { %8492 = vst [vmem:[#allocation46_spill] sm:$0xff] %v8225_v34  ;;  %v7209_v42 = vpop.f32.mrf.mxu1 }
 0x2d0   :  { %8491 = vst [vmem:[#allocation45_spill] sm:$0xff] %v8223_v33  ;;  %v7241_v3 = vpop.f32.mrf.mxu0 }
 0x2d1   :  { %v4520_v20 = vpop.f32.mrf.mxu1 }
 0x2d2   :  { %v4814_v36 = vpop.f32.mrf.mxu0 }
 0x2d3   :  { %v7210_v37 = vpop.f32.mrf.mxu1 }
 0x2d4   :  { %v8227_v7 = vpop.f32.mrf.mxu0 }
 0x2d5   :  { %v4523_v2 = vpop.f32.mrf.mxu1 }
 0x2d6   :  { %v8229_v9 = vpop.f32.mrf.mxu0 }
 0x2d7   :  { %v7213_v10 = vpop.f32.mrf.mxu1 }
 0x2d8   :  { %v8231_v35 = vpop.f32.mrf.mxu0 }
 0x2d9   :  { %v4536_v53 = vpop.f32.mrf.mxu1 }
 0x2da   :  { %v8233_v39 = vpop.f32.mrf.mxu0 }
 0x2db   :  { %v8235_v12 = vpop.f32.mrf.mxu1 }
 0x2dc   :  { %v8237_v11 = vpop.f32.mrf.mxu0 }
 0x2dd   :  { %v8239_v14 = vpop.f32.mrf.mxu1 }
 0x2de   :  { %v8241_v43 = vpop.f32.mrf.mxu0 }
 0x2df   :  { %8493 = vst [vmem:[#allocation30_spill] sm:$0xff] %v8241_v43  ;;  %v8243_v0 = vpop.f32.mrf.mxu1 }
 0x2e0   :  { %v8245_v21 = vpop.f32.mrf.mxu0 }
 0x2e1   :  { %8494 = vst [vmem:[#allocation33_spill] sm:$0xff] %v8245_v21  ;;  %v8247_v49 = vpop.f32.mrf.mxu1 }
 0x2e2   :  { %8495 = vst [vmem:[#allocation49_spill] sm:$0xff] %v8247_v49  ;;  %v8249_v18 = vpop.f32.mrf.mxu0  ;;  %v4226_v49 = vadd.f32 %v8169_v62, %v8167_v46  ;;  %v4232_v46 = vadd.f32 %v8181_v56, %v8179_v61 }
 0x2e3   :  { %8496 = vst [vmem:[#allocation47_spill] sm:$0xff] %v8249_v18  ;;  %v8251_v29 = vpop.f32.mrf.mxu1 }
 0x2e4   :  { %8497 = vst [vmem:[#allocation32_spill] sm:$0xff] %v8251_v29  ;;  %v8253_v40 = vpop.f32.mrf.mxu0  ;;  %v4228_v29 = vadd.f32 %v8165_v45, %v8163_v13 }
 0x2e5   :  { %8498 = vst [vmem:[#allocation35_spill] sm:$0xff] %v8253_v40  ;;  %v8255_v63 = vpop.f32.mrf.mxu1 }
 0x2e6   :  { %8499 = vst [vmem:[#allocation48_spill] sm:$0xff] %v8255_v63  ;;  %v8257_v1 = vpop.f32.mrf.mxu0  ;;  %v4585_v43 = vadd.f32 %v7209_v42, %v4228_v29 }
 0x2e7   :  { %8500 = vst [vmem:[#allocation25_spill] sm:$0xff] %v8257_v1  ;;  %v8259_v17 = vpop.f32.mrf.mxu1 }
 0x2e8   :  { %8501 = vst [vmem:[#allocation26_spill] sm:$0xff] %v8259_v17  ;;  %v8261_v38 = vpop.f32.mrf.mxu0  ;;  %v4879_v13 = vadd.f32 %v7241_v3, %v4585_v43  ;;  %v4233_v3 = vadd.f32 %v8189_v28, %v8187_v47  ;;  %v4236_v28 = vadd.f32 %v8197_v58, %v8195_v57 }
 0x2e9   :  { %8502 = vst [vmem:[#allocation34_spill] sm:$0xff] %v8261_v38  ;;  %v8263_v26 = vpop.f32.mrf.mxu1 }
 0x2ea   :  { %8503 = vst [vmem:[#allocation37_spill] sm:$0xff] %v8263_v26  ;;  %v8265_v23 = vpop.f32.mrf.mxu0 }
 0x2eb   :  { %8504 = vst [vmem:[#allocation50_spill] sm:$0xff] %v8265_v23  ;;  %v8267_v4 = vpop.f32.mrf.mxu1 }
 0x2ec   :  { %8505 = vst [vmem:[#allocation27_spill] sm:$0xff] %v8267_v4  ;;  %v8269_v6 = vpop.f32.mrf.mxu0 }
 0x2ed   :  { %8506 = vst [vmem:[#allocation28_spill] sm:$0xff] %v8269_v6  ;;  %v8271_v31 = vpop.f32.mrf.mxu1 }
 0x2ee   :  { %8507 = vst [vmem:[#allocation36_spill] sm:$0xff] %v8271_v31  ;;  %v8273_v19 = vpop.f32.mrf.mxu0 }
 0x2ef   :  { %8508 = vst [vmem:[#allocation39_spill] sm:$0xff] %v8273_v19  ;;  %v7273_v34 = vpop.f32.mrf.mxu1 }
 0x2f0   :  { %v5152_v29 = vadd.f32 %v7273_v34, %v4879_v13 }
 0x2f1   :  { %v5087_v33 = vpop.f32.mrf.mxu1  ;;  %v7305_v40 = vpop.f32.mrf.mxu0 }
 0x2f2   :  { %v5497_v56 = vadd.f32 %v7305_v40, %v5152_v29 }
 0x2f3   :  { %v7274_v1 = vpop.f32.mrf.mxu1  ;;  %v5432_v8 = vpop.f32.mrf.mxu0 }
 0x2f5   :  { %v5090_v17 = vpop.f32.mrf.mxu1  ;;  %v7306_v5 = vpop.f32.mrf.mxu0 }
 0x2f7   :  { %v7277_v38 = vpop.f32.mrf.mxu1  ;;  %v5435_v63 = vpop.f32.mrf.mxu0 }
 0x2f9   :  { %v5103_v26 = vpop.f32.mrf.mxu1  ;;  %v8277_v23 = vpop.f32.mrf.mxu0 }
 0x2fa   :  { %8510 = vst [vmem:[#allocation38_spill] sm:$0xff] %v8277_v23 }
 0x2fb   :  { %v8275_v18 = vpop.f32.mrf.mxu1  ;;  %v8283_v31 = vpop.f32.mrf.mxu0 }
 0x2fc   :  { %8509 = vst [vmem:[#allocation51_spill] sm:$0xff] %v8275_v18  ;;  %8513 = vst [vmem:[#allocation43_spill] sm:$0xff] %v8283_v31 }
 0x2fd   :  { %v8279_v4 = vpop.f32.mrf.mxu1  ;;  %v8293_v18 = vpop.f32.mrf.mxu0 }
 0x2fe   :  { %8511 = vst [vmem:[#allocation41_spill] sm:$0xff] %v8279_v4  ;;  %v4583_v4 = vadd.f32 %v4520_v20, %v4226_v49 }
 0x2ff   :  { %v8281_v6 = vpop.f32.mrf.mxu1 }
 0x300   :  { %8512 = vst [vmem:[#allocation40_spill] sm:$0xff] %v8281_v6  ;;  %v4229_v6 = vadd.f32 %v8173_v16, %v8171_v15  ;;  %v4877_v62 = vadd.f32 %v4814_v36, %v4583_v4  ;;  %v4230_v15 = vadd.f32 %v8185_v51, %v8183_v59  ;;  %v4231_v59 = vadd.f32 %v8193_v55, %v8191_v54  ;;  %v8336_v54 = vld [vmem:[%s8429_s2] ss:$0 sm:$0xff] }
 0x301   :  { %v8285_v19 = vpop.f32.mrf.mxu1  ;;  %v4590_v51 = vadd.f32 %v8235_v12, %v4233_v3 }
 0x302   :  { %8514 = vst [vmem:[#allocation42_spill] sm:$0xff] %v8285_v19  ;;  %v4227_v19 = vadd.f32 %v8177_v44, %v8175_v48  ;;  %v4586_v45 = vadd.f32 %v7210_v37, %v4229_v6  ;;  %v4589_v48 = vadd.f32 %v7213_v10, %v4232_v46  ;;  %v5150_v44 = vadd.f32 %v5087_v33, %v4877_v62  ;;  %v8521_v46 = vld [vmem:[#allocation33_spill] sm:$0xff] }
 0x303   :  { %v8289_v21 = vpop.f32.mrf.mxu1  ;;  %v4587_v37 = vadd.f32 %v4536_v53, %v4230_v15  ;;  %v4234_v10 = vadd.f32 %v8201_v41, %v8199_v50  ;;  %v4588_v53 = vadd.f32 %v8239_v14, %v4231_v59  ;;  %v4235_v50 = vadd.f32 %v8209_v25, %v8207_v24  ;;  %v8519_v25 = vld [vmem:[#allocation51_spill] sm:$0xff] }
 0x304   :  { %8515 = vst [vmem:[#allocation44_spill] sm:$0xff] %v8289_v21  ;;  %v8303_v21 = vpop.f32.mrf.mxu0  ;;  %v4584_v42 = vadd.f32 %v4523_v2, %v4227_v19  ;;  %v4880_v20 = vadd.f32 %v8227_v7, %v4586_v45  ;;  %v4883_v33 = vadd.f32 %v8231_v35, %v4589_v48  ;;  %v5495_v7 = vadd.f32 %v5432_v8, %v5150_v44  ;;  %v8518_v19 = vld [vmem:[#allocation49_spill] sm:$0xff]  ;;  %v8523_v15 = vld [vmem:[#allocation43_spill] sm:$0xff] }
 0x305   :  { %v8295_v23 = vpop.f32.mrf.mxu1  ;;  %v4237_v8 = vadd.f32 %v8205_v60, %v8203_v22  ;;  %v4884_v41 = vadd.f32 %v8237_v11, %v4590_v51  ;;  %v8516_v22 = vld [vmem:[#allocation24_spill] sm:$0xff]  ;;  %v4591_v24 = vadd.f32 %v8518_v19, %v4234_v10  ;;  %v8524_v48 = vld [vmem:[#allocation41_spill] sm:$0xff]  ;;  %v8525_v59 = vld [vmem:[#allocation47_spill] sm:$0xff] }
 0x306   :  { %v8316_v43 = vpop.f32.mrf.mxu0  ;;  %v4878_v61 = vadd.f32 %v8229_v9, %v4584_v42  ;;  %v5153_v34 = vadd.f32 %v7274_v1, %v4880_v20  ;;  %v4881_v9 = vadd.f32 %v8233_v39, %v4587_v37  ;;  %v5156_v57 = vadd.f32 %v7277_v38, %v4883_v33  ;;  %v8522_v42 = vld [vmem:[#allocation32_spill] sm:$0xff]  ;;  %v8534_v19 = vld [vmem:[#allocation46_spill] sm:$0xff] }
 0x307   :  { %v8299_v31 = vpop.f32.mrf.mxu1  ;;  %v4593_v39 = vadd.f32 %v8243_v0, %v4236_v28  ;;  %v4240_v1 = vadd.f32 %v8213_v27, %v8211_v32  ;;  %v4238_v60 = vadd.f32 %v8516_v22, %v8215_v30  ;;  %v5157_v11 = vadd.f32 %v8519_v25, %v4884_v41  ;;  %v8355_v0 = vld [vmem:[%s8430_s3] ss:$0 sm:$0xff]  ;;  %v8520_v27 = vld [vmem:[#allocation38_spill] sm:$0xff]  ;;  %v8530_v41 = vld [vmem:[#allocation35_spill] sm:$0xff]  ;;  %s7755_s3 = smov [#allocation9]  }
 0x308   :  { %v5151_v2 = vadd.f32 %v5090_v17, %v4878_v61  ;;  %v8331_v40 = vpop.f32.mrf.mxu0  ;;  %v5498_v35 = vadd.f32 %v7306_v5, %v5153_v34  ;;  %v5154_v12 = vadd.f32 %v5103_v26, %v4881_v9  ;;  %v8517_v5 = vld [vmem:[#allocation30_spill] sm:$0xff]  ;;  %v4594_v29 = vadd.f32 %v8522_v42, %v4237_v8  ;;  %v8535_v25 = vld [vmem:[#allocation25_spill] sm:$0xff]  ;;  %s5987_s12 = sshll.u32 %s7755_s3, 4  ;;  %s5988_s12 = int_to_ptr.vmem [resolvable:$true] %s5987_s12 }
 0x309   :  { %v8305_v52 = vpop.f32.mrf.mxu1  ;;  %v4882_v38 = vadd.f32 %v8517_v5, %v4588_v53  ;;  %v4887_v62 = vadd.f32 %v8521_v46, %v4593_v39  ;;  %v4885_v51 = vadd.f32 %v8525_v59, %v4591_v24  ;;  %v8538_v42 = vld [vmem:[#allocation34_spill] sm:$0xff]  ;;  %v8541_v59 = vld [vmem:[#allocation36_spill] sm:$0xff]  ;;  %s7722_s13 = scalar_lea.vmem %s5988_s12, 2048  ;;  %p7727_p2 = scmp.lt.s32.totalorder %s5988_s12, %s5988_s12 }
 0x30a   :  { %v5496_v17 = vadd.f32 %v5435_v63, %v5151_v2  ;;  %v7314_v13 = vpop.f32.mrf.mxu0  ;;  %v5501_v63 = vadd.f32 %v8520_v27, %v5156_v57  ;;  %v5499_v20 = vadd.f32 %v8523_v15, %v5154_v12  ;;  %v8527_v2 = vld [vmem:[#allocation40_spill] sm:$0xff]  ;;  %v8529_v57 = vld [vmem:[#allocation31_spill] sm:$0xff]  ;;  %v4888_v39 = vadd.f32 %v8530_v41, %v4594_v29  ;;  %v8531_v12 = vld [vmem:[#allocation26_spill] sm:$0xff]  ;;  %p7723_p1 = scmp.ne.s32.totalorder %s5988_s12, %s7722_s13  ;;  %p7728_p3 = scmp.lt.s32.totalorder %s7722_s13, %s7722_s13 }
 0x30b   :  { %v8311_v16 = vpop.f32.mrf.mxu1  ;;  %v5155_v44 = vadd.f32 %v8524_v48, %v4882_v38  ;;  %v8533_v38 = vld [vmem:[#allocation45_spill] sm:$0xff]  ;;  %v8539_v15 = vld [vmem:[#allocation27_spill] sm:$0xff] }
 0x30c   :  { %v5467_v28 = vpop.f32.mrf.mxu0  ;;  %v4239_v24 = vadd.f32 %v8534_v19, %v8533_v38  ;;  %p7729_p4 = por %p7728_p3, %p7727_p2 }
 0x30d   :  { %v8318_v49 = vpop.f32.mrf.mxu1 }
 0x30e   :  { %p7730_p5 = pnand %p7729_p4, %p7723_p1 }
 0x30f   :  { %v7337_v36 = vpop.f32.mrf.mxu1 }
 0x310   :  { %v5791_v47 = vadd.f32 %v7337_v36, %v5497_v56  ;;  %v8526_v36 = vld [vmem:[#allocation48_spill] sm:$0xff] }
 0x311   :  { %v5726_v55 = vpop.f32.mrf.mxu1  ;;  %v4592_v33 = vadd.f32 %v8526_v36, %v4235_v50  ;;  %v8532_v50 = vld [vmem:[#allocation42_spill] sm:$0xff] }
 0x312   :  { %v5789_v58 = vadd.f32 %v5726_v55, %v5495_v7  ;;  %v5846_v4 = vmul.f32 %v8336_v54, %v5791_v47  ;;  %v5502_v7 = vadd.f32 %v8293_v18, %v5157_v11  ;;  %v5160_v47 = vadd.f32 %v8527_v2, %v4887_v62 }
 0x313   :  { %v7338_v14 = vpop.f32.mrf.mxu1  ;;  %v4886_v11 = vadd.f32 %v8535_v25, %v4592_v33 }
 0x314   :  { %v5792_v6 = vadd.f32 %v7338_v14, %v5498_v35  ;;  %v5844_v26 = vmul.f32 %v8336_v54, %v5789_v58  ;;  %v5869_v37 = vadd.f32 %v8355_v0, %v5846_v4  ;;  %v8528_v35 = vld [vmem:[#allocation29_spill] sm:$0xff]  ;;  %v4597_v14 = vadd.f32 %v8531_v12, %v4240_v1  ;;  %v7317_v1 = vpop.f32.mrf.mxu0 }
 0x315   :  { %v5729_v32 = vpop.f32.mrf.mxu1  ;;  %v4241_v58 = vadd.f32 %v8529_v57, %v8528_v35  ;;  %v5500_v4 = vadd.f32 %v8303_v21, %v5155_v44 }
 0x316   :  { %v5847_v45 = vmul.f32 %v8336_v54, %v5792_v6  ;;  %v5790_v30 = vadd.f32 %v5729_v32, %v5496_v17  ;;  %v5867_v9 = vadd.f32 %v8355_v0, %v5844_v26  ;;  %v5158_v17 = vadd.f32 %v8532_v50, %v4885_v51  ;;  %v8536_v32 = vld [vmem:[#allocation37_spill] sm:$0xff] }
 0x317   :  { %v7341_v3 = vpop.f32.mrf.mxu1  ;;  %v4595_v27 = vadd.f32 %v8536_v32, %v4238_v60  ;;  %v4891_v29 = vadd.f32 %v8538_v42, %v4597_v14  ;;  %v5159_v60 = vadd.f32 %v8295_v23, %v4886_v11  ;;  %v4596_v51 = vadd.f32 %v8541_v59, %v4239_v24 }
 0x318   :  { %v5870_v61 = vadd.f32 %v8355_v0, %v5847_v45  ;;  %v5845_v56 = vmul.f32 %v8336_v54, %v5790_v30  ;;  %v5795_v34 = vadd.f32 %v7341_v3, %v5501_v63  ;;  %v8537_v63 = vld [vmem:[#allocation44_spill] sm:$0xff]  ;;  %v5505_v30 = vadd.f32 %v8316_v43, %v5160_v47 }
 0x319   :  { %v5742_v10 = vpop.f32.mrf.mxu1  ;;  %v5161_v26 = vadd.f32 %v8537_v63, %v4888_v39  ;;  %v5503_v48 = vadd.f32 %v8331_v40, %v5158_v17  ;;  %v5164_v33 = vadd.f32 %v8299_v31, %v4891_v29  ;;  %v5504_v35 = vadd.f32 %v5467_v28, %v5159_v60  ;;  %v8543_v31 = vld [vmem:[#allocation39_spill] sm:$0xff] }
 0x31a   :  { %v6440_v53 = vpack.c.bf16 %v5870_v61, %v5869_v37  ;;  %v5868_v55 = vadd.f32 %v8355_v0, %v5845_v56  ;;  %v5793_v8 = vadd.f32 %v5742_v10, %v5499_v20  ;;  %v5850_v22 = vmul.f32 %v8336_v54, %v5795_v34  ;;  %v8540_v56 = vld [vmem:[#allocation50_spill] sm:$0xff] }
 0x31b   :  { %v7342_v18 = vpop.f32.mrf.mxu1  ;;  %v4598_v20 = vadd.f32 %v8539_v15, %v4241_v58  ;;  %v4889_v34 = vadd.f32 %v8540_v56, %v4595_v27  ;;  %v5506_v36 = vadd.f32 %v7314_v13, %v5161_v26  ;;  %v4890_v41 = vadd.f32 %v8543_v31, %v4596_v51 }
 0x31c   :  { %6480 = vst [vmem:[#allocation9 + $0x48] sm:$0xff] %v6440_v53   ;;  %v6435_v6 = vpack.c.bf16 %v5868_v55, %v5867_v9  ;;  %v5796_v5 = vadd.f32 %v7342_v18, %v5502_v7  ;;  %v5848_v21 = vmul.f32 %v8336_v54, %v5793_v8  ;;  %v5873_v3 = vadd.f32 %v8355_v0, %v5850_v22  ;;  %v5480_v7 = vpop.f32.mrf.mxu0  ;;  %v8542_v9 = vld [vmem:[#allocation28_spill] sm:$0xff] }
 0x31d   :  { %v5745_v45 = vpop.f32.mrf.mxu1  ;;  %v4892_v53 = vadd.f32 %v8542_v9, %v4598_v20  ;;  %v5162_v55 = vadd.f32 %v8305_v52, %v4889_v34  ;;  %v5509_v50 = vadd.f32 %v7317_v1, %v5164_v33  ;;  %v5163_v28 = vadd.f32 %v8318_v49, %v4890_v41 }
 0x31e   :  { %6479 = vst [vmem:[#allocation9 + $0x40] sm:$0xff] %v6435_v6   ;;  %v5851_v46 = vmul.f32 %v8336_v54, %v5796_v5  ;;  %v5794_v62 = vadd.f32 %v5745_v45, %v5500_v4  ;;  %v5871_v40 = vadd.f32 %v8355_v0, %v5848_v21  ;;  %v7318_v12 = vpop.f32.mrf.mxu0 }
 0x31f   :  { %v7345_v44 = vpop.f32.mrf.mxu1  ;;  %v5165_v39 = vadd.f32 %v8311_v16, %v4892_v53  ;;  %v5507_v4 = vadd.f32 %v5480_v7, %v5162_v55 }
 0x320   :  { %v5874_v37 = vadd.f32 %v8355_v0, %v5851_v46  ;;  %v5849_v43 = vmul.f32 %v8336_v54, %v5794_v62  ;;  %v5799_v61 = vadd.f32 %v7345_v44, %v5505_v30  ;;  %v5483_v24 = vpop.f32.mrf.mxu0 }
 0x321   :  { %v5758_v2 = vpop.f32.mrf.mxu1  ;;  %v5510_v19 = vadd.f32 %v7318_v12, %v5165_v39  ;;  %v5508_v1 = vadd.f32 %v5483_v24, %v5163_v28 }
 0x322   :  { %v6450_v23 = vpack.c.bf16 %v5874_v37, %v5873_v3  ;;  %v5872_v47 = vadd.f32 %v8355_v0, %v5849_v43  ;;  %v5797_v10 = vadd.f32 %v5758_v2, %v5503_v48  ;;  %v5854_v13 = vmul.f32 %v8336_v54, %v5799_v61 }
 0x323   :  { %v7346_v8 = vpop.f32.mrf.mxu1 }
 0x324   :  { %6482 = vst [vmem:[#allocation9 + $0x58] sm:$0xff] %v6450_v23   ;;  %v6445_v57 = vpack.c.bf16 %v5872_v47, %v5871_v40  ;;  %v5800_v58 = vadd.f32 %v7346_v8, %v5506_v36  ;;  %v5852_v17 = vmul.f32 %v8336_v54, %v5797_v10  ;;  %v5877_v22 = vadd.f32 %v8355_v0, %v5854_v13 }
 0x325   :  { %v5761_v14 = vpop.f32.mrf.mxu1 }
 0x326   :  { %6481 = vst [vmem:[#allocation9 + $0x50] sm:$0xff] %v6445_v57   ;;  %v5855_v18 = vmul.f32 %v8336_v54, %v5800_v58  ;;  %v5798_v52 = vadd.f32 %v5761_v14, %v5504_v35  ;;  %v5875_v11 = vadd.f32 %v8355_v0, %v5852_v17 }
 0x327   :  { %v7349_v6 = vpop.f32.mrf.mxu1 }
 0x328   :  { %v5878_v5 = vadd.f32 %v8355_v0, %v5855_v18  ;;  %v5853_v38 = vmul.f32 %v8336_v54, %v5798_v52  ;;  %v5803_v16 = vadd.f32 %v7349_v6, %v5509_v50 }
 0x329   :  { %v5774_v25 = vpop.f32.mrf.mxu1 }
 0x32a   :  { %v6460_v32 = vpack.c.bf16 %v5878_v5, %v5877_v22  ;;  %v5876_v27 = vadd.f32 %v8355_v0, %v5853_v38  ;;  %v5801_v63 = vadd.f32 %v5774_v25, %v5507_v4  ;;  %v5858_v45 = vmul.f32 %v8336_v54, %v5803_v16 }
 0x32b   :  { %v7350_v26 = vpop.f32.mrf.mxu1 }
 0x32c   :  { %6484 = vst [vmem:[#allocation9 + $0x68] sm:$0xff] %v6460_v32   ;;  %v6455_v49 = vpack.c.bf16 %v5876_v27, %v5875_v11  ;;  %v5804_v30 = vadd.f32 %v7350_v26, %v5510_v19  ;;  %v5856_v46 = vmul.f32 %v8336_v54, %v5801_v63  ;;  %v5881_v29 = vadd.f32 %v8355_v0, %v5858_v45 }
 0x32d   :  { %v5777_v21 = vpop.f32.mrf.mxu1 }
 0x32e   :  { %6483 = vst [vmem:[#allocation9 + $0x60] sm:$0xff] %v6455_v49   ;;  %v5859_v62 = vmul.f32 %v8336_v54, %v5804_v30  ;;  %v5802_v42 = vadd.f32 %v5777_v21, %v5508_v1  ;;  %v5879_v48 = vadd.f32 %v8355_v0, %v5856_v46 }
 0x330   :  { %v5882_v15 = vadd.f32 %v8355_v0, %v5859_v62  ;;  %v5857_v20 = vmul.f32 %v8336_v54, %v5802_v42 }
 0x332   :  { %v6470_v60 = vpack.c.bf16 %v5882_v15, %v5881_v29  ;;  %v5880_v44 = vadd.f32 %v8355_v0, %v5857_v20 }
 0x334   :  { %6486 = vst [vmem:[#allocation9 + $0x78] sm:$0xff] %v6470_v60   ;;  %v6465_v3 = vpack.c.bf16 %v5880_v44, %v5879_v48 }
 0x336   :  { %6485 = vst [vmem:[#allocation9 + $0x70] sm:$0xff] %v6465_v3  }
 0x337   :  { %7733 = shalt.err (!%p7730_p5)
}
 0x338   :  { %5993 = dma.vmem_to_hbm [thread:$0]  %s5988_s12, 2048, %s8431_s4, [#allocation8], %s7751_s18, %s7751_s18, %s7752_s19  }
 0x339   :  { %7748 = dma.done.wait [#allocation8], 2048  }
 0x33a   :  { %7749 = vsyncadd [#allocation8], 4294965248 }
 0x33b   :  { %5997 = vsyncpa [#allocation7], 1 }
 0x33c   :  { %5998 = vsyncpa [#allocation8], 1 }
 0x33d   :  { %5999 = vsyncmov [#allocation4] }
 0x340   :  { %s6000_s16 = vpop.sfrf %5999 }
 0x341   :  { %p6358_p6 = scmp.ne.s32.totalorder %s6000_s16, 0 }
 0x343   :  { %6004 = shalt.err (%p6358_p6)  }
 0x344   :  { %6006 = vsyncmov [#allocation4 + $0x1] }
 0x347   :  { %s6007_s17 = vpop.sfrf %6006 }
 0x348   :  { %p6359_p7 = scmp.ne.s32.totalorder %s6007_s17, 0 }
 0x34a   :  { %6011 = shalt.err (%p6359_p7)  }

</bundles_post_ra>
